<compile_context>
chip_gen: v7x
topology: tpu7x:2x2x1
jax: 0.10.0
libtpu: 0.0.40
codegen_flags: <defaults>
</compile_context>

<pallas_src>
import jax
import jax.numpy as jnp
from jax.experimental import pallas as pl
from jax.experimental.pallas import tpu as pltpu


def _round_up(x, m):
    return ((x + m - 1) // m) * m


def _vmem_capacity_bytes():
    try:
        return int(getattr(pltpu.get_tpu_info(), "vmem_capacity_bytes", 64 << 20))
    except Exception:
        return 64 << 20  # conservative default (v7x per-TensorCore VMEM)


def _vmem_limit(need_bytes, cap_bytes):
    # Never request more than ~3/4 of physical VMEM (v7x has only 64 MiB per TensorCore).
    return int(min(max(int(1.5 * need_bytes), 16 << 20), (cap_bytes * 3) // 4))


def _prep_params(conv_w, conv_b, ln_gamma, ln_beta, c, p, d, dp, op_dtype):
    """Conv weight (d,c,p,p) -> (K, dp) with K ordered (ci, pr, pc); pad lanes to dp."""
    K = c * p * p
    w_mat = jnp.transpose(conv_w.reshape(d, K)).astype(op_dtype)
    if dp != d:
        w_mat = jnp.pad(w_mat, ((0, 0), (0, dp - d)))
        bias = jnp.pad(conv_b, (0, dp - d))
        gamma = jnp.pad(ln_gamma, (0, dp - d))
        beta = jnp.pad(ln_beta, (0, dp - d))
    else:
        bias, gamma, beta = conv_b, ln_gamma, ln_beta
    return (w_mat,
            bias.reshape(1, dp).astype(jnp.float32),
            gamma.reshape(1, dp).astype(jnp.float32),
            beta.reshape(1, dp).astype(jnp.float32))


def _resident_specs(K, dp, single_buffer, grid_rank):
    """Specs for weight / bias / gamma / beta: constant block index -> resident in VMEM.
    When single_buffer, request a single buffer (they never change block index)."""
    imap = (lambda i: (0, 0)) if grid_rank == 1 else (lambda i, j: (0, 0))
    shapes = [(K, dp), (1, dp), (1, dp), (1, dp)]
    specs = []
    for s in shapes:
        spec = None
        if single_buffer:
            try:
                spec = pl.BlockSpec(s, imap, pipeline_mode=pl.Buffered(1))
            except Exception:
                spec = None
        if spec is None:
            spec = pl.BlockSpec(s, imap)
        specs.append(spec)
    return specs


def _project_and_norm(lhs, w_ref, b_ref, g_ref, beta_ref, o_ref, d, dp, op_dtype):
    """(rows, K) @ (K, dp) + bias, then LayerNorm over the true embed dim d (f32 math)."""
    if lhs.dtype != op_dtype:
        lhs = lhs.astype(op_dtype)  # bf16 MXU path: cast in VMEM, never in HBM
    y = jnp.dot(lhs, w_ref[...], preferred_element_type=jnp.float32)
    y = y + b_ref[...]
    inv_n = 1.0 / float(d)
    if dp != d:
        # Padded lanes of y are exactly 0 (zero-padded W columns / bias), so plain sums over
        # the padded width already equal the sums over the true embed dim.
        mean = jnp.sum(y, axis=-1, keepdims=True) * inv_n
        ex2 = jnp.sum(y * y, axis=-1, keepdims=True) * inv_n
        var = jnp.maximum(ex2 - mean * mean, 0.0)
    else:
        mean = jnp.mean(y, axis=-1, keepdims=True)
        cen = y - mean
        var = jnp.mean(cen * cen, axis=-1, keepdims=True)
    inv = jax.lax.rsqrt(var + 1e-5)  # matches torch.nn.LayerNorm(eps=1e-5)
    o_ref[...] = ((y - mean) * inv * g_ref[...] + beta_ref[...]).astype(o_ref.dtype)


def _pick_rb(b, ph, pw, c, p, target_rows, max_stmts=512):
    """Patch-rows (along ph) handled per grid step.  rb must divide ph; rb*pw must be a
    multiple of 8 (or rb == ph, full extent) for a legal output block; keep the unrolled
    gather bounded and keep >= 2 grid tiles so both v7x TensorCores get work."""
    best = None
    for rb in range(1, ph + 1):
        if ph % rb:
            continue
        rows = rb * pw
        if rows % 8 and rb != ph:
            continue
        if c * p * rb > max_stmts and rb != ph:
            continue
        if rows > target_rows and best is not None:
            break
        if b * (ph // rb) < 2 and best is not None:
            continue
        best = rb
    return best if best is not None else ph


def _patchify_fused(xb, conv_w, conv_b, ln_gamma, ln_beta, p, matmul_dtype):
    """Primary path: patch gather + projection + LayerNorm in one kernel (x read once)."""
    b, c, h, w = xb.shape
    ph, pw = h // p, w // p
    d = conv_w.shape[0]
    K = c * p * p
    L = ph * pw
    dp = _round_up(d, 128)  # lane-dense output tiles -> unmasked vector stores
    op_dtype = jnp.dtype(matmul_dtype) if matmul_dtype is not None else jnp.dtype(xb.dtype)
    out_dtype = xb.dtype

    itm_x = jnp.dtype(xb.dtype).itemsize
    itm_op = jnp.dtype(op_dtype).itemsize
    itm_out = jnp.dtype(out_dtype).itemsize

    cap = _vmem_capacity_bytes()
    # Per patch-row VMEM: double-buffered x block + out block, gather scratch, ~4 f32 LN temps.
    per_row = 2 * K * itm_x + 2 * dp * itm_out + _round_up(K, 128) * itm_x + 4 * dp * 4
    w_bytes = K * dp * itm_op
    rows_budget = max(8, (cap // 2 - w_bytes) // max(per_row, 1))
    rb = _pick_rb(b, ph, pw, c, p, target_rows=min(512, int(rows_budget)))
    rows = rb * pw
    n_row_tiles = ph // rb

    need = rows * per_row + w_bytes + 3 * 8 * dp * 4
    vmem_limit = _vmem_limit(need, cap)

    # Free 6-D view of the NCHW input: (b, c, ph, p, pw, p).  The patch gather happens in
    # VMEM inside the kernel, so x is read from HBM exactly once.
    x6 = xb.reshape(b, c, ph, p, pw, p)
    w_mat, bias, gamma, beta = _prep_params(conv_w, conv_b, ln_gamma, ln_beta, c, p, d, dp,
                                            op_dtype)

    def kernel(x_ref, w_ref, b_ref, g_ref, beta_ref, o_ref, pat_ref):
        # x_ref: (c, rb, p, pw, p) strip of rb patch-rows.  Rearrange into the (rows, K)
        # patch matrix (K ordered (ci, pr, pc), matching w_ref) entirely in VMEM.
        for ci in range(c):
            for pr in range(p):
                k0 = (ci * p + pr) * p
                for r in range(rb):
                    pat_ref[r * pw:(r + 1) * pw, k0:k0 + p] = x_ref[ci, r, pr, :, :]
        _project_and_norm(pat_ref[...], w_ref, b_ref, g_ref, beta_ref, o_ref, d, dp, op_dtype)

    def run(single_buffer):
        in_specs = [pl.BlockSpec((None, c, rb, p, pw, p),
                                 lambda gb, gr: (gb, 0, gr, 0, 0, 0))]
        in_specs += _resident_specs(K, dp, single_buffer, grid_rank=2)
        out_specs = pl.BlockSpec((None, rows, dp), lambda gb, gr: (gb, gr, 0))
        return pl.pallas_call(
            kernel,
            out_shape=jax.ShapeDtypeStruct((b, L, dp), out_dtype),
            grid_spec=pltpu.PrefetchScalarGridSpec(
                num_scalar_prefetch=0,
                grid=(b, n_row_tiles),
                in_specs=in_specs,
                out_specs=out_specs,
                scratch_shapes=[pltpu.VMEM((rows, K), xb.dtype)],
            ),
            compiler_params=pltpu.CompilerParams(
                dimension_semantics=("parallel", "parallel"),
                vmem_limit_bytes=vmem_limit,
            ),
        )(x6, w_mat, bias, gamma, beta)

    try:
        out = run(True)    # resident weight / LN params single-buffered
    except Exception:
        out = run(False)   # default double-buffering
    if dp != d:
        out = out[..., :d]
    return out


def _patchify_prearranged(xb, conv_w, conv_b, ln_gamma, ln_beta, p, matmul_dtype, tm=1024):
    """Fallback path: patch extraction done by XLA in the wrapper (one extra HBM round trip
    for the activation); projection + LayerNorm fused in the Pallas kernel. No M padding:
    the grid uses cdiv and Pallas clips the ragged final block."""
    b, c, h, w = xb.shape
    ph, pw = h // p, w // p
    d = conv_w.shape[0]
    K = c * p * p
    L = ph * pw
    dp = _round_up(d, 128)
    op_dtype = jnp.dtype(matmul_dtype) if matmul_dtype is not None else jnp.dtype(xb.dtype)
    out_dtype = xb.dtype

    patches = xb.reshape(b, c, ph, p, pw, p)
    patches = jnp.transpose(patches, (0, 2, 4, 1, 3, 5)).reshape(b * L, K)
    w_mat, bias, gamma, beta = _prep_params(conv_w, conv_b, ln_gamma, ln_beta, c, p, d, dp,
                                            op_dtype)

    M = b * L
    itm = jnp.dtype(xb.dtype).itemsize
    itm_op = jnp.dtype(op_dtype).itemsize
    itm_out = jnp.dtype(out_dtype).itemsize
    cap = _vmem_capacity_bytes()

    def _need(t):
        return (2 * t * K * itm + 2 * t * dp * itm_out + K * dp * itm_op
                + 4 * t * dp * 4 + 3 * 8 * dp * 4)

    tm = max(8, min(_round_up(tm, 8), _round_up(M, 8)))
    while tm > 8 and _need(tm) > (cap * 3) // 5:
        tm = max(8, _round_up(tm // 2, 8))
    vmem_limit = _vmem_limit(_need(tm), cap)
    n_tiles = pl.cdiv(M, tm)  # ragged final block is clipped by Pallas; its rows are discarded

    def kernel(x_ref, w_ref, b_ref, g_ref, beta_ref, o_ref):
        _project_and_norm(x_ref[...], w_ref, b_ref, g_ref, beta_ref, o_ref, d, dp, op_dtype)

    def run(single_buffer):
        in_specs = [pl.BlockSpec((tm, K), lambda i: (i, 0))]
        in_specs += _resident_specs(K, dp, single_buffer, grid_rank=1)
        return pl.pallas_call(
            kernel,
            out_shape=jax.ShapeDtypeStruct((M, dp), out_dtype),
            grid_spec=pltpu.PrefetchScalarGridSpec(
                num_scalar_prefetch=0,
                grid=(n_tiles,),
                in_specs=in_specs,
                out_specs=pl.BlockSpec((tm, dp), lambda i: (i, 0)),
            ),
            compiler_params=pltpu.CompilerParams(
                dimension_semantics=("parallel",),
                vmem_limit_bytes=vmem_limit,
            ),
        )(patches, w_mat, bias, gamma, beta)

    try:
        out = run(True)
    except Exception:
        out = run(False)
    if dp != d:
        out = out[:, :d]
    return out.reshape(b, L, d)


def patchify_forward(xb, conv_w, conv_b, ln_gamma, ln_beta, patch_size, *, matmul_dtype=None):
    """Patchify forward.  xb: (b, c, h, w) NCHW.  Returns (b, (h//p)*(w//p), embed_dim) in
    xb.dtype.  matmul_dtype=jnp.bfloat16 selects the bf16 MXU path (f32 accumulation + LN)."""
    b, c, h, w = xb.shape
    p = int(patch_size)
    assert h % p == 0 and w % p == 0, "spatial dims must be divisible by patch_size"
    try:
        return _patchify_fused(xb, conv_w, conv_b, ln_gamma, ln_beta, p, matmul_dtype)
    except Exception:
        # TODO(synk): drop this fallback once the fused NCHW gather path is verified on every
        # deployed toolchain; it re-introduces one extra HBM round trip for the activation.
        return _patchify_prearranged(xb, conv_w, conv_b, ln_gamma, ln_beta, p, matmul_dtype)


if __name__ == "__main__":
    # Small shapes consistent with the module's forward.
    b, c, h, w = 2, 4, 16, 16
    patch_size = 4
    embed_dim = 32

    key = jax.random.PRNGKey(0)
    kx, kw, kb = jax.random.split(key, 3)

    xb = jax.random.normal(kx, (b, c, h, w), dtype=jnp.float32)
    conv_w = jax.random.normal(kw, (embed_dim, c, patch_size, patch_size),
                               dtype=jnp.float32) * 0.05
    conv_b = jax.random.normal(kb, (embed_dim,), dtype=jnp.float32) * 0.05
    ln_gamma = jnp.ones((embed_dim,), dtype=jnp.float32)
    ln_beta = jnp.zeros((embed_dim,), dtype=jnp.float32)

    out = patchify_forward(xb, conv_w, conv_b, ln_gamma, ln_beta, patch_size)
    jax.block_until_ready(out)

    # Pure-JAX reference: conv (stride=kernel=patch) + rearrange + LayerNorm.
    ref = jax.lax.conv_general_dilated(
        xb, conv_w, (patch_size, patch_size), "VALID",
        dimension_numbers=("NCHW", "OIHW", "NCHW"))
    ref = ref + conv_b.reshape(1, embed_dim, 1, 1)
    ref = ref.reshape(b, embed_dim, -1).transpose(0, 2, 1)
    mu = ref.mean(-1, keepdims=True)
    var = ((ref - mu) ** 2).mean(-1, keepdims=True)
    ref = (ref - mu) / jnp.sqrt(var + 1e-5) * ln_gamma + ln_beta

    n_patches = (h // patch_size) * (w // patch_size)
    assert out.shape == (b, n_patches, embed_dim)
    assert jnp.allclose(out, ref, atol=1e-4, rtol=1e-4)

    # Optional bf16-MXU path (operands cast in VMEM, f32 accumulation + LayerNorm).
    out_bf16 = patchify_forward(xb, conv_w, conv_b, ln_gamma, ln_beta, patch_size,
                                matmul_dtype=jnp.bfloat16)
    jax.block_until_ready(out_bf16)
    assert out_bf16.shape == (b, n_patches, embed_dim)
    assert jnp.allclose(out_bf16.astype(jnp.float32), ref, atol=1e-1, rtol=1e-1)

    print("KERNEL_OK")
</pallas_src>

<mosaic_0001>
module attributes {stable_mosaic.version = 11 : i64} {
  func.func @kernel(%arg0: i32, %arg1: i32, %arg2: memref<1x4x4x4x4x4xf32, #tpu.memory_space<vmem>>, %arg3: memref<64x128xf32, #tpu.memory_space<vmem>>, %arg4: memref<1x128xf32, #tpu.memory_space<vmem>>, %arg5: memref<1x128xf32, #tpu.memory_space<vmem>>, %arg6: memref<1x128xf32, #tpu.memory_space<vmem>>, %arg7: memref<1x16x128xf32, #tpu.memory_space<vmem>>, %arg8: memref<16x64xf32, #tpu.memory_space<vmem>>) attributes {dimension_semantics = [#tpu.dimension_semantics<parallel>, #tpu.dimension_semantics<parallel>], iteration_bounds = array<i64: 2, 1>, scalar_prefetch = 0 : i64, scratch_operands = 1 : i64, tpu.core_type = #tpu.core_type<tc>, window_params = [{transform_indices = @transform_0, window_bounds = array<i64: 1, 4, 4, 4, 4, 4>}, {pipeline_mode = #tpu.pipeline_mode<synchronous>, transform_indices = @transform_1, window_bounds = array<i64: 64, 128>}, {pipeline_mode = #tpu.pipeline_mode<synchronous>, transform_indices = @transform_2, window_bounds = array<i64: 1, 128>}, {pipeline_mode = #tpu.pipeline_mode<synchronous>, transform_indices = @transform_3, window_bounds = array<i64: 1, 128>}, {pipeline_mode = #tpu.pipeline_mode<synchronous>, transform_indices = @transform_4, window_bounds = array<i64: 1, 128>}, {transform_indices = @transform_5, window_bounds = array<i64: 1, 16, 128>}]} {
    %c0 = arith.constant 0 : index
    %c0_0 = arith.constant 0 : index
    %c0_1 = arith.constant 0 : index
    %c0_2 = arith.constant 0 : index
    %c0_3 = arith.constant 0 : index
    %c0_4 = arith.constant 0 : index
    %0 = vector.load %arg2[%c0, %c0_0, %c0_1, %c0_2, %c0_3, %c0_4] : memref<1x4x4x4x4x4xf32, #tpu.memory_space<vmem>>, vector<1x1x1x1x4x4xf32>
    %1 = vector.shape_cast %0 : vector<1x1x1x1x4x4xf32> to vector<4x4xf32>
    %c0_5 = arith.constant 0 : index
    %c0_6 = arith.constant 0 : index
    %2 = vector.load %arg8[%c0_5, %c0_6] : memref<16x64xf32, #tpu.memory_space<vmem>>, vector<4x4xf32>
    tpu.vector_store %arg8[%c0_5, %c0_6], %1 {strides = array<i32>} : memref<16x64xf32, #tpu.memory_space<vmem>>, vector<4x4xf32>,
    %c0_7 = arith.constant 0 : index
    %c0_8 = arith.constant 0 : index
    %c1 = arith.constant 1 : index
    %c0_9 = arith.constant 0 : index
    %c0_10 = arith.constant 0 : index
    %c0_11 = arith.constant 0 : index
    %3 = vector.load %arg2[%c0_7, %c0_8, %c1, %c0_9, %c0_10, %c0_11] : memref<1x4x4x4x4x4xf32, #tpu.memory_space<vmem>>, vector<1x1x1x1x4x4xf32>
    %4 = vector.shape_cast %3 : vector<1x1x1x1x4x4xf32> to vector<4x4xf32>
    %c4 = arith.constant 4 : index
    %c0_12 = arith.constant 0 : index
    %5 = vector.load %arg8[%c4, %c0_12] : memref<16x64xf32, #tpu.memory_space<vmem>>, vector<4x4xf32>
    tpu.vector_store %arg8[%c4, %c0_12], %4 {strides = array<i32>} : memref<16x64xf32, #tpu.memory_space<vmem>>, vector<4x4xf32>,
    %c0_13 = arith.constant 0 : index
    %c0_14 = arith.constant 0 : index
    %c2 = arith.constant 2 : index
    %c0_15 = arith.constant 0 : index
    %c0_16 = arith.constant 0 : index
    %c0_17 = arith.constant 0 : index
    %6 = vector.load %arg2[%c0_13, %c0_14, %c2, %c0_15, %c0_16, %c0_17] : memref<1x4x4x4x4x4xf32, #tpu.memory_space<vmem>>, vector<1x1x1x1x4x4xf32>
    %7 = vector.shape_cast %6 : vector<1x1x1x1x4x4xf32> to vector<4x4xf32>
    %c8 = arith.constant 8 : index
    %c0_18 = arith.constant 0 : index
    %8 = vector.load %arg8[%c8, %c0_18] : memref<16x64xf32, #tpu.memory_space<vmem>>, vector<4x4xf32>
    tpu.vector_store %arg8[%c8, %c0_18], %7 {strides = array<i32>} : memref<16x64xf32, #tpu.memory_space<vmem>>, vector<4x4xf32>,
    %c0_19 = arith.constant 0 : index
    %c0_20 = arith.constant 0 : index
    %c3 = arith.constant 3 : index
    %c0_21 = arith.constant 0 : index
    %c0_22 = arith.constant 0 : index
    %c0_23 = arith.constant 0 : index
    %9 = vector.load %arg2[%c0_19, %c0_20, %c3, %c0_21, %c0_22, %c0_23] : memref<1x4x4x4x4x4xf32, #tpu.memory_space<vmem>>, vector<1x1x1x1x4x4xf32>
    %10 = vector.shape_cast %9 : vector<1x1x1x1x4x4xf32> to vector<4x4xf32>
    %c12 = arith.constant 12 : index
    %c0_24 = arith.constant 0 : index
    %11 = vector.load %arg8[%c12, %c0_24] : memref<16x64xf32, #tpu.memory_space<vmem>>, vector<4x4xf32>
    tpu.vector_store %arg8[%c12, %c0_24], %10 {strides = array<i32>} : memref<16x64xf32, #tpu.memory_space<vmem>>, vector<4x4xf32>,
    %c0_25 = arith.constant 0 : index
    %c0_26 = arith.constant 0 : index
    %c0_27 = arith.constant 0 : index
    %c1_28 = arith.constant 1 : index
    %c0_29 = arith.constant 0 : index
    %c0_30 = arith.constant 0 : index
    %12 = vector.load %arg2[%c0_25, %c0_26, %c0_27, %c1_28, %c0_29, %c0_30] : memref<1x4x4x4x4x4xf32, #tpu.memory_space<vmem>>, vector<1x1x1x1x4x4xf32>
    %13 = vector.shape_cast %12 : vector<1x1x1x1x4x4xf32> to vector<4x4xf32>
    %c0_31 = arith.constant 0 : index
    %c4_32 = arith.constant 4 : index
    %14 = vector.load %arg8[%c0_31, %c4_32] : memref<16x64xf32, #tpu.memory_space<vmem>>, vector<4x4xf32>
    tpu.vector_store %arg8[%c0_31, %c4_32], %13 {strides = array<i32>} : memref<16x64xf32, #tpu.memory_space<vmem>>, vector<4x4xf32>,
    %c0_33 = arith.constant 0 : index
    %c0_34 = arith.constant 0 : index
    %c1_35 = arith.constant 1 : index
    %c1_36 = arith.constant 1 : index
    %c0_37 = arith.constant 0 : index
    %c0_38 = arith.constant 0 : index
    %15 = vector.load %arg2[%c0_33, %c0_34, %c1_35, %c1_36, %c0_37, %c0_38] : memref<1x4x4x4x4x4xf32, #tpu.memory_space<vmem>>, vector<1x1x1x1x4x4xf32>
    %16 = vector.shape_cast %15 : vector<1x1x1x1x4x4xf32> to vector<4x4xf32>
    %c4_39 = arith.constant 4 : index
    %c4_40 = arith.constant 4 : index
    %17 = vector.load %arg8[%c4_39, %c4_40] : memref<16x64xf32, #tpu.memory_space<vmem>>, vector<4x4xf32>
    tpu.vector_store %arg8[%c4_39, %c4_40], %16 {strides = array<i32>} : memref<16x64xf32, #tpu.memory_space<vmem>>, vector<4x4xf32>,
    %c0_41 = arith.constant 0 : index
    %c0_42 = arith.constant 0 : index
    %c2_43 = arith.constant 2 : index
    %c1_44 = arith.constant 1 : index
    %c0_45 = arith.constant 0 : index
    %c0_46 = arith.constant 0 : index
    %18 = vector.load %arg2[%c0_41, %c0_42, %c2_43, %c1_44, %c0_45, %c0_46] : memref<1x4x4x4x4x4xf32, #tpu.memory_space<vmem>>, vector<1x1x1x1x4x4xf32>
    %19 = vector.shape_cast %18 : vector<1x1x1x1x4x4xf32> to vector<4x4xf32>
    %c8_47 = arith.constant 8 : index
    %c4_48 = arith.constant 4 : index
    %20 = vector.load %arg8[%c8_47, %c4_48] : memref<16x64xf32, #tpu.memory_space<vmem>>, vector<4x4xf32>
    tpu.vector_store %arg8[%c8_47, %c4_48], %19 {strides = array<i32>} : memref<16x64xf32, #tpu.memory_space<vmem>>, vector<4x4xf32>,
    %c0_49 = arith.constant 0 : index
    %c0_50 = arith.constant 0 : index
    %c3_51 = arith.constant 3 : index
    %c1_52 = arith.constant 1 : index
    %c0_53 = arith.constant 0 : index
    %c0_54 = arith.constant 0 : index
    %21 = vector.load %arg2[%c0_49, %c0_50, %c3_51, %c1_52, %c0_53, %c0_54] : memref<1x4x4x4x4x4xf32, #tpu.memory_space<vmem>>, vector<1x1x1x1x4x4xf32>
    %22 = vector.shape_cast %21 : vector<1x1x1x1x4x4xf32> to vector<4x4xf32>
    %c12_55 = arith.constant 12 : index
    %c4_56 = arith.constant 4 : index
    %23 = vector.load %arg8[%c12_55, %c4_56] : memref<16x64xf32, #tpu.memory_space<vmem>>, vector<4x4xf32>
    tpu.vector_store %arg8[%c12_55, %c4_56], %22 {strides = array<i32>} : memref<16x64xf32, #tpu.memory_space<vmem>>, vector<4x4xf32>,
    %c0_57 = arith.constant 0 : index
    %c0_58 = arith.constant 0 : index
    %c0_59 = arith.constant 0 : index
    %c2_60 = arith.constant 2 : index
    %c0_61 = arith.constant 0 : index
    %c0_62 = arith.constant 0 : index
    %24 = vector.load %arg2[%c0_57, %c0_58, %c0_59, %c2_60, %c0_61, %c0_62] : memref<1x4x4x4x4x4xf32, #tpu.memory_space<vmem>>, vector<1x1x1x1x4x4xf32>
    %25 = vector.shape_cast %24 : vector<1x1x1x1x4x4xf32> to vector<4x4xf32>
    %c0_63 = arith.constant 0 : index
    %c8_64 = arith.constant 8 : index
    %26 = vector.load %arg8[%c0_63, %c8_64] : memref<16x64xf32, #tpu.memory_space<vmem>>, vector<4x4xf32>
    tpu.vector_store %arg8[%c0_63, %c8_64], %25 {strides = array<i32>} : memref<16x64xf32, #tpu.memory_space<vmem>>, vector<4x4xf32>,
    %c0_65 = arith.constant 0 : index
    %c0_66 = arith.constant 0 : index
    %c1_67 = arith.constant 1 : index
    %c2_68 = arith.constant 2 : index
    %c0_69 = arith.constant 0 : index
    %c0_70 = arith.constant 0 : index
    %27 = vector.load %arg2[%c0_65, %c0_66, %c1_67, %c2_68, %c0_69, %c0_70] : memref<1x4x4x4x4x4xf32, #tpu.memory_space<vmem>>, vector<1x1x1x1x4x4xf32>
    %28 = vector.shape_cast %27 : vector<1x1x1x1x4x4xf32> to vector<4x4xf32>
    %c4_71 = arith.constant 4 : index
    %c8_72 = arith.constant 8 : index
    %29 = vector.load %arg8[%c4_71, %c8_72] : memref<16x64xf32, #tpu.memory_space<vmem>>, vector<4x4xf32>
    tpu.vector_store %arg8[%c4_71, %c8_72], %28 {strides = array<i32>} : memref<16x64xf32, #tpu.memory_space<vmem>>, vector<4x4xf32>,
    %c0_73 = arith.constant 0 : index
    %c0_74 = arith.constant 0 : index
    %c2_75 = arith.constant 2 : index
    %c2_76 = arith.constant 2 : index
    %c0_77 = arith.constant 0 : index
    %c0_78 = arith.constant 0 : index
    %30 = vector.load %arg2[%c0_73, %c0_74, %c2_75, %c2_76, %c0_77, %c0_78] : memref<1x4x4x4x4x4xf32, #tpu.memory_space<vmem>>, vector<1x1x1x1x4x4xf32>
    %31 = vector.shape_cast %30 : vector<1x1x1x1x4x4xf32> to vector<4x4xf32>
    %c8_79 = arith.constant 8 : index
    %c8_80 = arith.constant 8 : index
    %32 = vector.load %arg8[%c8_79, %c8_80] : memref<16x64xf32, #tpu.memory_space<vmem>>, vector<4x4xf32>
    tpu.vector_store %arg8[%c8_79, %c8_80], %31 {strides = array<i32>} : memref<16x64xf32, #tpu.memory_space<vmem>>, vector<4x4xf32>,
    %c0_81 = arith.constant 0 : index
    %c0_82 = arith.constant 0 : index
    %c3_83 = arith.constant 3 : index
    %c2_84 = arith.constant 2 : index
    %c0_85 = arith.constant 0 : index
    %c0_86 = arith.constant 0 : index
    %33 = vector.load %arg2[%c0_81, %c0_82, %c3_83, %c2_84, %c0_85, %c0_86] : memref<1x4x4x4x4x4xf32, #tpu.memory_space<vmem>>, vector<1x1x1x1x4x4xf32>
    %34 = vector.shape_cast %33 : vector<1x1x1x1x4x4xf32> to vector<4x4xf32>
    %c12_87 = arith.constant 12 : index
    %c8_88 = arith.constant 8 : index
    %35 = vector.load %arg8[%c12_87, %c8_88] : memref<16x64xf32, #tpu.memory_space<vmem>>, vector<4x4xf32>
    tpu.vector_store %arg8[%c12_87, %c8_88], %34 {strides = array<i32>} : memref<16x64xf32, #tpu.memory_space<vmem>>, vector<4x4xf32>,
    %c0_89 = arith.constant 0 : index
    %c0_90 = arith.constant 0 : index
    %c0_91 = arith.constant 0 : index
    %c3_92 = arith.constant 3 : index
    %c0_93 = arith.constant 0 : index
    %c0_94 = arith.constant 0 : index
    %36 = vector.load %arg2[%c0_89, %c0_90, %c0_91, %c3_92, %c0_93, %c0_94] : memref<1x4x4x4x4x4xf32, #tpu.memory_space<vmem>>, vector<1x1x1x1x4x4xf32>
    %37 = vector.shape_cast %36 : vector<1x1x1x1x4x4xf32> to vector<4x4xf32>
    %c0_95 = arith.constant 0 : index
    %c12_96 = arith.constant 12 : index
    %38 = vector.load %arg8[%c0_95, %c12_96] : memref<16x64xf32, #tpu.memory_space<vmem>>, vector<4x4xf32>
    tpu.vector_store %arg8[%c0_95, %c12_96], %37 {strides = array<i32>} : memref<16x64xf32, #tpu.memory_space<vmem>>, vector<4x4xf32>,
    %c0_97 = arith.constant 0 : index
    %c0_98 = arith.constant 0 : index
    %c1_99 = arith.constant 1 : index
    %c3_100 = arith.constant 3 : index
    %c0_101 = arith.constant 0 : index
    %c0_102 = arith.constant 0 : index
    %39 = vector.load %arg2[%c0_97, %c0_98, %c1_99, %c3_100, %c0_101, %c0_102] : memref<1x4x4x4x4x4xf32, #tpu.memory_space<vmem>>, vector<1x1x1x1x4x4xf32>
    %40 = vector.shape_cast %39 : vector<1x1x1x1x4x4xf32> to vector<4x4xf32>
    %c4_103 = arith.constant 4 : index
    %c12_104 = arith.constant 12 : index
    %41 = vector.load %arg8[%c4_103, %c12_104] : memref<16x64xf32, #tpu.memory_space<vmem>>, vector<4x4xf32>
    tpu.vector_store %arg8[%c4_103, %c12_104], %40 {strides = array<i32>} : memref<16x64xf32, #tpu.memory_space<vmem>>, vector<4x4xf32>,
    %c0_105 = arith.constant 0 : index
    %c0_106 = arith.constant 0 : index
    %c2_107 = arith.constant 2 : index
    %c3_108 = arith.constant 3 : index
    %c0_109 = arith.constant 0 : index
    %c0_110 = arith.constant 0 : index
    %42 = vector.load %arg2[%c0_105, %c0_106, %c2_107, %c3_108, %c0_109, %c0_110] : memref<1x4x4x4x4x4xf32, #tpu.memory_space<vmem>>, vector<1x1x1x1x4x4xf32>
    %43 = vector.shape_cast %42 : vector<1x1x1x1x4x4xf32> to vector<4x4xf32>
    %c8_111 = arith.constant 8 : index
    %c12_112 = arith.constant 12 : index
    %44 = vector.load %arg8[%c8_111, %c12_112] : memref<16x64xf32, #tpu.memory_space<vmem>>, vector<4x4xf32>
    tpu.vector_store %arg8[%c8_111, %c12_112], %43 {strides = array<i32>} : memref<16x64xf32, #tpu.memory_space<vmem>>, vector<4x4xf32>,
    %c0_113 = arith.constant 0 : index
    %c0_114 = arith.constant 0 : index
    %c3_115 = arith.constant 3 : index
    %c3_116 = arith.constant 3 : index
    %c0_117 = arith.constant 0 : index
    %c0_118 = arith.constant 0 : index
    %45 = vector.load %arg2[%c0_113, %c0_114, %c3_115, %c3_116, %c0_117, %c0_118] : memref<1x4x4x4x4x4xf32, #tpu.memory_space<vmem>>, vector<1x1x1x1x4x4xf32>
    %46 = vector.shape_cast %45 : vector<1x1x1x1x4x4xf32> to vector<4x4xf32>
    %c12_119 = arith.constant 12 : index
    %c12_120 = arith.constant 12 : index
    %47 = vector.load %arg8[%c12_119, %c12_120] : memref<16x64xf32, #tpu.memory_space<vmem>>, vector<4x4xf32>
    tpu.vector_store %arg8[%c12_119, %c12_120], %46 {strides = array<i32>} : memref<16x64xf32, #tpu.memory_space<vmem>>, vector<4x4xf32>,
    %c0_121 = arith.constant 0 : index
    %c1_122 = arith.constant 1 : index
    %c0_123 = arith.constant 0 : index
    %c0_124 = arith.constant 0 : index
    %c0_125 = arith.constant 0 : index
    %c0_126 = arith.constant 0 : index
    %48 = vector.load %arg2[%c0_121, %c1_122, %c0_123, %c0_124, %c0_125, %c0_126] : memref<1x4x4x4x4x4xf32, #tpu.memory_space<vmem>>, vector<1x1x1x1x4x4xf32>
    %49 = vector.shape_cast %48 : vector<1x1x1x1x4x4xf32> to vector<4x4xf32>
    %c0_127 = arith.constant 0 : index
    %c16 = arith.constant 16 : index
    %50 = vector.load %arg8[%c0_127, %c16] : memref<16x64xf32, #tpu.memory_space<vmem>>, vector<4x4xf32>
    tpu.vector_store %arg8[%c0_127, %c16], %49 {strides = array<i32>} : memref<16x64xf32, #tpu.memory_space<vmem>>, vector<4x4xf32>,
    %c0_128 = arith.constant 0 : index
    %c1_129 = arith.constant 1 : index
    %c1_130 = arith.constant 1 : index
    %c0_131 = arith.constant 0 : index
    %c0_132 = arith.constant 0 : index
    %c0_133 = arith.constant 0 : index
    %51 = vector.load %arg2[%c0_128, %c1_129, %c1_130, %c0_131, %c0_132, %c0_133] : memref<1x4x4x4x4x4xf32, #tpu.memory_space<vmem>>, vector<1x1x1x1x4x4xf32>
    %52 = vector.shape_cast %51 : vector<1x1x1x1x4x4xf32> to vector<4x4xf32>
    %c4_134 = arith.constant 4 : index
    %c16_135 = arith.constant 16 : index
    %53 = vector.load %arg8[%c4_134, %c16_135] : memref<16x64xf32, #tpu.memory_space<vmem>>, vector<4x4xf32>
    tpu.vector_store %arg8[%c4_134, %c16_135], %52 {strides = array<i32>} : memref<16x64xf32, #tpu.memory_space<vmem>>, vector<4x4xf32>,
    %c0_136 = arith.constant 0 : index
    %c1_137 = arith.constant 1 : index
    %c2_138 = arith.constant 2 : index
    %c0_139 = arith.constant 0 : index
    %c0_140 = arith.constant 0 : index
    %c0_141 = arith.constant 0 : index
    %54 = vector.load %arg2[%c0_136, %c1_137, %c2_138, %c0_139, %c0_140, %c0_141] : memref<1x4x4x4x4x4xf32, #tpu.memory_space<vmem>>, vector<1x1x1x1x4x4xf32>
    %55 = vector.shape_cast %54 : vector<1x1x1x1x4x4xf32> to vector<4x4xf32>
    %c8_142 = arith.constant 8 : index
    %c16_143 = arith.constant 16 : index
    %56 = vector.load %arg8[%c8_142, %c16_143] : memref<16x64xf32, #tpu.memory_space<vmem>>, vector<4x4xf32>
    tpu.vector_store %arg8[%c8_142, %c16_143], %55 {strides = array<i32>} : memref<16x64xf32, #tpu.memory_space<vmem>>, vector<4x4xf32>,
    %c0_144 = arith.constant 0 : index
    %c1_145 = arith.constant 1 : index
    %c3_146 = arith.constant 3 : index
    %c0_147 = arith.constant 0 : index
    %c0_148 = arith.constant 0 : index
    %c0_149 = arith.constant 0 : index
    %57 = vector.load %arg2[%c0_144, %c1_145, %c3_146, %c0_147, %c0_148, %c0_149] : memref<1x4x4x4x4x4xf32, #tpu.memory_space<vmem>>, vector<1x1x1x1x4x4xf32>
    %58 = vector.shape_cast %57 : vector<1x1x1x1x4x4xf32> to vector<4x4xf32>
    %c12_150 = arith.constant 12 : index
    %c16_151 = arith.constant 16 : index
    %59 = vector.load %arg8[%c12_150, %c16_151] : memref<16x64xf32, #tpu.memory_space<vmem>>, vector<4x4xf32>
    tpu.vector_store %arg8[%c12_150, %c16_151], %58 {strides = array<i32>} : memref<16x64xf32, #tpu.memory_space<vmem>>, vector<4x4xf32>,
    %c0_152 = arith.constant 0 : index
    %c1_153 = arith.constant 1 : index
    %c0_154 = arith.constant 0 : index
    %c1_155 = arith.constant 1 : index
    %c0_156 = arith.constant 0 : index
    %c0_157 = arith.constant 0 : index
    %60 = vector.load %arg2[%c0_152, %c1_153, %c0_154, %c1_155, %c0_156, %c0_157] : memref<1x4x4x4x4x4xf32, #tpu.memory_space<vmem>>, vector<1x1x1x1x4x4xf32>
    %61 = vector.shape_cast %60 : vector<1x1x1x1x4x4xf32> to vector<4x4xf32>
    %c0_158 = arith.constant 0 : index
    %c20 = arith.constant 20 : index
    %62 = vector.load %arg8[%c0_158, %c20] : memref<16x64xf32, #tpu.memory_space<vmem>>, vector<4x4xf32>
    tpu.vector_store %arg8[%c0_158, %c20], %61 {strides = array<i32>} : memref<16x64xf32, #tpu.memory_space<vmem>>, vector<4x4xf32>,
    %c0_159 = arith.constant 0 : index
    %c1_160 = arith.constant 1 : index
    %c1_161 = arith.constant 1 : index
    %c1_162 = arith.constant 1 : index
    %c0_163 = arith.constant 0 : index
    %c0_164 = arith.constant 0 : index
    %63 = vector.load %arg2[%c0_159, %c1_160, %c1_161, %c1_162, %c0_163, %c0_164] : memref<1x4x4x4x4x4xf32, #tpu.memory_space<vmem>>, vector<1x1x1x1x4x4xf32>
    %64 = vector.shape_cast %63 : vector<1x1x1x1x4x4xf32> to vector<4x4xf32>
    %c4_165 = arith.constant 4 : index
    %c20_166 = arith.constant 20 : index
    %65 = vector.load %arg8[%c4_165, %c20_166] : memref<16x64xf32, #tpu.memory_space<vmem>>, vector<4x4xf32>
    tpu.vector_store %arg8[%c4_165, %c20_166], %64 {strides = array<i32>} : memref<16x64xf32, #tpu.memory_space<vmem>>, vector<4x4xf32>,
    %c0_167 = arith.constant 0 : index
    %c1_168 = arith.constant 1 : index
    %c2_169 = arith.constant 2 : index
    %c1_170 = arith.constant 1 : index
    %c0_171 = arith.constant 0 : index
    %c0_172 = arith.constant 0 : index
    %66 = vector.load %arg2[%c0_167, %c1_168, %c2_169, %c1_170, %c0_171, %c0_172] : memref<1x4x4x4x4x4xf32, #tpu.memory_space<vmem>>, vector<1x1x1x1x4x4xf32>
    %67 = vector.shape_cast %66 : vector<1x1x1x1x4x4xf32> to vector<4x4xf32>
    %c8_173 = arith.constant 8 : index
    %c20_174 = arith.constant 20 : index
    %68 = vector.load %arg8[%c8_173, %c20_174] : memref<16x64xf32, #tpu.memory_space<vmem>>, vector<4x4xf32>
    tpu.vector_store %arg8[%c8_173, %c20_174], %67 {strides = array<i32>} : memref<16x64xf32, #tpu.memory_space<vmem>>, vector<4x4xf32>,
    %c0_175 = arith.constant 0 : index
    %c1_176 = arith.constant 1 : index
    %c3_177 = arith.constant 3 : index
    %c1_178 = arith.constant 1 : index
    %c0_179 = arith.constant 0 : index
    %c0_180 = arith.constant 0 : index
    %69 = vector.load %arg2[%c0_175, %c1_176, %c3_177, %c1_178, %c0_179, %c0_180] : memref<1x4x4x4x4x4xf32, #tpu.memory_space<vmem>>, vector<1x1x1x1x4x4xf32>
    %70 = vector.shape_cast %69 : vector<1x1x1x1x4x4xf32> to vector<4x4xf32>
    %c12_181 = arith.constant 12 : index
    %c20_182 = arith.constant 20 : index
    %71 = vector.load %arg8[%c12_181, %c20_182] : memref<16x64xf32, #tpu.memory_space<vmem>>, vector<4x4xf32>
    tpu.vector_store %arg8[%c12_181, %c20_182], %70 {strides = array<i32>} : memref<16x64xf32, #tpu.memory_space<vmem>>, vector<4x4xf32>,
    %c0_183 = arith.constant 0 : index
    %c1_184 = arith.constant 1 : index
    %c0_185 = arith.constant 0 : index
    %c2_186 = arith.constant 2 : index
    %c0_187 = arith.constant 0 : index
    %c0_188 = arith.constant 0 : index
    %72 = vector.load %arg2[%c0_183, %c1_184, %c0_185, %c2_186, %c0_187, %c0_188] : memref<1x4x4x4x4x4xf32, #tpu.memory_space<vmem>>, vector<1x1x1x1x4x4xf32>
    %73 = vector.shape_cast %72 : vector<1x1x1x1x4x4xf32> to vector<4x4xf32>
    %c0_189 = arith.constant 0 : index
    %c24 = arith.constant 24 : index
    %74 = vector.load %arg8[%c0_189, %c24] : memref<16x64xf32, #tpu.memory_space<vmem>>, vector<4x4xf32>
    tpu.vector_store %arg8[%c0_189, %c24], %73 {strides = array<i32>} : memref<16x64xf32, #tpu.memory_space<vmem>>, vector<4x4xf32>,
    %c0_190 = arith.constant 0 : index
    %c1_191 = arith.constant 1 : index
    %c1_192 = arith.constant 1 : index
    %c2_193 = arith.constant 2 : index
    %c0_194 = arith.constant 0 : index
    %c0_195 = arith.constant 0 : index
    %75 = vector.load %arg2[%c0_190, %c1_191, %c1_192, %c2_193, %c0_194, %c0_195] : memref<1x4x4x4x4x4xf32, #tpu.memory_space<vmem>>, vector<1x1x1x1x4x4xf32>
    %76 = vector.shape_cast %75 : vector<1x1x1x1x4x4xf32> to vector<4x4xf32>
    %c4_196 = arith.constant 4 : index
    %c24_197 = arith.constant 24 : index
    %77 = vector.load %arg8[%c4_196, %c24_197] : memref<16x64xf32, #tpu.memory_space<vmem>>, vector<4x4xf32>
    tpu.vector_store %arg8[%c4_196, %c24_197], %76 {strides = array<i32>} : memref<16x64xf32, #tpu.memory_space<vmem>>, vector<4x4xf32>,
    %c0_198 = arith.constant 0 : index
    %c1_199 = arith.constant 1 : index
    %c2_200 = arith.constant 2 : index
    %c2_201 = arith.constant 2 : index
    %c0_202 = arith.constant 0 : index
    %c0_203 = arith.constant 0 : index
    %78 = vector.load %arg2[%c0_198, %c1_199, %c2_200, %c2_201, %c0_202, %c0_203] : memref<1x4x4x4x4x4xf32, #tpu.memory_space<vmem>>, vector<1x1x1x1x4x4xf32>
    %79 = vector.shape_cast %78 : vector<1x1x1x1x4x4xf32> to vector<4x4xf32>
    %c8_204 = arith.constant 8 : index
    %c24_205 = arith.constant 24 : index
    %80 = vector.load %arg8[%c8_204, %c24_205] : memref<16x64xf32, #tpu.memory_space<vmem>>, vector<4x4xf32>
    tpu.vector_store %arg8[%c8_204, %c24_205], %79 {strides = array<i32>} : memref<16x64xf32, #tpu.memory_space<vmem>>, vector<4x4xf32>,
    %c0_206 = arith.constant 0 : index
    %c1_207 = arith.constant 1 : index
    %c3_208 = arith.constant 3 : index
    %c2_209 = arith.constant 2 : index
    %c0_210 = arith.constant 0 : index
    %c0_211 = arith.constant 0 : index
    %81 = vector.load %arg2[%c0_206, %c1_207, %c3_208, %c2_209, %c0_210, %c0_211] : memref<1x4x4x4x4x4xf32, #tpu.memory_space<vmem>>, vector<1x1x1x1x4x4xf32>
    %82 = vector.shape_cast %81 : vector<1x1x1x1x4x4xf32> to vector<4x4xf32>
    %c12_212 = arith.constant 12 : index
    %c24_213 = arith.constant 24 : index
    %83 = vector.load %arg8[%c12_212, %c24_213] : memref<16x64xf32, #tpu.memory_space<vmem>>, vector<4x4xf32>
    tpu.vector_store %arg8[%c12_212, %c24_213], %82 {strides = array<i32>} : memref<16x64xf32, #tpu.memory_space<vmem>>, vector<4x4xf32>,
    %c0_214 = arith.constant 0 : index
    %c1_215 = arith.constant 1 : index
    %c0_216 = arith.constant 0 : index
    %c3_217 = arith.constant 3 : index
    %c0_218 = arith.constant 0 : index
    %c0_219 = arith.constant 0 : index
    %84 = vector.load %arg2[%c0_214, %c1_215, %c0_216, %c3_217, %c0_218, %c0_219] : memref<1x4x4x4x4x4xf32, #tpu.memory_space<vmem>>, vector<1x1x1x1x4x4xf32>
    %85 = vector.shape_cast %84 : vector<1x1x1x1x4x4xf32> to vector<4x4xf32>
    %c0_220 = arith.constant 0 : index
    %c28 = arith.constant 28 : index
    %86 = vector.load %arg8[%c0_220, %c28] : memref<16x64xf32, #tpu.memory_space<vmem>>, vector<4x4xf32>
    tpu.vector_store %arg8[%c0_220, %c28], %85 {strides = array<i32>} : memref<16x64xf32, #tpu.memory_space<vmem>>, vector<4x4xf32>,
    %c0_221 = arith.constant 0 : index
    %c1_222 = arith.constant 1 : index
    %c1_223 = arith.constant 1 : index
    %c3_224 = arith.constant 3 : index
    %c0_225 = arith.constant 0 : index
    %c0_226 = arith.constant 0 : index
    %87 = vector.load %arg2[%c0_221, %c1_222, %c1_223, %c3_224, %c0_225, %c0_226] : memref<1x4x4x4x4x4xf32, #tpu.memory_space<vmem>>, vector<1x1x1x1x4x4xf32>
    %88 = vector.shape_cast %87 : vector<1x1x1x1x4x4xf32> to vector<4x4xf32>
    %c4_227 = arith.constant 4 : index
    %c28_228 = arith.constant 28 : index
    %89 = vector.load %arg8[%c4_227, %c28_228] : memref<16x64xf32, #tpu.memory_space<vmem>>, vector<4x4xf32>
    tpu.vector_store %arg8[%c4_227, %c28_228], %88 {strides = array<i32>} : memref<16x64xf32, #tpu.memory_space<vmem>>, vector<4x4xf32>,
    %c0_229 = arith.constant 0 : index
    %c1_230 = arith.constant 1 : index
    %c2_231 = arith.constant 2 : index
    %c3_232 = arith.constant 3 : index
    %c0_233 = arith.constant 0 : index
    %c0_234 = arith.constant 0 : index
    %90 = vector.load %arg2[%c0_229, %c1_230, %c2_231, %c3_232, %c0_233, %c0_234] : memref<1x4x4x4x4x4xf32, #tpu.memory_space<vmem>>, vector<1x1x1x1x4x4xf32>
    %91 = vector.shape_cast %90 : vector<1x1x1x1x4x4xf32> to vector<4x4xf32>
    %c8_235 = arith.constant 8 : index
    %c28_236 = arith.constant 28 : index
    %92 = vector.load %arg8[%c8_235, %c28_236] : memref<16x64xf32, #tpu.memory_space<vmem>>, vector<4x4xf32>
    tpu.vector_store %arg8[%c8_235, %c28_236], %91 {strides = array<i32>} : memref<16x64xf32, #tpu.memory_space<vmem>>, vector<4x4xf32>,
    %c0_237 = arith.constant 0 : index
    %c1_238 = arith.constant 1 : index
    %c3_239 = arith.constant 3 : index
    %c3_240 = arith.constant 3 : index
    %c0_241 = arith.constant 0 : index
    %c0_242 = arith.constant 0 : index
    %93 = vector.load %arg2[%c0_237, %c1_238, %c3_239, %c3_240, %c0_241, %c0_242] : memref<1x4x4x4x4x4xf32, #tpu.memory_space<vmem>>, vector<1x1x1x1x4x4xf32>
    %94 = vector.shape_cast %93 : vector<1x1x1x1x4x4xf32> to vector<4x4xf32>
    %c12_243 = arith.constant 12 : index
    %c28_244 = arith.constant 28 : index
    %95 = vector.load %arg8[%c12_243, %c28_244] : memref<16x64xf32, #tpu.memory_space<vmem>>, vector<4x4xf32>
    tpu.vector_store %arg8[%c12_243, %c28_244], %94 {strides = array<i32>} : memref<16x64xf32, #tpu.memory_space<vmem>>, vector<4x4xf32>,
    %c0_245 = arith.constant 0 : index
    %c2_246 = arith.constant 2 : index
    %c0_247 = arith.constant 0 : index
    %c0_248 = arith.constant 0 : index
    %c0_249 = arith.constant 0 : index
    %c0_250 = arith.constant 0 : index
    %96 = vector.load %arg2[%c0_245, %c2_246, %c0_247, %c0_248, %c0_249, %c0_250] : memref<1x4x4x4x4x4xf32, #tpu.memory_space<vmem>>, vector<1x1x1x1x4x4xf32>
    %97 = vector.shape_cast %96 : vector<1x1x1x1x4x4xf32> to vector<4x4xf32>
    %c0_251 = arith.constant 0 : index
    %c32 = arith.constant 32 : index
    %98 = vector.load %arg8[%c0_251, %c32] : memref<16x64xf32, #tpu.memory_space<vmem>>, vector<4x4xf32>
    tpu.vector_store %arg8[%c0_251, %c32], %97 {strides = array<i32>} : memref<16x64xf32, #tpu.memory_space<vmem>>, vector<4x4xf32>,
    %c0_252 = arith.constant 0 : index
    %c2_253 = arith.constant 2 : index
    %c1_254 = arith.constant 1 : index
    %c0_255 = arith.constant 0 : index
    %c0_256 = arith.constant 0 : index
    %c0_257 = arith.constant 0 : index
    %99 = vector.load %arg2[%c0_252, %c2_253, %c1_254, %c0_255, %c0_256, %c0_257] : memref<1x4x4x4x4x4xf32, #tpu.memory_space<vmem>>, vector<1x1x1x1x4x4xf32>
    %100 = vector.shape_cast %99 : vector<1x1x1x1x4x4xf32> to vector<4x4xf32>
    %c4_258 = arith.constant 4 : index
    %c32_259 = arith.constant 32 : index
    %101 = vector.load %arg8[%c4_258, %c32_259] : memref<16x64xf32, #tpu.memory_space<vmem>>, vector<4x4xf32>
    tpu.vector_store %arg8[%c4_258, %c32_259], %100 {strides = array<i32>} : memref<16x64xf32, #tpu.memory_space<vmem>>, vector<4x4xf32>,
    %c0_260 = arith.constant 0 : index
    %c2_261 = arith.constant 2 : index
    %c2_262 = arith.constant 2 : index
    %c0_263 = arith.constant 0 : index
    %c0_264 = arith.constant 0 : index
    %c0_265 = arith.constant 0 : index
    %102 = vector.load %arg2[%c0_260, %c2_261, %c2_262, %c0_263, %c0_264, %c0_265] : memref<1x4x4x4x4x4xf32, #tpu.memory_space<vmem>>, vector<1x1x1x1x4x4xf32>
    %103 = vector.shape_cast %102 : vector<1x1x1x1x4x4xf32> to vector<4x4xf32>
    %c8_266 = arith.constant 8 : index
    %c32_267 = arith.constant 32 : index
    %104 = vector.load %arg8[%c8_266, %c32_267] : memref<16x64xf32, #tpu.memory_space<vmem>>, vector<4x4xf32>
    tpu.vector_store %arg8[%c8_266, %c32_267], %103 {strides = array<i32>} : memref<16x64xf32, #tpu.memory_space<vmem>>, vector<4x4xf32>,
    %c0_268 = arith.constant 0 : index
    %c2_269 = arith.constant 2 : index
    %c3_270 = arith.constant 3 : index
    %c0_271 = arith.constant 0 : index
    %c0_272 = arith.constant 0 : index
    %c0_273 = arith.constant 0 : index
    %105 = vector.load %arg2[%c0_268, %c2_269, %c3_270, %c0_271, %c0_272, %c0_273] : memref<1x4x4x4x4x4xf32, #tpu.memory_space<vmem>>, vector<1x1x1x1x4x4xf32>
    %106 = vector.shape_cast %105 : vector<1x1x1x1x4x4xf32> to vector<4x4xf32>
    %c12_274 = arith.constant 12 : index
    %c32_275 = arith.constant 32 : index
    %107 = vector.load %arg8[%c12_274, %c32_275] : memref<16x64xf32, #tpu.memory_space<vmem>>, vector<4x4xf32>
    tpu.vector_store %arg8[%c12_274, %c32_275], %106 {strides = array<i32>} : memref<16x64xf32, #tpu.memory_space<vmem>>, vector<4x4xf32>,
    %c0_276 = arith.constant 0 : index
    %c2_277 = arith.constant 2 : index
    %c0_278 = arith.constant 0 : index
    %c1_279 = arith.constant 1 : index
    %c0_280 = arith.constant 0 : index
    %c0_281 = arith.constant 0 : index
    %108 = vector.load %arg2[%c0_276, %c2_277, %c0_278, %c1_279, %c0_280, %c0_281] : memref<1x4x4x4x4x4xf32, #tpu.memory_space<vmem>>, vector<1x1x1x1x4x4xf32>
    %109 = vector.shape_cast %108 : vector<1x1x1x1x4x4xf32> to vector<4x4xf32>
    %c0_282 = arith.constant 0 : index
    %c36 = arith.constant 36 : index
    %110 = vector.load %arg8[%c0_282, %c36] : memref<16x64xf32, #tpu.memory_space<vmem>>, vector<4x4xf32>
    tpu.vector_store %arg8[%c0_282, %c36], %109 {strides = array<i32>} : memref<16x64xf32, #tpu.memory_space<vmem>>, vector<4x4xf32>,
    %c0_283 = arith.constant 0 : index
    %c2_284 = arith.constant 2 : index
    %c1_285 = arith.constant 1 : index
    %c1_286 = arith.constant 1 : index
    %c0_287 = arith.constant 0 : index
    %c0_288 = arith.constant 0 : index
    %111 = vector.load %arg2[%c0_283, %c2_284, %c1_285, %c1_286, %c0_287, %c0_288] : memref<1x4x4x4x4x4xf32, #tpu.memory_space<vmem>>, vector<1x1x1x1x4x4xf32>
    %112 = vector.shape_cast %111 : vector<1x1x1x1x4x4xf32> to vector<4x4xf32>
    %c4_289 = arith.constant 4 : index
    %c36_290 = arith.constant 36 : index
    %113 = vector.load %arg8[%c4_289, %c36_290] : memref<16x64xf32, #tpu.memory_space<vmem>>, vector<4x4xf32>
    tpu.vector_store %arg8[%c4_289, %c36_290], %112 {strides = array<i32>} : memref<16x64xf32, #tpu.memory_space<vmem>>, vector<4x4xf32>,
    %c0_291 = arith.constant 0 : index
    %c2_292 = arith.constant 2 : index
    %c2_293 = arith.constant 2 : index
    %c1_294 = arith.constant 1 : index
    %c0_295 = arith.constant 0 : index
    %c0_296 = arith.constant 0 : index
    %114 = vector.load %arg2[%c0_291, %c2_292, %c2_293, %c1_294, %c0_295, %c0_296] : memref<1x4x4x4x4x4xf32, #tpu.memory_space<vmem>>, vector<1x1x1x1x4x4xf32>
    %115 = vector.shape_cast %114 : vector<1x1x1x1x4x4xf32> to vector<4x4xf32>
    %c8_297 = arith.constant 8 : index
    %c36_298 = arith.constant 36 : index
    %116 = vector.load %arg8[%c8_297, %c36_298] : memref<16x64xf32, #tpu.memory_space<vmem>>, vector<4x4xf32>
    tpu.vector_store %arg8[%c8_297, %c36_298], %115 {strides = array<i32>} : memref<16x64xf32, #tpu.memory_space<vmem>>, vector<4x4xf32>,
    %c0_299 = arith.constant 0 : index
    %c2_300 = arith.constant 2 : index
    %c3_301 = arith.constant 3 : index
    %c1_302 = arith.constant 1 : index
    %c0_303 = arith.constant 0 : index
    %c0_304 = arith.constant 0 : index
    %117 = vector.load %arg2[%c0_299, %c2_300, %c3_301, %c1_302, %c0_303, %c0_304] : memref<1x4x4x4x4x4xf32, #tpu.memory_space<vmem>>, vector<1x1x1x1x4x4xf32>
    %118 = vector.shape_cast %117 : vector<1x1x1x1x4x4xf32> to vector<4x4xf32>
    %c12_305 = arith.constant 12 : index
    %c36_306 = arith.constant 36 : index
    %119 = vector.load %arg8[%c12_305, %c36_306] : memref<16x64xf32, #tpu.memory_space<vmem>>, vector<4x4xf32>
    tpu.vector_store %arg8[%c12_305, %c36_306], %118 {strides = array<i32>} : memref<16x64xf32, #tpu.memory_space<vmem>>, vector<4x4xf32>,
    %c0_307 = arith.constant 0 : index
    %c2_308 = arith.constant 2 : index
    %c0_309 = arith.constant 0 : index
    %c2_310 = arith.constant 2 : index
    %c0_311 = arith.constant 0 : index
    %c0_312 = arith.constant 0 : index
    %120 = vector.load %arg2[%c0_307, %c2_308, %c0_309, %c2_310, %c0_311, %c0_312] : memref<1x4x4x4x4x4xf32, #tpu.memory_space<vmem>>, vector<1x1x1x1x4x4xf32>
    %121 = vector.shape_cast %120 : vector<1x1x1x1x4x4xf32> to vector<4x4xf32>
    %c0_313 = arith.constant 0 : index
    %c40 = arith.constant 40 : index
    %122 = vector.load %arg8[%c0_313, %c40] : memref<16x64xf32, #tpu.memory_space<vmem>>, vector<4x4xf32>
    tpu.vector_store %arg8[%c0_313, %c40], %121 {strides = array<i32>} : memref<16x64xf32, #tpu.memory_space<vmem>>, vector<4x4xf32>,
    %c0_314 = arith.constant 0 : index
    %c2_315 = arith.constant 2 : index
    %c1_316 = arith.constant 1 : index
    %c2_317 = arith.constant 2 : index
    %c0_318 = arith.constant 0 : index
    %c0_319 = arith.constant 0 : index
    %123 = vector.load %arg2[%c0_314, %c2_315, %c1_316, %c2_317, %c0_318, %c0_319] : memref<1x4x4x4x4x4xf32, #tpu.memory_space<vmem>>, vector<1x1x1x1x4x4xf32>
    %124 = vector.shape_cast %123 : vector<1x1x1x1x4x4xf32> to vector<4x4xf32>
    %c4_320 = arith.constant 4 : index
    %c40_321 = arith.constant 40 : index
    %125 = vector.load %arg8[%c4_320, %c40_321] : memref<16x64xf32, #tpu.memory_space<vmem>>, vector<4x4xf32>
    tpu.vector_store %arg8[%c4_320, %c40_321], %124 {strides = array<i32>} : memref<16x64xf32, #tpu.memory_space<vmem>>, vector<4x4xf32>,
    %c0_322 = arith.constant 0 : index
    %c2_323 = arith.constant 2 : index
    %c2_324 = arith.constant 2 : index
    %c2_325 = arith.constant 2 : index
    %c0_326 = arith.constant 0 : index
    %c0_327 = arith.constant 0 : index
    %126 = vector.load %arg2[%c0_322, %c2_323, %c2_324, %c2_325, %c0_326, %c0_327] : memref<1x4x4x4x4x4xf32, #tpu.memory_space<vmem>>, vector<1x1x1x1x4x4xf32>
    %127 = vector.shape_cast %126 : vector<1x1x1x1x4x4xf32> to vector<4x4xf32>
    %c8_328 = arith.constant 8 : index
    %c40_329 = arith.constant 40 : index
    %128 = vector.load %arg8[%c8_328, %c40_329] : memref<16x64xf32, #tpu.memory_space<vmem>>, vector<4x4xf32>
    tpu.vector_store %arg8[%c8_328, %c40_329], %127 {strides = array<i32>} : memref<16x64xf32, #tpu.memory_space<vmem>>, vector<4x4xf32>,
    %c0_330 = arith.constant 0 : index
    %c2_331 = arith.constant 2 : index
    %c3_332 = arith.constant 3 : index
    %c2_333 = arith.constant 2 : index
    %c0_334 = arith.constant 0 : index
    %c0_335 = arith.constant 0 : index
    %129 = vector.load %arg2[%c0_330, %c2_331, %c3_332, %c2_333, %c0_334, %c0_335] : memref<1x4x4x4x4x4xf32, #tpu.memory_space<vmem>>, vector<1x1x1x1x4x4xf32>
    %130 = vector.shape_cast %129 : vector<1x1x1x1x4x4xf32> to vector<4x4xf32>
    %c12_336 = arith.constant 12 : index
    %c40_337 = arith.constant 40 : index
    %131 = vector.load %arg8[%c12_336, %c40_337] : memref<16x64xf32, #tpu.memory_space<vmem>>, vector<4x4xf32>
    tpu.vector_store %arg8[%c12_336, %c40_337], %130 {strides = array<i32>} : memref<16x64xf32, #tpu.memory_space<vmem>>, vector<4x4xf32>,
    %c0_338 = arith.constant 0 : index
    %c2_339 = arith.constant 2 : index
    %c0_340 = arith.constant 0 : index
    %c3_341 = arith.constant 3 : index
    %c0_342 = arith.constant 0 : index
    %c0_343 = arith.constant 0 : index
    %132 = vector.load %arg2[%c0_338, %c2_339, %c0_340, %c3_341, %c0_342, %c0_343] : memref<1x4x4x4x4x4xf32, #tpu.memory_space<vmem>>, vector<1x1x1x1x4x4xf32>
    %133 = vector.shape_cast %132 : vector<1x1x1x1x4x4xf32> to vector<4x4xf32>
    %c0_344 = arith.constant 0 : index
    %c44 = arith.constant 44 : index
    %134 = vector.load %arg8[%c0_344, %c44] : memref<16x64xf32, #tpu.memory_space<vmem>>, vector<4x4xf32>
    tpu.vector_store %arg8[%c0_344, %c44], %133 {strides = array<i32>} : memref<16x64xf32, #tpu.memory_space<vmem>>, vector<4x4xf32>,
    %c0_345 = arith.constant 0 : index
    %c2_346 = arith.constant 2 : index
    %c1_347 = arith.constant 1 : index
    %c3_348 = arith.constant 3 : index
    %c0_349 = arith.constant 0 : index
    %c0_350 = arith.constant 0 : index
    %135 = vector.load %arg2[%c0_345, %c2_346, %c1_347, %c3_348, %c0_349, %c0_350] : memref<1x4x4x4x4x4xf32, #tpu.memory_space<vmem>>, vector<1x1x1x1x4x4xf32>
    %136 = vector.shape_cast %135 : vector<1x1x1x1x4x4xf32> to vector<4x4xf32>
    %c4_351 = arith.constant 4 : index
    %c44_352 = arith.constant 44 : index
    %137 = vector.load %arg8[%c4_351, %c44_352] : memref<16x64xf32, #tpu.memory_space<vmem>>, vector<4x4xf32>
    tpu.vector_store %arg8[%c4_351, %c44_352], %136 {strides = array<i32>} : memref<16x64xf32, #tpu.memory_space<vmem>>, vector<4x4xf32>,
    %c0_353 = arith.constant 0 : index
    %c2_354 = arith.constant 2 : index
    %c2_355 = arith.constant 2 : index
    %c3_356 = arith.constant 3 : index
    %c0_357 = arith.constant 0 : index
    %c0_358 = arith.constant 0 : index
    %138 = vector.load %arg2[%c0_353, %c2_354, %c2_355, %c3_356, %c0_357, %c0_358] : memref<1x4x4x4x4x4xf32, #tpu.memory_space<vmem>>, vector<1x1x1x1x4x4xf32>
    %139 = vector.shape_cast %138 : vector<1x1x1x1x4x4xf32> to vector<4x4xf32>
    %c8_359 = arith.constant 8 : index
    %c44_360 = arith.constant 44 : index
    %140 = vector.load %arg8[%c8_359, %c44_360] : memref<16x64xf32, #tpu.memory_space<vmem>>, vector<4x4xf32>
    tpu.vector_store %arg8[%c8_359, %c44_360], %139 {strides = array<i32>} : memref<16x64xf32, #tpu.memory_space<vmem>>, vector<4x4xf32>,
    %c0_361 = arith.constant 0 : index
    %c2_362 = arith.constant 2 : index
    %c3_363 = arith.constant 3 : index
    %c3_364 = arith.constant 3 : index
    %c0_365 = arith.constant 0 : index
    %c0_366 = arith.constant 0 : index
    %141 = vector.load %arg2[%c0_361, %c2_362, %c3_363, %c3_364, %c0_365, %c0_366] : memref<1x4x4x4x4x4xf32, #tpu.memory_space<vmem>>, vector<1x1x1x1x4x4xf32>
    %142 = vector.shape_cast %141 : vector<1x1x1x1x4x4xf32> to vector<4x4xf32>
    %c12_367 = arith.constant 12 : index
    %c44_368 = arith.constant 44 : index
    %143 = vector.load %arg8[%c12_367, %c44_368] : memref<16x64xf32, #tpu.memory_space<vmem>>, vector<4x4xf32>
    tpu.vector_store %arg8[%c12_367, %c44_368], %142 {strides = array<i32>} : memref<16x64xf32, #tpu.memory_space<vmem>>, vector<4x4xf32>,
    %c0_369 = arith.constant 0 : index
    %c3_370 = arith.constant 3 : index
    %c0_371 = arith.constant 0 : index
    %c0_372 = arith.constant 0 : index
    %c0_373 = arith.constant 0 : index
    %c0_374 = arith.constant 0 : index
    %144 = vector.load %arg2[%c0_369, %c3_370, %c0_371, %c0_372, %c0_373, %c0_374] : memref<1x4x4x4x4x4xf32, #tpu.memory_space<vmem>>, vector<1x1x1x1x4x4xf32>
    %145 = vector.shape_cast %144 : vector<1x1x1x1x4x4xf32> to vector<4x4xf32>
    %c0_375 = arith.constant 0 : index
    %c48 = arith.constant 48 : index
    %146 = vector.load %arg8[%c0_375, %c48] : memref<16x64xf32, #tpu.memory_space<vmem>>, vector<4x4xf32>
    tpu.vector_store %arg8[%c0_375, %c48], %145 {strides = array<i32>} : memref<16x64xf32, #tpu.memory_space<vmem>>, vector<4x4xf32>,
    %c0_376 = arith.constant 0 : index
    %c3_377 = arith.constant 3 : index
    %c1_378 = arith.constant 1 : index
    %c0_379 = arith.constant 0 : index
    %c0_380 = arith.constant 0 : index
    %c0_381 = arith.constant 0 : index
    %147 = vector.load %arg2[%c0_376, %c3_377, %c1_378, %c0_379, %c0_380, %c0_381] : memref<1x4x4x4x4x4xf32, #tpu.memory_space<vmem>>, vector<1x1x1x1x4x4xf32>
    %148 = vector.shape_cast %147 : vector<1x1x1x1x4x4xf32> to vector<4x4xf32>
    %c4_382 = arith.constant 4 : index
    %c48_383 = arith.constant 48 : index
    %149 = vector.load %arg8[%c4_382, %c48_383] : memref<16x64xf32, #tpu.memory_space<vmem>>, vector<4x4xf32>
    tpu.vector_store %arg8[%c4_382, %c48_383], %148 {strides = array<i32>} : memref<16x64xf32, #tpu.memory_space<vmem>>, vector<4x4xf32>,
    %c0_384 = arith.constant 0 : index
    %c3_385 = arith.constant 3 : index
    %c2_386 = arith.constant 2 : index
    %c0_387 = arith.constant 0 : index
    %c0_388 = arith.constant 0 : index
    %c0_389 = arith.constant 0 : index
    %150 = vector.load %arg2[%c0_384, %c3_385, %c2_386, %c0_387, %c0_388, %c0_389] : memref<1x4x4x4x4x4xf32, #tpu.memory_space<vmem>>, vector<1x1x1x1x4x4xf32>
    %151 = vector.shape_cast %150 : vector<1x1x1x1x4x4xf32> to vector<4x4xf32>
    %c8_390 = arith.constant 8 : index
    %c48_391 = arith.constant 48 : index
    %152 = vector.load %arg8[%c8_390, %c48_391] : memref<16x64xf32, #tpu.memory_space<vmem>>, vector<4x4xf32>
    tpu.vector_store %arg8[%c8_390, %c48_391], %151 {strides = array<i32>} : memref<16x64xf32, #tpu.memory_space<vmem>>, vector<4x4xf32>,
    %c0_392 = arith.constant 0 : index
    %c3_393 = arith.constant 3 : index
    %c3_394 = arith.constant 3 : index
    %c0_395 = arith.constant 0 : index
    %c0_396 = arith.constant 0 : index
    %c0_397 = arith.constant 0 : index
    %153 = vector.load %arg2[%c0_392, %c3_393, %c3_394, %c0_395, %c0_396, %c0_397] : memref<1x4x4x4x4x4xf32, #tpu.memory_space<vmem>>, vector<1x1x1x1x4x4xf32>
    %154 = vector.shape_cast %153 : vector<1x1x1x1x4x4xf32> to vector<4x4xf32>
    %c12_398 = arith.constant 12 : index
    %c48_399 = arith.constant 48 : index
    %155 = vector.load %arg8[%c12_398, %c48_399] : memref<16x64xf32, #tpu.memory_space<vmem>>, vector<4x4xf32>
    tpu.vector_store %arg8[%c12_398, %c48_399], %154 {strides = array<i32>} : memref<16x64xf32, #tpu.memory_space<vmem>>, vector<4x4xf32>,
    %c0_400 = arith.constant 0 : index
    %c3_401 = arith.constant 3 : index
    %c0_402 = arith.constant 0 : index
    %c1_403 = arith.constant 1 : index
    %c0_404 = arith.constant 0 : index
    %c0_405 = arith.constant 0 : index
    %156 = vector.load %arg2[%c0_400, %c3_401, %c0_402, %c1_403, %c0_404, %c0_405] : memref<1x4x4x4x4x4xf32, #tpu.memory_space<vmem>>, vector<1x1x1x1x4x4xf32>
    %157 = vector.shape_cast %156 : vector<1x1x1x1x4x4xf32> to vector<4x4xf32>
    %c0_406 = arith.constant 0 : index
    %c52 = arith.constant 52 : index
    %158 = vector.load %arg8[%c0_406, %c52] : memref<16x64xf32, #tpu.memory_space<vmem>>, vector<4x4xf32>
    tpu.vector_store %arg8[%c0_406, %c52], %157 {strides = array<i32>} : memref<16x64xf32, #tpu.memory_space<vmem>>, vector<4x4xf32>,
    %c0_407 = arith.constant 0 : index
    %c3_408 = arith.constant 3 : index
    %c1_409 = arith.constant 1 : index
    %c1_410 = arith.constant 1 : index
    %c0_411 = arith.constant 0 : index
    %c0_412 = arith.constant 0 : index
    %159 = vector.load %arg2[%c0_407, %c3_408, %c1_409, %c1_410, %c0_411, %c0_412] : memref<1x4x4x4x4x4xf32, #tpu.memory_space<vmem>>, vector<1x1x1x1x4x4xf32>
    %160 = vector.shape_cast %159 : vector<1x1x1x1x4x4xf32> to vector<4x4xf32>
    %c4_413 = arith.constant 4 : index
    %c52_414 = arith.constant 52 : index
    %161 = vector.load %arg8[%c4_413, %c52_414] : memref<16x64xf32, #tpu.memory_space<vmem>>, vector<4x4xf32>
    tpu.vector_store %arg8[%c4_413, %c52_414], %160 {strides = array<i32>} : memref<16x64xf32, #tpu.memory_space<vmem>>, vector<4x4xf32>,
    %c0_415 = arith.constant 0 : index
    %c3_416 = arith.constant 3 : index
    %c2_417 = arith.constant 2 : index
    %c1_418 = arith.constant 1 : index
    %c0_419 = arith.constant 0 : index
    %c0_420 = arith.constant 0 : index
    %162 = vector.load %arg2[%c0_415, %c3_416, %c2_417, %c1_418, %c0_419, %c0_420] : memref<1x4x4x4x4x4xf32, #tpu.memory_space<vmem>>, vector<1x1x1x1x4x4xf32>
    %163 = vector.shape_cast %162 : vector<1x1x1x1x4x4xf32> to vector<4x4xf32>
    %c8_421 = arith.constant 8 : index
    %c52_422 = arith.constant 52 : index
    %164 = vector.load %arg8[%c8_421, %c52_422] : memref<16x64xf32, #tpu.memory_space<vmem>>, vector<4x4xf32>
    tpu.vector_store %arg8[%c8_421, %c52_422], %163 {strides = array<i32>} : memref<16x64xf32, #tpu.memory_space<vmem>>, vector<4x4xf32>,
    %c0_423 = arith.constant 0 : index
    %c3_424 = arith.constant 3 : index
    %c3_425 = arith.constant 3 : index
    %c1_426 = arith.constant 1 : index
    %c0_427 = arith.constant 0 : index
    %c0_428 = arith.constant 0 : index
    %165 = vector.load %arg2[%c0_423, %c3_424, %c3_425, %c1_426, %c0_427, %c0_428] : memref<1x4x4x4x4x4xf32, #tpu.memory_space<vmem>>, vector<1x1x1x1x4x4xf32>
    %166 = vector.shape_cast %165 : vector<1x1x1x1x4x4xf32> to vector<4x4xf32>
    %c12_429 = arith.constant 12 : index
    %c52_430 = arith.constant 52 : index
    %167 = vector.load %arg8[%c12_429, %c52_430] : memref<16x64xf32, #tpu.memory_space<vmem>>, vector<4x4xf32>
    tpu.vector_store %arg8[%c12_429, %c52_430], %166 {strides = array<i32>} : memref<16x64xf32, #tpu.memory_space<vmem>>, vector<4x4xf32>,
    %c0_431 = arith.constant 0 : index
    %c3_432 = arith.constant 3 : index
    %c0_433 = arith.constant 0 : index
    %c2_434 = arith.constant 2 : index
    %c0_435 = arith.constant 0 : index
    %c0_436 = arith.constant 0 : index
    %168 = vector.load %arg2[%c0_431, %c3_432, %c0_433, %c2_434, %c0_435, %c0_436] : memref<1x4x4x4x4x4xf32, #tpu.memory_space<vmem>>, vector<1x1x1x1x4x4xf32>
    %169 = vector.shape_cast %168 : vector<1x1x1x1x4x4xf32> to vector<4x4xf32>
    %c0_437 = arith.constant 0 : index
    %c56 = arith.constant 56 : index
    %170 = vector.load %arg8[%c0_437, %c56] : memref<16x64xf32, #tpu.memory_space<vmem>>, vector<4x4xf32>
    tpu.vector_store %arg8[%c0_437, %c56], %169 {strides = array<i32>} : memref<16x64xf32, #tpu.memory_space<vmem>>, vector<4x4xf32>,
    %c0_438 = arith.constant 0 : index
    %c3_439 = arith.constant 3 : index
    %c1_440 = arith.constant 1 : index
    %c2_441 = arith.constant 2 : index
    %c0_442 = arith.constant 0 : index
    %c0_443 = arith.constant 0 : index
    %171 = vector.load %arg2[%c0_438, %c3_439, %c1_440, %c2_441, %c0_442, %c0_443] : memref<1x4x4x4x4x4xf32, #tpu.memory_space<vmem>>, vector<1x1x1x1x4x4xf32>
    %172 = vector.shape_cast %171 : vector<1x1x1x1x4x4xf32> to vector<4x4xf32>
    %c4_444 = arith.constant 4 : index
    %c56_445 = arith.constant 56 : index
    %173 = vector.load %arg8[%c4_444, %c56_445] : memref<16x64xf32, #tpu.memory_space<vmem>>, vector<4x4xf32>
    tpu.vector_store %arg8[%c4_444, %c56_445], %172 {strides = array<i32>} : memref<16x64xf32, #tpu.memory_space<vmem>>, vector<4x4xf32>,
    %c0_446 = arith.constant 0 : index
    %c3_447 = arith.constant 3 : index
    %c2_448 = arith.constant 2 : index
    %c2_449 = arith.constant 2 : index
    %c0_450 = arith.constant 0 : index
    %c0_451 = arith.constant 0 : index
    %174 = vector.load %arg2[%c0_446, %c3_447, %c2_448, %c2_449, %c0_450, %c0_451] : memref<1x4x4x4x4x4xf32, #tpu.memory_space<vmem>>, vector<1x1x1x1x4x4xf32>
    %175 = vector.shape_cast %174 : vector<1x1x1x1x4x4xf32> to vector<4x4xf32>
    %c8_452 = arith.constant 8 : index
    %c56_453 = arith.constant 56 : index
    %176 = vector.load %arg8[%c8_452, %c56_453] : memref<16x64xf32, #tpu.memory_space<vmem>>, vector<4x4xf32>
    tpu.vector_store %arg8[%c8_452, %c56_453], %175 {strides = array<i32>} : memref<16x64xf32, #tpu.memory_space<vmem>>, vector<4x4xf32>,
    %c0_454 = arith.constant 0 : index
    %c3_455 = arith.constant 3 : index
    %c3_456 = arith.constant 3 : index
    %c2_457 = arith.constant 2 : index
    %c0_458 = arith.constant 0 : index
    %c0_459 = arith.constant 0 : index
    %177 = vector.load %arg2[%c0_454, %c3_455, %c3_456, %c2_457, %c0_458, %c0_459] : memref<1x4x4x4x4x4xf32, #tpu.memory_space<vmem>>, vector<1x1x1x1x4x4xf32>
    %178 = vector.shape_cast %177 : vector<1x1x1x1x4x4xf32> to vector<4x4xf32>
    %c12_460 = arith.constant 12 : index
    %c56_461 = arith.constant 56 : index
    %179 = vector.load %arg8[%c12_460, %c56_461] : memref<16x64xf32, #tpu.memory_space<vmem>>, vector<4x4xf32>
    tpu.vector_store %arg8[%c12_460, %c56_461], %178 {strides = array<i32>} : memref<16x64xf32, #tpu.memory_space<vmem>>, vector<4x4xf32>,
    %c0_462 = arith.constant 0 : index
    %c3_463 = arith.constant 3 : index
    %c0_464 = arith.constant 0 : index
    %c3_465 = arith.constant 3 : index
    %c0_466 = arith.constant 0 : index
    %c0_467 = arith.constant 0 : index
    %180 = vector.load %arg2[%c0_462, %c3_463, %c0_464, %c3_465, %c0_466, %c0_467] : memref<1x4x4x4x4x4xf32, #tpu.memory_space<vmem>>, vector<1x1x1x1x4x4xf32>
    %181 = vector.shape_cast %180 : vector<1x1x1x1x4x4xf32> to vector<4x4xf32>
    %c0_468 = arith.constant 0 : index
    %c60 = arith.constant 60 : index
    %182 = vector.load %arg8[%c0_468, %c60] : memref<16x64xf32, #tpu.memory_space<vmem>>, vector<4x4xf32>
    tpu.vector_store %arg8[%c0_468, %c60], %181 {strides = array<i32>} : memref<16x64xf32, #tpu.memory_space<vmem>>, vector<4x4xf32>,
    %c0_469 = arith.constant 0 : index
    %c3_470 = arith.constant 3 : index
    %c1_471 = arith.constant 1 : index
    %c3_472 = arith.constant 3 : index
    %c0_473 = arith.constant 0 : index
    %c0_474 = arith.constant 0 : index
    %183 = vector.load %arg2[%c0_469, %c3_470, %c1_471, %c3_472, %c0_473, %c0_474] : memref<1x4x4x4x4x4xf32, #tpu.memory_space<vmem>>, vector<1x1x1x1x4x4xf32>
    %184 = vector.shape_cast %183 : vector<1x1x1x1x4x4xf32> to vector<4x4xf32>
    %c4_475 = arith.constant 4 : index
    %c60_476 = arith.constant 60 : index
    %185 = vector.load %arg8[%c4_475, %c60_476] : memref<16x64xf32, #tpu.memory_space<vmem>>, vector<4x4xf32>
    tpu.vector_store %arg8[%c4_475, %c60_476], %184 {strides = array<i32>} : memref<16x64xf32, #tpu.memory_space<vmem>>, vector<4x4xf32>,
    %c0_477 = arith.constant 0 : index
    %c3_478 = arith.constant 3 : index
    %c2_479 = arith.constant 2 : index
    %c3_480 = arith.constant 3 : index
    %c0_481 = arith.constant 0 : index
    %c0_482 = arith.constant 0 : index
    %186 = vector.load %arg2[%c0_477, %c3_478, %c2_479, %c3_480, %c0_481, %c0_482] : memref<1x4x4x4x4x4xf32, #tpu.memory_space<vmem>>, vector<1x1x1x1x4x4xf32>
    %187 = vector.shape_cast %186 : vector<1x1x1x1x4x4xf32> to vector<4x4xf32>
    %c8_483 = arith.constant 8 : index
    %c60_484 = arith.constant 60 : index
    %188 = vector.load %arg8[%c8_483, %c60_484] : memref<16x64xf32, #tpu.memory_space<vmem>>, vector<4x4xf32>
    tpu.vector_store %arg8[%c8_483, %c60_484], %187 {strides = array<i32>} : memref<16x64xf32, #tpu.memory_space<vmem>>, vector<4x4xf32>,
    %c0_485 = arith.constant 0 : index
    %c3_486 = arith.constant 3 : index
    %c3_487 = arith.constant 3 : index
    %c3_488 = arith.constant 3 : index
    %c0_489 = arith.constant 0 : index
    %c0_490 = arith.constant 0 : index
    %189 = vector.load %arg2[%c0_485, %c3_486, %c3_487, %c3_488, %c0_489, %c0_490] : memref<1x4x4x4x4x4xf32, #tpu.memory_space<vmem>>, vector<1x1x1x1x4x4xf32>
    %190 = vector.shape_cast %189 : vector<1x1x1x1x4x4xf32> to vector<4x4xf32>
    %c12_491 = arith.constant 12 : index
    %c60_492 = arith.constant 60 : index
    %191 = vector.load %arg8[%c12_491, %c60_492] : memref<16x64xf32, #tpu.memory_space<vmem>>, vector<4x4xf32>
    tpu.vector_store %arg8[%c12_491, %c60_492], %190 {strides = array<i32>} : memref<16x64xf32, #tpu.memory_space<vmem>>, vector<4x4xf32>,
    %c0_493 = arith.constant 0 : index
    %c0_494 = arith.constant 0 : index
    %192 = vector.load %arg8[%c0_493, %c0_494] : memref<16x64xf32, #tpu.memory_space<vmem>>, vector<16x64xf32>
    %c0_495 = arith.constant 0 : index
    %c0_496 = arith.constant 0 : index
    %193 = vector.load %arg3[%c0_495, %c0_496] : memref<64x128xf32, #tpu.memory_space<vmem>>, vector<64x128xf32>
    %cst = arith.constant dense<0.000000e+00> : vector<16x128xf32>
    %194 = tpu.matmul %192, %193, %cst {dimension_numbers = #tpu.dot_dimension_numbers<[1], [0], [0], [1], [0, 0, 1, 1], [], []>} : vector<16x64xf32>, vector<64x128xf32>, vector<16x128xf32> -> vector<16x128xf32>
    %c0_497 = arith.constant 0 : index
    %c0_498 = arith.constant 0 : index
    %195 = vector.load %arg4[%c0_497, %c0_498] : memref<1x128xf32, #tpu.memory_space<vmem>>, vector<1x128xf32>
    %196 = vector.broadcast %195 : vector<1x128xf32> to vector<16x128xf32>
    %197 = arith.addf %194, %196 : vector<16x128xf32>
    %cst_499 = arith.constant dense<0.000000e+00> : vector<16xf32>
    %198 = vector.multi_reduction <add>, %197, %cst_499 [1] : vector<16x128xf32> to vector<16xf32>
    %199 = vector.shape_cast %198 : vector<16xf32> to vector<16x1xf32>
    %cst_500 = arith.constant 3.125000e-02 : f32
    %200 = vector.broadcast %cst_500 : f32 to vector<16x1xf32>
    %201 = arith.mulf %199, %200 : vector<16x1xf32>
    %202 = arith.mulf %197, %197 : vector<16x128xf32>
    %cst_501 = arith.constant dense<0.000000e+00> : vector<16xf32>
    %203 = vector.multi_reduction <add>, %202, %cst_501 [1] : vector<16x128xf32> to vector<16xf32>
    %204 = vector.shape_cast %203 : vector<16xf32> to vector<16x1xf32>
    %cst_502 = arith.constant 3.125000e-02 : f32
    %205 = vector.broadcast %cst_502 : f32 to vector<16x1xf32>
    %206 = arith.mulf %204, %205 : vector<16x1xf32>
    %207 = arith.mulf %201, %201 : vector<16x1xf32>
    %208 = arith.subf %206, %207 : vector<16x1xf32>
    %cst_503 = arith.constant 0.000000e+00 : f32
    %209 = vector.broadcast %cst_503 : f32 to vector<16x1xf32>
    %210 = arith.maximumf %208, %209 : vector<16x1xf32>
    %cst_504 = arith.constant 9.99999974E-6 : f32
    %211 = vector.broadcast %cst_504 : f32 to vector<16x1xf32>
    %212 = arith.addf %210, %211 : vector<16x1xf32>
    %213 = math.rsqrt %212 : vector<16x1xf32>
    %214 = vector.broadcast %201 : vector<16x1xf32> to vector<16x128xf32>
    %215 = arith.subf %197, %214 : vector<16x128xf32>
    %216 = vector.broadcast %213 : vector<16x1xf32> to vector<16x128xf32>
    %217 = arith.mulf %215, %216 : vector<16x128xf32>
    %c0_505 = arith.constant 0 : index
    %c0_506 = arith.constant 0 : index
    %218 = vector.load %arg5[%c0_505, %c0_506] : memref<1x128xf32, #tpu.memory_space<vmem>>, vector<1x128xf32>
    %219 = vector.broadcast %218 : vector<1x128xf32> to vector<16x128xf32>
    %220 = arith.mulf %217, %219 : vector<16x128xf32>
    %c0_507 = arith.constant 0 : index
    %c0_508 = arith.constant 0 : index
    %221 = vector.load %arg6[%c0_507, %c0_508] : memref<1x128xf32, #tpu.memory_space<vmem>>, vector<1x128xf32>
    %222 = vector.broadcast %221 : vector<1x128xf32> to vector<16x128xf32>
    %223 = arith.addf %220, %222 : vector<16x128xf32>
    %c0_509 = arith.constant 0 : index
    %c0_510 = arith.constant 0 : index
    %c0_511 = arith.constant 0 : index
    %224 = vector.load %arg7[%c0_509, %c0_510, %c0_511] : memref<1x16x128xf32, #tpu.memory_space<vmem>>, vector<1x16x128xf32>
    %225 = vector.shape_cast %224 : vector<1x16x128xf32> to vector<16x128xf32>
    %226 = vector.shape_cast %223 : vector<16x128xf32> to vector<1x16x128xf32>
    tpu.vector_store %arg7[%c0_509, %c0_510, %c0_511], %226 {strides = array<i32>} : memref<1x16x128xf32, #tpu.memory_space<vmem>>, vector<1x16x128xf32>,
    return
  }
  func.func @transform_0(%arg0: i32, %arg1: i32) -> (i32, i32, i32, i32, i32, i32) {
    %c0_i32 = arith.constant 0 : i32
    %c0_i32_0 = arith.constant 0 : i32
    %c0_i32_1 = arith.constant 0 : i32
    %c0_i32_2 = arith.constant 0 : i32
    %c0_i32_3 = arith.constant 0 : i32
    return %arg0, %c0_i32, %arg1, %c0_i32_0, %c0_i32_1, %c0_i32_2 : i32, i32, i32, i32, i32, i32
  }
  func.func @transform_1(%arg0: i32, %arg1: i32) -> (i32, i32) {
    %c0_i32 = arith.constant 0 : i32
    %c0_i32_0 = arith.constant 0 : i32
    %c0_i32_1 = arith.constant 0 : i32
    return %c0_i32, %c0_i32_0 : i32, i32
  }
  func.func @transform_2(%arg0: i32, %arg1: i32) -> (i32, i32) {
    %c0_i32 = arith.constant 0 : i32
    %c0_i32_0 = arith.constant 0 : i32
    %c0_i32_1 = arith.constant 0 : i32
    return %c0_i32, %c0_i32_0 : i32, i32
  }
  func.func @transform_3(%arg0: i32, %arg1: i32) -> (i32, i32) {
    %c0_i32 = arith.constant 0 : i32
    %c0_i32_0 = arith.constant 0 : i32
    %c0_i32_1 = arith.constant 0 : i32
    return %c0_i32, %c0_i32_0 : i32, i32
  }
  func.func @transform_4(%arg0: i32, %arg1: i32) -> (i32, i32) {
    %c0_i32 = arith.constant 0 : i32
    %c0_i32_0 = arith.constant 0 : i32
    %c0_i32_1 = arith.constant 0 : i32
    return %c0_i32, %c0_i32_0 : i32, i32
  }
  func.func @transform_5(%arg0: i32, %arg1: i32) -> (i32, i32, i32) {
    %c0_i32 = arith.constant 0 : i32
    %c0_i32_0 = arith.constant 0 : i32
    return %arg0, %arg1, %c0_i32 : i32, i32, i32
  }
}

module attributes {stable_mosaic.version = 11 : i64} {
  func.func @kernel(%arg0: i32, %arg1: i32, %arg2: memref<1x4x4x4x4x4xf32, #tpu.memory_space<vmem>>, %arg3: memref<64x128xf32, #tpu.memory_space<vmem>>, %arg4: memref<1x128xf32, #tpu.memory_space<vmem>>, %arg5: memref<1x128xf32, #tpu.memory_space<vmem>>, %arg6: memref<1x128xf32, #tpu.memory_space<vmem>>, %arg7: memref<1x16x128xf32, #tpu.memory_space<vmem>>, %arg8: memref<16x64xf32, #tpu.memory_space<vmem>>) attributes {dimension_semantics = [#tpu.dimension_semantics<parallel>, #tpu.dimension_semantics<parallel>], iteration_bounds = array<i64: 2, 1>, scalar_prefetch = 0 : i64, scratch_operands = 1 : i64, tpu.core_type = #tpu.core_type<tc>, window_params = [{transform_indices = @transform_0, window_bounds = array<i64: 1, 4, 4, 4, 4, 4>}, {pipeline_mode = #tpu.pipeline_mode<synchronous>, transform_indices = @transform_1, window_bounds = array<i64: 64, 128>}, {pipeline_mode = #tpu.pipeline_mode<synchronous>, transform_indices = @transform_2, window_bounds = array<i64: 1, 128>}, {pipeline_mode = #tpu.pipeline_mode<synchronous>, transform_indices = @transform_3, window_bounds = array<i64: 1, 128>}, {pipeline_mode = #tpu.pipeline_mode<synchronous>, transform_indices = @transform_4, window_bounds = array<i64: 1, 128>}, {transform_indices = @transform_5, window_bounds = array<i64: 1, 16, 128>}]} {
    %c0 = arith.constant 0 : index
    %c0_0 = arith.constant 0 : index
    %c0_1 = arith.constant 0 : index
    %c0_2 = arith.constant 0 : index
    %c0_3 = arith.constant 0 : index
    %c0_4 = arith.constant 0 : index
    %0 = vector.load %arg2[%c0, %c0_0, %c0_1, %c0_2, %c0_3, %c0_4] : memref<1x4x4x4x4x4xf32, #tpu.memory_space<vmem>>, vector<1x1x1x1x4x4xf32>
    %1 = vector.shape_cast %0 : vector<1x1x1x1x4x4xf32> to vector<4x4xf32>
    %c0_5 = arith.constant 0 : index
    %c0_6 = arith.constant 0 : index
    %2 = vector.load %arg8[%c0_5, %c0_6] : memref<16x64xf32, #tpu.memory_space<vmem>>, vector<4x4xf32>
    tpu.vector_store %arg8[%c0_5, %c0_6], %1 {strides = array<i32>} : memref<16x64xf32, #tpu.memory_space<vmem>>, vector<4x4xf32>,
    %c0_7 = arith.constant 0 : index
    %c0_8 = arith.constant 0 : index
    %c1 = arith.constant 1 : index
    %c0_9 = arith.constant 0 : index
    %c0_10 = arith.constant 0 : index
    %c0_11 = arith.constant 0 : index
    %3 = vector.load %arg2[%c0_7, %c0_8, %c1, %c0_9, %c0_10, %c0_11] : memref<1x4x4x4x4x4xf32, #tpu.memory_space<vmem>>, vector<1x1x1x1x4x4xf32>
    %4 = vector.shape_cast %3 : vector<1x1x1x1x4x4xf32> to vector<4x4xf32>
    %c4 = arith.constant 4 : index
    %c0_12 = arith.constant 0 : index
    %5 = vector.load %arg8[%c4, %c0_12] : memref<16x64xf32, #tpu.memory_space<vmem>>, vector<4x4xf32>
    tpu.vector_store %arg8[%c4, %c0_12], %4 {strides = array<i32>} : memref<16x64xf32, #tpu.memory_space<vmem>>, vector<4x4xf32>,
    %c0_13 = arith.constant 0 : index
    %c0_14 = arith.constant 0 : index
    %c2 = arith.constant 2 : index
    %c0_15 = arith.constant 0 : index
    %c0_16 = arith.constant 0 : index
    %c0_17 = arith.constant 0 : index
    %6 = vector.load %arg2[%c0_13, %c0_14, %c2, %c0_15, %c0_16, %c0_17] : memref<1x4x4x4x4x4xf32, #tpu.memory_space<vmem>>, vector<1x1x1x1x4x4xf32>
    %7 = vector.shape_cast %6 : vector<1x1x1x1x4x4xf32> to vector<4x4xf32>
    %c8 = arith.constant 8 : index
    %c0_18 = arith.constant 0 : index
    %8 = vector.load %arg8[%c8, %c0_18] : memref<16x64xf32, #tpu.memory_space<vmem>>, vector<4x4xf32>
    tpu.vector_store %arg8[%c8, %c0_18], %7 {strides = array<i32>} : memref<16x64xf32, #tpu.memory_space<vmem>>, vector<4x4xf32>,
    %c0_19 = arith.constant 0 : index
    %c0_20 = arith.constant 0 : index
    %c3 = arith.constant 3 : index
    %c0_21 = arith.constant 0 : index
    %c0_22 = arith.constant 0 : index
    %c0_23 = arith.constant 0 : index
    %9 = vector.load %arg2[%c0_19, %c0_20, %c3, %c0_21, %c0_22, %c0_23] : memref<1x4x4x4x4x4xf32, #tpu.memory_space<vmem>>, vector<1x1x1x1x4x4xf32>
    %10 = vector.shape_cast %9 : vector<1x1x1x1x4x4xf32> to vector<4x4xf32>
    %c12 = arith.constant 12 : index
    %c0_24 = arith.constant 0 : index
    %11 = vector.load %arg8[%c12, %c0_24] : memref<16x64xf32, #tpu.memory_space<vmem>>, vector<4x4xf32>
    tpu.vector_store %arg8[%c12, %c0_24], %10 {strides = array<i32>} : memref<16x64xf32, #tpu.memory_space<vmem>>, vector<4x4xf32>,
    %c0_25 = arith.constant 0 : index
    %c0_26 = arith.constant 0 : index
    %c0_27 = arith.constant 0 : index
    %c1_28 = arith.constant 1 : index
    %c0_29 = arith.constant 0 : index
    %c0_30 = arith.constant 0 : index
    %12 = vector.load %arg2[%c0_25, %c0_26, %c0_27, %c1_28, %c0_29, %c0_30] : memref<1x4x4x4x4x4xf32, #tpu.memory_space<vmem>>, vector<1x1x1x1x4x4xf32>
    %13 = vector.shape_cast %12 : vector<1x1x1x1x4x4xf32> to vector<4x4xf32>
    %c0_31 = arith.constant 0 : index
    %c4_32 = arith.constant 4 : index
    %14 = vector.load %arg8[%c0_31, %c4_32] : memref<16x64xf32, #tpu.memory_space<vmem>>, vector<4x4xf32>
    tpu.vector_store %arg8[%c0_31, %c4_32], %13 {strides = array<i32>} : memref<16x64xf32, #tpu.memory_space<vmem>>, vector<4x4xf32>,
    %c0_33 = arith.constant 0 : index
    %c0_34 = arith.constant 0 : index
    %c1_35 = arith.constant 1 : index
    %c1_36 = arith.constant 1 : index
    %c0_37 = arith.constant 0 : index
    %c0_38 = arith.constant 0 : index
    %15 = vector.load %arg2[%c0_33, %c0_34, %c1_35, %c1_36, %c0_37, %c0_38] : memref<1x4x4x4x4x4xf32, #tpu.memory_space<vmem>>, vector<1x1x1x1x4x4xf32>
    %16 = vector.shape_cast %15 : vector<1x1x1x1x4x4xf32> to vector<4x4xf32>
    %c4_39 = arith.constant 4 : index
    %c4_40 = arith.constant 4 : index
    %17 = vector.load %arg8[%c4_39, %c4_40] : memref<16x64xf32, #tpu.memory_space<vmem>>, vector<4x4xf32>
    tpu.vector_store %arg8[%c4_39, %c4_40], %16 {strides = array<i32>} : memref<16x64xf32, #tpu.memory_space<vmem>>, vector<4x4xf32>,
    %c0_41 = arith.constant 0 : index
    %c0_42 = arith.constant 0 : index
    %c2_43 = arith.constant 2 : index
    %c1_44 = arith.constant 1 : index
    %c0_45 = arith.constant 0 : index
    %c0_46 = arith.constant 0 : index
    %18 = vector.load %arg2[%c0_41, %c0_42, %c2_43, %c1_44, %c0_45, %c0_46] : memref<1x4x4x4x4x4xf32, #tpu.memory_space<vmem>>, vector<1x1x1x1x4x4xf32>
    %19 = vector.shape_cast %18 : vector<1x1x1x1x4x4xf32> to vector<4x4xf32>
    %c8_47 = arith.constant 8 : index
    %c4_48 = arith.constant 4 : index
    %20 = vector.load %arg8[%c8_47, %c4_48] : memref<16x64xf32, #tpu.memory_space<vmem>>, vector<4x4xf32>
    tpu.vector_store %arg8[%c8_47, %c4_48], %19 {strides = array<i32>} : memref<16x64xf32, #tpu.memory_space<vmem>>, vector<4x4xf32>,
    %c0_49 = arith.constant 0 : index
    %c0_50 = arith.constant 0 : index
    %c3_51 = arith.constant 3 : index
    %c1_52 = arith.constant 1 : index
    %c0_53 = arith.constant 0 : index
    %c0_54 = arith.constant 0 : index
    %21 = vector.load %arg2[%c0_49, %c0_50, %c3_51, %c1_52, %c0_53, %c0_54] : memref<1x4x4x4x4x4xf32, #tpu.memory_space<vmem>>, vector<1x1x1x1x4x4xf32>
    %22 = vector.shape_cast %21 : vector<1x1x1x1x4x4xf32> to vector<4x4xf32>
    %c12_55 = arith.constant 12 : index
    %c4_56 = arith.constant 4 : index
    %23 = vector.load %arg8[%c12_55, %c4_56] : memref<16x64xf32, #tpu.memory_space<vmem>>, vector<4x4xf32>
    tpu.vector_store %arg8[%c12_55, %c4_56], %22 {strides = array<i32>} : memref<16x64xf32, #tpu.memory_space<vmem>>, vector<4x4xf32>,
    %c0_57 = arith.constant 0 : index
    %c0_58 = arith.constant 0 : index
    %c0_59 = arith.constant 0 : index
    %c2_60 = arith.constant 2 : index
    %c0_61 = arith.constant 0 : index
    %c0_62 = arith.constant 0 : index
    %24 = vector.load %arg2[%c0_57, %c0_58, %c0_59, %c2_60, %c0_61, %c0_62] : memref<1x4x4x4x4x4xf32, #tpu.memory_space<vmem>>, vector<1x1x1x1x4x4xf32>
    %25 = vector.shape_cast %24 : vector<1x1x1x1x4x4xf32> to vector<4x4xf32>
    %c0_63 = arith.constant 0 : index
    %c8_64 = arith.constant 8 : index
    %26 = vector.load %arg8[%c0_63, %c8_64] : memref<16x64xf32, #tpu.memory_space<vmem>>, vector<4x4xf32>
    tpu.vector_store %arg8[%c0_63, %c8_64], %25 {strides = array<i32>} : memref<16x64xf32, #tpu.memory_space<vmem>>, vector<4x4xf32>,
    %c0_65 = arith.constant 0 : index
    %c0_66 = arith.constant 0 : index
    %c1_67 = arith.constant 1 : index
    %c2_68 = arith.constant 2 : index
    %c0_69 = arith.constant 0 : index
    %c0_70 = arith.constant 0 : index
    %27 = vector.load %arg2[%c0_65, %c0_66, %c1_67, %c2_68, %c0_69, %c0_70] : memref<1x4x4x4x4x4xf32, #tpu.memory_space<vmem>>, vector<1x1x1x1x4x4xf32>
    %28 = vector.shape_cast %27 : vector<1x1x1x1x4x4xf32> to vector<4x4xf32>
    %c4_71 = arith.constant 4 : index
    %c8_72 = arith.constant 8 : index
    %29 = vector.load %arg8[%c4_71, %c8_72] : memref<16x64xf32, #tpu.memory_space<vmem>>, vector<4x4xf32>
    tpu.vector_store %arg8[%c4_71, %c8_72], %28 {strides = array<i32>} : memref<16x64xf32, #tpu.memory_space<vmem>>, vector<4x4xf32>,
    %c0_73 = arith.constant 0 : index
    %c0_74 = arith.constant 0 : index
    %c2_75 = arith.constant 2 : index
    %c2_76 = arith.constant 2 : index
    %c0_77 = arith.constant 0 : index
    %c0_78 = arith.constant 0 : index
    %30 = vector.load %arg2[%c0_73, %c0_74, %c2_75, %c2_76, %c0_77, %c0_78] : memref<1x4x4x4x4x4xf32, #tpu.memory_space<vmem>>, vector<1x1x1x1x4x4xf32>
    %31 = vector.shape_cast %30 : vector<1x1x1x1x4x4xf32> to vector<4x4xf32>
    %c8_79 = arith.constant 8 : index
    %c8_80 = arith.constant 8 : index
    %32 = vector.load %arg8[%c8_79, %c8_80] : memref<16x64xf32, #tpu.memory_space<vmem>>, vector<4x4xf32>
    tpu.vector_store %arg8[%c8_79, %c8_80], %31 {strides = array<i32>} : memref<16x64xf32, #tpu.memory_space<vmem>>, vector<4x4xf32>,
    %c0_81 = arith.constant 0 : index
    %c0_82 = arith.constant 0 : index
    %c3_83 = arith.constant 3 : index
    %c2_84 = arith.constant 2 : index
    %c0_85 = arith.constant 0 : index
    %c0_86 = arith.constant 0 : index
    %33 = vector.load %arg2[%c0_81, %c0_82, %c3_83, %c2_84, %c0_85, %c0_86] : memref<1x4x4x4x4x4xf32, #tpu.memory_space<vmem>>, vector<1x1x1x1x4x4xf32>
    %34 = vector.shape_cast %33 : vector<1x1x1x1x4x4xf32> to vector<4x4xf32>
    %c12_87 = arith.constant 12 : index
    %c8_88 = arith.constant 8 : index
    %35 = vector.load %arg8[%c12_87, %c8_88] : memref<16x64xf32, #tpu.memory_space<vmem>>, vector<4x4xf32>
    tpu.vector_store %arg8[%c12_87, %c8_88], %34 {strides = array<i32>} : memref<16x64xf32, #tpu.memory_space<vmem>>, vector<4x4xf32>,
    %c0_89 = arith.constant 0 : index
    %c0_90 = arith.constant 0 : index
    %c0_91 = arith.constant 0 : index
    %c3_92 = arith.constant 3 : index
    %c0_93 = arith.constant 0 : index
    %c0_94 = arith.constant 0 : index
    %36 = vector.load %arg2[%c0_89, %c0_90, %c0_91, %c3_92, %c0_93, %c0_94] : memref<1x4x4x4x4x4xf32, #tpu.memory_space<vmem>>, vector<1x1x1x1x4x4xf32>
    %37 = vector.shape_cast %36 : vector<1x1x1x1x4x4xf32> to vector<4x4xf32>
    %c0_95 = arith.constant 0 : index
    %c12_96 = arith.constant 12 : index
    %38 = vector.load %arg8[%c0_95, %c12_96] : memref<16x64xf32, #tpu.memory_space<vmem>>, vector<4x4xf32>
    tpu.vector_store %arg8[%c0_95, %c12_96], %37 {strides = array<i32>} : memref<16x64xf32, #tpu.memory_space<vmem>>, vector<4x4xf32>,
    %c0_97 = arith.constant 0 : index
    %c0_98 = arith.constant 0 : index
    %c1_99 = arith.constant 1 : index
    %c3_100 = arith.constant 3 : index
    %c0_101 = arith.constant 0 : index
    %c0_102 = arith.constant 0 : index
    %39 = vector.load %arg2[%c0_97, %c0_98, %c1_99, %c3_100, %c0_101, %c0_102] : memref<1x4x4x4x4x4xf32, #tpu.memory_space<vmem>>, vector<1x1x1x1x4x4xf32>
    %40 = vector.shape_cast %39 : vector<1x1x1x1x4x4xf32> to vector<4x4xf32>
    %c4_103 = arith.constant 4 : index
    %c12_104 = arith.constant 12 : index
    %41 = vector.load %arg8[%c4_103, %c12_104] : memref<16x64xf32, #tpu.memory_space<vmem>>, vector<4x4xf32>
    tpu.vector_store %arg8[%c4_103, %c12_104], %40 {strides = array<i32>} : memref<16x64xf32, #tpu.memory_space<vmem>>, vector<4x4xf32>,
    %c0_105 = arith.constant 0 : index
    %c0_106 = arith.constant 0 : index
    %c2_107 = arith.constant 2 : index
    %c3_108 = arith.constant 3 : index
    %c0_109 = arith.constant 0 : index
    %c0_110 = arith.constant 0 : index
    %42 = vector.load %arg2[%c0_105, %c0_106, %c2_107, %c3_108, %c0_109, %c0_110] : memref<1x4x4x4x4x4xf32, #tpu.memory_space<vmem>>, vector<1x1x1x1x4x4xf32>
    %43 = vector.shape_cast %42 : vector<1x1x1x1x4x4xf32> to vector<4x4xf32>
    %c8_111 = arith.constant 8 : index
    %c12_112 = arith.constant 12 : index
    %44 = vector.load %arg8[%c8_111, %c12_112] : memref<16x64xf32, #tpu.memory_space<vmem>>, vector<4x4xf32>
    tpu.vector_store %arg8[%c8_111, %c12_112], %43 {strides = array<i32>} : memref<16x64xf32, #tpu.memory_space<vmem>>, vector<4x4xf32>,
    %c0_113 = arith.constant 0 : index
    %c0_114 = arith.constant 0 : index
    %c3_115 = arith.constant 3 : index
    %c3_116 = arith.constant 3 : index
    %c0_117 = arith.constant 0 : index
    %c0_118 = arith.constant 0 : index
    %45 = vector.load %arg2[%c0_113, %c0_114, %c3_115, %c3_116, %c0_117, %c0_118] : memref<1x4x4x4x4x4xf32, #tpu.memory_space<vmem>>, vector<1x1x1x1x4x4xf32>
    %46 = vector.shape_cast %45 : vector<1x1x1x1x4x4xf32> to vector<4x4xf32>
    %c12_119 = arith.constant 12 : index
    %c12_120 = arith.constant 12 : index
    %47 = vector.load %arg8[%c12_119, %c12_120] : memref<16x64xf32, #tpu.memory_space<vmem>>, vector<4x4xf32>
    tpu.vector_store %arg8[%c12_119, %c12_120], %46 {strides = array<i32>} : memref<16x64xf32, #tpu.memory_space<vmem>>, vector<4x4xf32>,
    %c0_121 = arith.constant 0 : index
    %c1_122 = arith.constant 1 : index
    %c0_123 = arith.constant 0 : index
    %c0_124 = arith.constant 0 : index
    %c0_125 = arith.constant 0 : index
    %c0_126 = arith.constant 0 : index
    %48 = vector.load %arg2[%c0_121, %c1_122, %c0_123, %c0_124, %c0_125, %c0_126] : memref<1x4x4x4x4x4xf32, #tpu.memory_space<vmem>>, vector<1x1x1x1x4x4xf32>
    %49 = vector.shape_cast %48 : vector<1x1x1x1x4x4xf32> to vector<4x4xf32>
    %c0_127 = arith.constant 0 : index
    %c16 = arith.constant 16 : index
    %50 = vector.load %arg8[%c0_127, %c16] : memref<16x64xf32, #tpu.memory_space<vmem>>, vector<4x4xf32>
    tpu.vector_store %arg8[%c0_127, %c16], %49 {strides = array<i32>} : memref<16x64xf32, #tpu.memory_space<vmem>>, vector<4x4xf32>,
    %c0_128 = arith.constant 0 : index
    %c1_129 = arith.constant 1 : index
    %c1_130 = arith.constant 1 : index
    %c0_131 = arith.constant 0 : index
    %c0_132 = arith.constant 0 : index
    %c0_133 = arith.constant 0 : index
    %51 = vector.load %arg2[%c0_128, %c1_129, %c1_130, %c0_131, %c0_132, %c0_133] : memref<1x4x4x4x4x4xf32, #tpu.memory_space<vmem>>, vector<1x1x1x1x4x4xf32>
    %52 = vector.shape_cast %51 : vector<1x1x1x1x4x4xf32> to vector<4x4xf32>
    %c4_134 = arith.constant 4 : index
    %c16_135 = arith.constant 16 : index
    %53 = vector.load %arg8[%c4_134, %c16_135] : memref<16x64xf32, #tpu.memory_space<vmem>>, vector<4x4xf32>
    tpu.vector_store %arg8[%c4_134, %c16_135], %52 {strides = array<i32>} : memref<16x64xf32, #tpu.memory_space<vmem>>, vector<4x4xf32>,
    %c0_136 = arith.constant 0 : index
    %c1_137 = arith.constant 1 : index
    %c2_138 = arith.constant 2 : index
    %c0_139 = arith.constant 0 : index
    %c0_140 = arith.constant 0 : index
    %c0_141 = arith.constant 0 : index
    %54 = vector.load %arg2[%c0_136, %c1_137, %c2_138, %c0_139, %c0_140, %c0_141] : memref<1x4x4x4x4x4xf32, #tpu.memory_space<vmem>>, vector<1x1x1x1x4x4xf32>
    %55 = vector.shape_cast %54 : vector<1x1x1x1x4x4xf32> to vector<4x4xf32>
    %c8_142 = arith.constant 8 : index
    %c16_143 = arith.constant 16 : index
    %56 = vector.load %arg8[%c8_142, %c16_143] : memref<16x64xf32, #tpu.memory_space<vmem>>, vector<4x4xf32>
    tpu.vector_store %arg8[%c8_142, %c16_143], %55 {strides = array<i32>} : memref<16x64xf32, #tpu.memory_space<vmem>>, vector<4x4xf32>,
    %c0_144 = arith.constant 0 : index
    %c1_145 = arith.constant 1 : index
    %c3_146 = arith.constant 3 : index
    %c0_147 = arith.constant 0 : index
    %c0_148 = arith.constant 0 : index
    %c0_149 = arith.constant 0 : index
    %57 = vector.load %arg2[%c0_144, %c1_145, %c3_146, %c0_147, %c0_148, %c0_149] : memref<1x4x4x4x4x4xf32, #tpu.memory_space<vmem>>, vector<1x1x1x1x4x4xf32>
    %58 = vector.shape_cast %57 : vector<1x1x1x1x4x4xf32> to vector<4x4xf32>
    %c12_150 = arith.constant 12 : index
    %c16_151 = arith.constant 16 : index
    %59 = vector.load %arg8[%c12_150, %c16_151] : memref<16x64xf32, #tpu.memory_space<vmem>>, vector<4x4xf32>
    tpu.vector_store %arg8[%c12_150, %c16_151], %58 {strides = array<i32>} : memref<16x64xf32, #tpu.memory_space<vmem>>, vector<4x4xf32>,
    %c0_152 = arith.constant 0 : index
    %c1_153 = arith.constant 1 : index
    %c0_154 = arith.constant 0 : index
    %c1_155 = arith.constant 1 : index
    %c0_156 = arith.constant 0 : index
    %c0_157 = arith.constant 0 : index
    %60 = vector.load %arg2[%c0_152, %c1_153, %c0_154, %c1_155, %c0_156, %c0_157] : memref<1x4x4x4x4x4xf32, #tpu.memory_space<vmem>>, vector<1x1x1x1x4x4xf32>
    %61 = vector.shape_cast %60 : vector<1x1x1x1x4x4xf32> to vector<4x4xf32>
    %c0_158 = arith.constant 0 : index
    %c20 = arith.constant 20 : index
    %62 = vector.load %arg8[%c0_158, %c20] : memref<16x64xf32, #tpu.memory_space<vmem>>, vector<4x4xf32>
    tpu.vector_store %arg8[%c0_158, %c20], %61 {strides = array<i32>} : memref<16x64xf32, #tpu.memory_space<vmem>>, vector<4x4xf32>,
    %c0_159 = arith.constant 0 : index
    %c1_160 = arith.constant 1 : index
    %c1_161 = arith.constant 1 : index
    %c1_162 = arith.constant 1 : index
    %c0_163 = arith.constant 0 : index
    %c0_164 = arith.constant 0 : index
    %63 = vector.load %arg2[%c0_159, %c1_160, %c1_161, %c1_162, %c0_163, %c0_164] : memref<1x4x4x4x4x4xf32, #tpu.memory_space<vmem>>, vector<1x1x1x1x4x4xf32>
    %64 = vector.shape_cast %63 : vector<1x1x1x1x4x4xf32> to vector<4x4xf32>
    %c4_165 = arith.constant 4 : index
    %c20_166 = arith.constant 20 : index
    %65 = vector.load %arg8[%c4_165, %c20_166] : memref<16x64xf32, #tpu.memory_space<vmem>>, vector<4x4xf32>
    tpu.vector_store %arg8[%c4_165, %c20_166], %64 {strides = array<i32>} : memref<16x64xf32, #tpu.memory_space<vmem>>, vector<4x4xf32>,
    %c0_167 = arith.constant 0 : index
    %c1_168 = arith.constant 1 : index
    %c2_169 = arith.constant 2 : index
    %c1_170 = arith.constant 1 : index
    %c0_171 = arith.constant 0 : index
    %c0_172 = arith.constant 0 : index
    %66 = vector.load %arg2[%c0_167, %c1_168, %c2_169, %c1_170, %c0_171, %c0_172] : memref<1x4x4x4x4x4xf32, #tpu.memory_space<vmem>>, vector<1x1x1x1x4x4xf32>
    %67 = vector.shape_cast %66 : vector<1x1x1x1x4x4xf32> to vector<4x4xf32>
    %c8_173 = arith.constant 8 : index
    %c20_174 = arith.constant 20 : index
    %68 = vector.load %arg8[%c8_173, %c20_174] : memref<16x64xf32, #tpu.memory_space<vmem>>, vector<4x4xf32>
    tpu.vector_store %arg8[%c8_173, %c20_174], %67 {strides = array<i32>} : memref<16x64xf32, #tpu.memory_space<vmem>>, vector<4x4xf32>,
    %c0_175 = arith.constant 0 : index
    %c1_176 = arith.constant 1 : index
    %c3_177 = arith.constant 3 : index
    %c1_178 = arith.constant 1 : index
    %c0_179 = arith.constant 0 : index
    %c0_180 = arith.constant 0 : index
    %69 = vector.load %arg2[%c0_175, %c1_176, %c3_177, %c1_178, %c0_179, %c0_180] : memref<1x4x4x4x4x4xf32, #tpu.memory_space<vmem>>, vector<1x1x1x1x4x4xf32>
    %70 = vector.shape_cast %69 : vector<1x1x1x1x4x4xf32> to vector<4x4xf32>
    %c12_181 = arith.constant 12 : index
    %c20_182 = arith.constant 20 : index
    %71 = vector.load %arg8[%c12_181, %c20_182] : memref<16x64xf32, #tpu.memory_space<vmem>>, vector<4x4xf32>
    tpu.vector_store %arg8[%c12_181, %c20_182], %70 {strides = array<i32>} : memref<16x64xf32, #tpu.memory_space<vmem>>, vector<4x4xf32>,
    %c0_183 = arith.constant 0 : index
    %c1_184 = arith.constant 1 : index
    %c0_185 = arith.constant 0 : index
    %c2_186 = arith.constant 2 : index
    %c0_187 = arith.constant 0 : index
    %c0_188 = arith.constant 0 : index
    %72 = vector.load %arg2[%c0_183, %c1_184, %c0_185, %c2_186, %c0_187, %c0_188] : memref<1x4x4x4x4x4xf32, #tpu.memory_space<vmem>>, vector<1x1x1x1x4x4xf32>
    %73 = vector.shape_cast %72 : vector<1x1x1x1x4x4xf32> to vector<4x4xf32>
    %c0_189 = arith.constant 0 : index
    %c24 = arith.constant 24 : index
    %74 = vector.load %arg8[%c0_189, %c24] : memref<16x64xf32, #tpu.memory_space<vmem>>, vector<4x4xf32>
    tpu.vector_store %arg8[%c0_189, %c24], %73 {strides = array<i32>} : memref<16x64xf32, #tpu.memory_space<vmem>>, vector<4x4xf32>,
    %c0_190 = arith.constant 0 : index
    %c1_191 = arith.constant 1 : index
    %c1_192 = arith.constant 1 : index
    %c2_193 = arith.constant 2 : index
    %c0_194 = arith.constant 0 : index
    %c0_195 = arith.constant 0 : index
    %75 = vector.load %arg2[%c0_190, %c1_191, %c1_192, %c2_193, %c0_194, %c0_195] : memref<1x4x4x4x4x4xf32, #tpu.memory_space<vmem>>, vector<1x1x1x1x4x4xf32>
    %76 = vector.shape_cast %75 : vector<1x1x1x1x4x4xf32> to vector<4x4xf32>
    %c4_196 = arith.constant 4 : index
    %c24_197 = arith.constant 24 : index
    %77 = vector.load %arg8[%c4_196, %c24_197] : memref<16x64xf32, #tpu.memory_space<vmem>>, vector<4x4xf32>
    tpu.vector_store %arg8[%c4_196, %c24_197], %76 {strides = array<i32>} : memref<16x64xf32, #tpu.memory_space<vmem>>, vector<4x4xf32>,
    %c0_198 = arith.constant 0 : index
    %c1_199 = arith.constant 1 : index
    %c2_200 = arith.constant 2 : index
    %c2_201 = arith.constant 2 : index
    %c0_202 = arith.constant 0 : index
    %c0_203 = arith.constant 0 : index
    %78 = vector.load %arg2[%c0_198, %c1_199, %c2_200, %c2_201, %c0_202, %c0_203] : memref<1x4x4x4x4x4xf32, #tpu.memory_space<vmem>>, vector<1x1x1x1x4x4xf32>
    %79 = vector.shape_cast %78 : vector<1x1x1x1x4x4xf32> to vector<4x4xf32>
    %c8_204 = arith.constant 8 : index
    %c24_205 = arith.constant 24 : index
    %80 = vector.load %arg8[%c8_204, %c24_205] : memref<16x64xf32, #tpu.memory_space<vmem>>, vector<4x4xf32>
    tpu.vector_store %arg8[%c8_204, %c24_205], %79 {strides = array<i32>} : memref<16x64xf32, #tpu.memory_space<vmem>>, vector<4x4xf32>,
    %c0_206 = arith.constant 0 : index
    %c1_207 = arith.constant 1 : index
    %c3_208 = arith.constant 3 : index
    %c2_209 = arith.constant 2 : index
    %c0_210 = arith.constant 0 : index
    %c0_211 = arith.constant 0 : index
    %81 = vector.load %arg2[%c0_206, %c1_207, %c3_208, %c2_209, %c0_210, %c0_211] : memref<1x4x4x4x4x4xf32, #tpu.memory_space<vmem>>, vector<1x1x1x1x4x4xf32>
    %82 = vector.shape_cast %81 : vector<1x1x1x1x4x4xf32> to vector<4x4xf32>
    %c12_212 = arith.constant 12 : index
    %c24_213 = arith.constant 24 : index
    %83 = vector.load %arg8[%c12_212, %c24_213] : memref<16x64xf32, #tpu.memory_space<vmem>>, vector<4x4xf32>
    tpu.vector_store %arg8[%c12_212, %c24_213], %82 {strides = array<i32>} : memref<16x64xf32, #tpu.memory_space<vmem>>, vector<4x4xf32>,
    %c0_214 = arith.constant 0 : index
    %c1_215 = arith.constant 1 : index
    %c0_216 = arith.constant 0 : index
    %c3_217 = arith.constant 3 : index
    %c0_218 = arith.constant 0 : index
    %c0_219 = arith.constant 0 : index
    %84 = vector.load %arg2[%c0_214, %c1_215, %c0_216, %c3_217, %c0_218, %c0_219] : memref<1x4x4x4x4x4xf32, #tpu.memory_space<vmem>>, vector<1x1x1x1x4x4xf32>
    %85 = vector.shape_cast %84 : vector<1x1x1x1x4x4xf32> to vector<4x4xf32>
    %c0_220 = arith.constant 0 : index
    %c28 = arith.constant 28 : index
    %86 = vector.load %arg8[%c0_220, %c28] : memref<16x64xf32, #tpu.memory_space<vmem>>, vector<4x4xf32>
    tpu.vector_store %arg8[%c0_220, %c28], %85 {strides = array<i32>} : memref<16x64xf32, #tpu.memory_space<vmem>>, vector<4x4xf32>,
    %c0_221 = arith.constant 0 : index
    %c1_222 = arith.constant 1 : index
    %c1_223 = arith.constant 1 : index
    %c3_224 = arith.constant 3 : index
    %c0_225 = arith.constant 0 : index
    %c0_226 = arith.constant 0 : index
    %87 = vector.load %arg2[%c0_221, %c1_222, %c1_223, %c3_224, %c0_225, %c0_226] : memref<1x4x4x4x4x4xf32, #tpu.memory_space<vmem>>, vector<1x1x1x1x4x4xf32>
    %88 = vector.shape_cast %87 : vector<1x1x1x1x4x4xf32> to vector<4x4xf32>
    %c4_227 = arith.constant 4 : index
    %c28_228 = arith.constant 28 : index
    %89 = vector.load %arg8[%c4_227, %c28_228] : memref<16x64xf32, #tpu.memory_space<vmem>>, vector<4x4xf32>
    tpu.vector_store %arg8[%c4_227, %c28_228], %88 {strides = array<i32>} : memref<16x64xf32, #tpu.memory_space<vmem>>, vector<4x4xf32>,
    %c0_229 = arith.constant 0 : index
    %c1_230 = arith.constant 1 : index
    %c2_231 = arith.constant 2 : index
    %c3_232 = arith.constant 3 : index
    %c0_233 = arith.constant 0 : index
    %c0_234 = arith.constant 0 : index
    %90 = vector.load %arg2[%c0_229, %c1_230, %c2_231, %c3_232, %c0_233, %c0_234] : memref<1x4x4x4x4x4xf32, #tpu.memory_space<vmem>>, vector<1x1x1x1x4x4xf32>
    %91 = vector.shape_cast %90 : vector<1x1x1x1x4x4xf32> to vector<4x4xf32>
    %c8_235 = arith.constant 8 : index
    %c28_236 = arith.constant 28 : index
    %92 = vector.load %arg8[%c8_235, %c28_236] : memref<16x64xf32, #tpu.memory_space<vmem>>, vector<4x4xf32>
    tpu.vector_store %arg8[%c8_235, %c28_236], %91 {strides = array<i32>} : memref<16x64xf32, #tpu.memory_space<vmem>>, vector<4x4xf32>,
    %c0_237 = arith.constant 0 : index
    %c1_238 = arith.constant 1 : index
    %c3_239 = arith.constant 3 : index
    %c3_240 = arith.constant 3 : index
    %c0_241 = arith.constant 0 : index
    %c0_242 = arith.constant 0 : index
    %93 = vector.load %arg2[%c0_237, %c1_238, %c3_239, %c3_240, %c0_241, %c0_242] : memref<1x4x4x4x4x4xf32, #tpu.memory_space<vmem>>, vector<1x1x1x1x4x4xf32>
    %94 = vector.shape_cast %93 : vector<1x1x1x1x4x4xf32> to vector<4x4xf32>
    %c12_243 = arith.constant 12 : index
    %c28_244 = arith.constant 28 : index
    %95 = vector.load %arg8[%c12_243, %c28_244] : memref<16x64xf32, #tpu.memory_space<vmem>>, vector<4x4xf32>
    tpu.vector_store %arg8[%c12_243, %c28_244], %94 {strides = array<i32>} : memref<16x64xf32, #tpu.memory_space<vmem>>, vector<4x4xf32>,
    %c0_245 = arith.constant 0 : index
    %c2_246 = arith.constant 2 : index
    %c0_247 = arith.constant 0 : index
    %c0_248 = arith.constant 0 : index
    %c0_249 = arith.constant 0 : index
    %c0_250 = arith.constant 0 : index
    %96 = vector.load %arg2[%c0_245, %c2_246, %c0_247, %c0_248, %c0_249, %c0_250] : memref<1x4x4x4x4x4xf32, #tpu.memory_space<vmem>>, vector<1x1x1x1x4x4xf32>
    %97 = vector.shape_cast %96 : vector<1x1x1x1x4x4xf32> to vector<4x4xf32>
    %c0_251 = arith.constant 0 : index
    %c32 = arith.constant 32 : index
    %98 = vector.load %arg8[%c0_251, %c32] : memref<16x64xf32, #tpu.memory_space<vmem>>, vector<4x4xf32>
    tpu.vector_store %arg8[%c0_251, %c32], %97 {strides = array<i32>} : memref<16x64xf32, #tpu.memory_space<vmem>>, vector<4x4xf32>,
    %c0_252 = arith.constant 0 : index
    %c2_253 = arith.constant 2 : index
    %c1_254 = arith.constant 1 : index
    %c0_255 = arith.constant 0 : index
    %c0_256 = arith.constant 0 : index
    %c0_257 = arith.constant 0 : index
    %99 = vector.load %arg2[%c0_252, %c2_253, %c1_254, %c0_255, %c0_256, %c0_257] : memref<1x4x4x4x4x4xf32, #tpu.memory_space<vmem>>, vector<1x1x1x1x4x4xf32>
    %100 = vector.shape_cast %99 : vector<1x1x1x1x4x4xf32> to vector<4x4xf32>
    %c4_258 = arith.constant 4 : index
    %c32_259 = arith.constant 32 : index
    %101 = vector.load %arg8[%c4_258, %c32_259] : memref<16x64xf32, #tpu.memory_space<vmem>>, vector<4x4xf32>
    tpu.vector_store %arg8[%c4_258, %c32_259], %100 {strides = array<i32>} : memref<16x64xf32, #tpu.memory_space<vmem>>, vector<4x4xf32>,
    %c0_260 = arith.constant 0 : index
    %c2_261 = arith.constant 2 : index
    %c2_262 = arith.constant 2 : index
    %c0_263 = arith.constant 0 : index
    %c0_264 = arith.constant 0 : index
    %c0_265 = arith.constant 0 : index
    %102 = vector.load %arg2[%c0_260, %c2_261, %c2_262, %c0_263, %c0_264, %c0_265] : memref<1x4x4x4x4x4xf32, #tpu.memory_space<vmem>>, vector<1x1x1x1x4x4xf32>
    %103 = vector.shape_cast %102 : vector<1x1x1x1x4x4xf32> to vector<4x4xf32>
    %c8_266 = arith.constant 8 : index
    %c32_267 = arith.constant 32 : index
    %104 = vector.load %arg8[%c8_266, %c32_267] : memref<16x64xf32, #tpu.memory_space<vmem>>, vector<4x4xf32>
    tpu.vector_store %arg8[%c8_266, %c32_267], %103 {strides = array<i32>} : memref<16x64xf32, #tpu.memory_space<vmem>>, vector<4x4xf32>,
    %c0_268 = arith.constant 0 : index
    %c2_269 = arith.constant 2 : index
    %c3_270 = arith.constant 3 : index
    %c0_271 = arith.constant 0 : index
    %c0_272 = arith.constant 0 : index
    %c0_273 = arith.constant 0 : index
    %105 = vector.load %arg2[%c0_268, %c2_269, %c3_270, %c0_271, %c0_272, %c0_273] : memref<1x4x4x4x4x4xf32, #tpu.memory_space<vmem>>, vector<1x1x1x1x4x4xf32>
    %106 = vector.shape_cast %105 : vector<1x1x1x1x4x4xf32> to vector<4x4xf32>
    %c12_274 = arith.constant 12 : index
    %c32_275 = arith.constant 32 : index
    %107 = vector.load %arg8[%c12_274, %c32_275] : memref<16x64xf32, #tpu.memory_space<vmem>>, vector<4x4xf32>
    tpu.vector_store %arg8[%c12_274, %c32_275], %106 {strides = array<i32>} : memref<16x64xf32, #tpu.memory_space<vmem>>, vector<4x4xf32>,
    %c0_276 = arith.constant 0 : index
    %c2_277 = arith.constant 2 : index
    %c0_278 = arith.constant 0 : index
    %c1_279 = arith.constant 1 : index
    %c0_280 = arith.constant 0 : index
    %c0_281 = arith.constant 0 : index
    %108 = vector.load %arg2[%c0_276, %c2_277, %c0_278, %c1_279, %c0_280, %c0_281] : memref<1x4x4x4x4x4xf32, #tpu.memory_space<vmem>>, vector<1x1x1x1x4x4xf32>
    %109 = vector.shape_cast %108 : vector<1x1x1x1x4x4xf32> to vector<4x4xf32>
    %c0_282 = arith.constant 0 : index
    %c36 = arith.constant 36 : index
    %110 = vector.load %arg8[%c0_282, %c36] : memref<16x64xf32, #tpu.memory_space<vmem>>, vector<4x4xf32>
    tpu.vector_store %arg8[%c0_282, %c36], %109 {strides = array<i32>} : memref<16x64xf32, #tpu.memory_space<vmem>>, vector<4x4xf32>,
    %c0_283 = arith.constant 0 : index
    %c2_284 = arith.constant 2 : index
    %c1_285 = arith.constant 1 : index
    %c1_286 = arith.constant 1 : index
    %c0_287 = arith.constant 0 : index
    %c0_288 = arith.constant 0 : index
    %111 = vector.load %arg2[%c0_283, %c2_284, %c1_285, %c1_286, %c0_287, %c0_288] : memref<1x4x4x4x4x4xf32, #tpu.memory_space<vmem>>, vector<1x1x1x1x4x4xf32>
    %112 = vector.shape_cast %111 : vector<1x1x1x1x4x4xf32> to vector<4x4xf32>
    %c4_289 = arith.constant 4 : index
    %c36_290 = arith.constant 36 : index
    %113 = vector.load %arg8[%c4_289, %c36_290] : memref<16x64xf32, #tpu.memory_space<vmem>>, vector<4x4xf32>
    tpu.vector_store %arg8[%c4_289, %c36_290], %112 {strides = array<i32>} : memref<16x64xf32, #tpu.memory_space<vmem>>, vector<4x4xf32>,
    %c0_291 = arith.constant 0 : index
    %c2_292 = arith.constant 2 : index
    %c2_293 = arith.constant 2 : index
    %c1_294 = arith.constant 1 : index
    %c0_295 = arith.constant 0 : index
    %c0_296 = arith.constant 0 : index
    %114 = vector.load %arg2[%c0_291, %c2_292, %c2_293, %c1_294, %c0_295, %c0_296] : memref<1x4x4x4x4x4xf32, #tpu.memory_space<vmem>>, vector<1x1x1x1x4x4xf32>
    %115 = vector.shape_cast %114 : vector<1x1x1x1x4x4xf32> to vector<4x4xf32>
    %c8_297 = arith.constant 8 : index
    %c36_298 = arith.constant 36 : index
    %116 = vector.load %arg8[%c8_297, %c36_298] : memref<16x64xf32, #tpu.memory_space<vmem>>, vector<4x4xf32>
    tpu.vector_store %arg8[%c8_297, %c36_298], %115 {strides = array<i32>} : memref<16x64xf32, #tpu.memory_space<vmem>>, vector<4x4xf32>,
    %c0_299 = arith.constant 0 : index
    %c2_300 = arith.constant 2 : index
    %c3_301 = arith.constant 3 : index
    %c1_302 = arith.constant 1 : index
    %c0_303 = arith.constant 0 : index
    %c0_304 = arith.constant 0 : index
    %117 = vector.load %arg2[%c0_299, %c2_300, %c3_301, %c1_302, %c0_303, %c0_304] : memref<1x4x4x4x4x4xf32, #tpu.memory_space<vmem>>, vector<1x1x1x1x4x4xf32>
    %118 = vector.shape_cast %117 : vector<1x1x1x1x4x4xf32> to vector<4x4xf32>
    %c12_305 = arith.constant 12 : index
    %c36_306 = arith.constant 36 : index
    %119 = vector.load %arg8[%c12_305, %c36_306] : memref<16x64xf32, #tpu.memory_space<vmem>>, vector<4x4xf32>
    tpu.vector_store %arg8[%c12_305, %c36_306], %118 {strides = array<i32>} : memref<16x64xf32, #tpu.memory_space<vmem>>, vector<4x4xf32>,
    %c0_307 = arith.constant 0 : index
    %c2_308 = arith.constant 2 : index
    %c0_309 = arith.constant 0 : index
    %c2_310 = arith.constant 2 : index
    %c0_311 = arith.constant 0 : index
    %c0_312 = arith.constant 0 : index
    %120 = vector.load %arg2[%c0_307, %c2_308, %c0_309, %c2_310, %c0_311, %c0_312] : memref<1x4x4x4x4x4xf32, #tpu.memory_space<vmem>>, vector<1x1x1x1x4x4xf32>
    %121 = vector.shape_cast %120 : vector<1x1x1x1x4x4xf32> to vector<4x4xf32>
    %c0_313 = arith.constant 0 : index
    %c40 = arith.constant 40 : index
    %122 = vector.load %arg8[%c0_313, %c40] : memref<16x64xf32, #tpu.memory_space<vmem>>, vector<4x4xf32>
    tpu.vector_store %arg8[%c0_313, %c40], %121 {strides = array<i32>} : memref<16x64xf32, #tpu.memory_space<vmem>>, vector<4x4xf32>,
    %c0_314 = arith.constant 0 : index
    %c2_315 = arith.constant 2 : index
    %c1_316 = arith.constant 1 : index
    %c2_317 = arith.constant 2 : index
    %c0_318 = arith.constant 0 : index
    %c0_319 = arith.constant 0 : index
    %123 = vector.load %arg2[%c0_314, %c2_315, %c1_316, %c2_317, %c0_318, %c0_319] : memref<1x4x4x4x4x4xf32, #tpu.memory_space<vmem>>, vector<1x1x1x1x4x4xf32>
    %124 = vector.shape_cast %123 : vector<1x1x1x1x4x4xf32> to vector<4x4xf32>
    %c4_320 = arith.constant 4 : index
    %c40_321 = arith.constant 40 : index
    %125 = vector.load %arg8[%c4_320, %c40_321] : memref<16x64xf32, #tpu.memory_space<vmem>>, vector<4x4xf32>
    tpu.vector_store %arg8[%c4_320, %c40_321], %124 {strides = array<i32>} : memref<16x64xf32, #tpu.memory_space<vmem>>, vector<4x4xf32>,
    %c0_322 = arith.constant 0 : index
    %c2_323 = arith.constant 2 : index
    %c2_324 = arith.constant 2 : index
    %c2_325 = arith.constant 2 : index
    %c0_326 = arith.constant 0 : index
    %c0_327 = arith.constant 0 : index
    %126 = vector.load %arg2[%c0_322, %c2_323, %c2_324, %c2_325, %c0_326, %c0_327] : memref<1x4x4x4x4x4xf32, #tpu.memory_space<vmem>>, vector<1x1x1x1x4x4xf32>
    %127 = vector.shape_cast %126 : vector<1x1x1x1x4x4xf32> to vector<4x4xf32>
    %c8_328 = arith.constant 8 : index
    %c40_329 = arith.constant 40 : index
    %128 = vector.load %arg8[%c8_328, %c40_329] : memref<16x64xf32, #tpu.memory_space<vmem>>, vector<4x4xf32>
    tpu.vector_store %arg8[%c8_328, %c40_329], %127 {strides = array<i32>} : memref<16x64xf32, #tpu.memory_space<vmem>>, vector<4x4xf32>,
    %c0_330 = arith.constant 0 : index
    %c2_331 = arith.constant 2 : index
    %c3_332 = arith.constant 3 : index
    %c2_333 = arith.constant 2 : index
    %c0_334 = arith.constant 0 : index
    %c0_335 = arith.constant 0 : index
    %129 = vector.load %arg2[%c0_330, %c2_331, %c3_332, %c2_333, %c0_334, %c0_335] : memref<1x4x4x4x4x4xf32, #tpu.memory_space<vmem>>, vector<1x1x1x1x4x4xf32>
    %130 = vector.shape_cast %129 : vector<1x1x1x1x4x4xf32> to vector<4x4xf32>
    %c12_336 = arith.constant 12 : index
    %c40_337 = arith.constant 40 : index
    %131 = vector.load %arg8[%c12_336, %c40_337] : memref<16x64xf32, #tpu.memory_space<vmem>>, vector<4x4xf32>
    tpu.vector_store %arg8[%c12_336, %c40_337], %130 {strides = array<i32>} : memref<16x64xf32, #tpu.memory_space<vmem>>, vector<4x4xf32>,
    %c0_338 = arith.constant 0 : index
    %c2_339 = arith.constant 2 : index
    %c0_340 = arith.constant 0 : index
    %c3_341 = arith.constant 3 : index
    %c0_342 = arith.constant 0 : index
    %c0_343 = arith.constant 0 : index
    %132 = vector.load %arg2[%c0_338, %c2_339, %c0_340, %c3_341, %c0_342, %c0_343] : memref<1x4x4x4x4x4xf32, #tpu.memory_space<vmem>>, vector<1x1x1x1x4x4xf32>
    %133 = vector.shape_cast %132 : vector<1x1x1x1x4x4xf32> to vector<4x4xf32>
    %c0_344 = arith.constant 0 : index
    %c44 = arith.constant 44 : index
    %134 = vector.load %arg8[%c0_344, %c44] : memref<16x64xf32, #tpu.memory_space<vmem>>, vector<4x4xf32>
    tpu.vector_store %arg8[%c0_344, %c44], %133 {strides = array<i32>} : memref<16x64xf32, #tpu.memory_space<vmem>>, vector<4x4xf32>,
    %c0_345 = arith.constant 0 : index
    %c2_346 = arith.constant 2 : index
    %c1_347 = arith.constant 1 : index
    %c3_348 = arith.constant 3 : index
    %c0_349 = arith.constant 0 : index
    %c0_350 = arith.constant 0 : index
    %135 = vector.load %arg2[%c0_345, %c2_346, %c1_347, %c3_348, %c0_349, %c0_350] : memref<1x4x4x4x4x4xf32, #tpu.memory_space<vmem>>, vector<1x1x1x1x4x4xf32>
    %136 = vector.shape_cast %135 : vector<1x1x1x1x4x4xf32> to vector<4x4xf32>
    %c4_351 = arith.constant 4 : index
    %c44_352 = arith.constant 44 : index
    %137 = vector.load %arg8[%c4_351, %c44_352] : memref<16x64xf32, #tpu.memory_space<vmem>>, vector<4x4xf32>
    tpu.vector_store %arg8[%c4_351, %c44_352], %136 {strides = array<i32>} : memref<16x64xf32, #tpu.memory_space<vmem>>, vector<4x4xf32>,
    %c0_353 = arith.constant 0 : index
    %c2_354 = arith.constant 2 : index
    %c2_355 = arith.constant 2 : index
    %c3_356 = arith.constant 3 : index
    %c0_357 = arith.constant 0 : index
    %c0_358 = arith.constant 0 : index
    %138 = vector.load %arg2[%c0_353, %c2_354, %c2_355, %c3_356, %c0_357, %c0_358] : memref<1x4x4x4x4x4xf32, #tpu.memory_space<vmem>>, vector<1x1x1x1x4x4xf32>
    %139 = vector.shape_cast %138 : vector<1x1x1x1x4x4xf32> to vector<4x4xf32>
    %c8_359 = arith.constant 8 : index
    %c44_360 = arith.constant 44 : index
    %140 = vector.load %arg8[%c8_359, %c44_360] : memref<16x64xf32, #tpu.memory_space<vmem>>, vector<4x4xf32>
    tpu.vector_store %arg8[%c8_359, %c44_360], %139 {strides = array<i32>} : memref<16x64xf32, #tpu.memory_space<vmem>>, vector<4x4xf32>,
    %c0_361 = arith.constant 0 : index
    %c2_362 = arith.constant 2 : index
    %c3_363 = arith.constant 3 : index
    %c3_364 = arith.constant 3 : index
    %c0_365 = arith.constant 0 : index
    %c0_366 = arith.constant 0 : index
    %141 = vector.load %arg2[%c0_361, %c2_362, %c3_363, %c3_364, %c0_365, %c0_366] : memref<1x4x4x4x4x4xf32, #tpu.memory_space<vmem>>, vector<1x1x1x1x4x4xf32>
    %142 = vector.shape_cast %141 : vector<1x1x1x1x4x4xf32> to vector<4x4xf32>
    %c12_367 = arith.constant 12 : index
    %c44_368 = arith.constant 44 : index
    %143 = vector.load %arg8[%c12_367, %c44_368] : memref<16x64xf32, #tpu.memory_space<vmem>>, vector<4x4xf32>
    tpu.vector_store %arg8[%c12_367, %c44_368], %142 {strides = array<i32>} : memref<16x64xf32, #tpu.memory_space<vmem>>, vector<4x4xf32>,
    %c0_369 = arith.constant 0 : index
    %c3_370 = arith.constant 3 : index
    %c0_371 = arith.constant 0 : index
    %c0_372 = arith.constant 0 : index
    %c0_373 = arith.constant 0 : index
    %c0_374 = arith.constant 0 : index
    %144 = vector.load %arg2[%c0_369, %c3_370, %c0_371, %c0_372, %c0_373, %c0_374] : memref<1x4x4x4x4x4xf32, #tpu.memory_space<vmem>>, vector<1x1x1x1x4x4xf32>
    %145 = vector.shape_cast %144 : vector<1x1x1x1x4x4xf32> to vector<4x4xf32>
    %c0_375 = arith.constant 0 : index
    %c48 = arith.constant 48 : index
    %146 = vector.load %arg8[%c0_375, %c48] : memref<16x64xf32, #tpu.memory_space<vmem>>, vector<4x4xf32>
    tpu.vector_store %arg8[%c0_375, %c48], %145 {strides = array<i32>} : memref<16x64xf32, #tpu.memory_space<vmem>>, vector<4x4xf32>,
    %c0_376 = arith.constant 0 : index
    %c3_377 = arith.constant 3 : index
    %c1_378 = arith.constant 1 : index
    %c0_379 = arith.constant 0 : index
    %c0_380 = arith.constant 0 : index
    %c0_381 = arith.constant 0 : index
    %147 = vector.load %arg2[%c0_376, %c3_377, %c1_378, %c0_379, %c0_380, %c0_381] : memref<1x4x4x4x4x4xf32, #tpu.memory_space<vmem>>, vector<1x1x1x1x4x4xf32>
    %148 = vector.shape_cast %147 : vector<1x1x1x1x4x4xf32> to vector<4x4xf32>
    %c4_382 = arith.constant 4 : index
    %c48_383 = arith.constant 48 : index
    %149 = vector.load %arg8[%c4_382, %c48_383] : memref<16x64xf32, #tpu.memory_space<vmem>>, vector<4x4xf32>
    tpu.vector_store %arg8[%c4_382, %c48_383], %148 {strides = array<i32>} : memref<16x64xf32, #tpu.memory_space<vmem>>, vector<4x4xf32>,
    %c0_384 = arith.constant 0 : index
    %c3_385 = arith.constant 3 : index
    %c2_386 = arith.constant 2 : index
    %c0_387 = arith.constant 0 : index
    %c0_388 = arith.constant 0 : index
    %c0_389 = arith.constant 0 : index
    %150 = vector.load %arg2[%c0_384, %c3_385, %c2_386, %c0_387, %c0_388, %c0_389] : memref<1x4x4x4x4x4xf32, #tpu.memory_space<vmem>>, vector<1x1x1x1x4x4xf32>
    %151 = vector.shape_cast %150 : vector<1x1x1x1x4x4xf32> to vector<4x4xf32>
    %c8_390 = arith.constant 8 : index
    %c48_391 = arith.constant 48 : index
    %152 = vector.load %arg8[%c8_390, %c48_391] : memref<16x64xf32, #tpu.memory_space<vmem>>, vector<4x4xf32>
    tpu.vector_store %arg8[%c8_390, %c48_391], %151 {strides = array<i32>} : memref<16x64xf32, #tpu.memory_space<vmem>>, vector<4x4xf32>,
    %c0_392 = arith.constant 0 : index
    %c3_393 = arith.constant 3 : index
    %c3_394 = arith.constant 3 : index
    %c0_395 = arith.constant 0 : index
    %c0_396 = arith.constant 0 : index
    %c0_397 = arith.constant 0 : index
    %153 = vector.load %arg2[%c0_392, %c3_393, %c3_394, %c0_395, %c0_396, %c0_397] : memref<1x4x4x4x4x4xf32, #tpu.memory_space<vmem>>, vector<1x1x1x1x4x4xf32>
    %154 = vector.shape_cast %153 : vector<1x1x1x1x4x4xf32> to vector<4x4xf32>
    %c12_398 = arith.constant 12 : index
    %c48_399 = arith.constant 48 : index
    %155 = vector.load %arg8[%c12_398, %c48_399] : memref<16x64xf32, #tpu.memory_space<vmem>>, vector<4x4xf32>
    tpu.vector_store %arg8[%c12_398, %c48_399], %154 {strides = array<i32>} : memref<16x64xf32, #tpu.memory_space<vmem>>, vector<4x4xf32>,
    %c0_400 = arith.constant 0 : index
    %c3_401 = arith.constant 3 : index
    %c0_402 = arith.constant 0 : index
    %c1_403 = arith.constant 1 : index
    %c0_404 = arith.constant 0 : index
    %c0_405 = arith.constant 0 : index
    %156 = vector.load %arg2[%c0_400, %c3_401, %c0_402, %c1_403, %c0_404, %c0_405] : memref<1x4x4x4x4x4xf32, #tpu.memory_space<vmem>>, vector<1x1x1x1x4x4xf32>
    %157 = vector.shape_cast %156 : vector<1x1x1x1x4x4xf32> to vector<4x4xf32>
    %c0_406 = arith.constant 0 : index
    %c52 = arith.constant 52 : index
    %158 = vector.load %arg8[%c0_406, %c52] : memref<16x64xf32, #tpu.memory_space<vmem>>, vector<4x4xf32>
    tpu.vector_store %arg8[%c0_406, %c52], %157 {strides = array<i32>} : memref<16x64xf32, #tpu.memory_space<vmem>>, vector<4x4xf32>,
    %c0_407 = arith.constant 0 : index
    %c3_408 = arith.constant 3 : index
    %c1_409 = arith.constant 1 : index
    %c1_410 = arith.constant 1 : index
    %c0_411 = arith.constant 0 : index
    %c0_412 = arith.constant 0 : index
    %159 = vector.load %arg2[%c0_407, %c3_408, %c1_409, %c1_410, %c0_411, %c0_412] : memref<1x4x4x4x4x4xf32, #tpu.memory_space<vmem>>, vector<1x1x1x1x4x4xf32>
    %160 = vector.shape_cast %159 : vector<1x1x1x1x4x4xf32> to vector<4x4xf32>
    %c4_413 = arith.constant 4 : index
    %c52_414 = arith.constant 52 : index
    %161 = vector.load %arg8[%c4_413, %c52_414] : memref<16x64xf32, #tpu.memory_space<vmem>>, vector<4x4xf32>
    tpu.vector_store %arg8[%c4_413, %c52_414], %160 {strides = array<i32>} : memref<16x64xf32, #tpu.memory_space<vmem>>, vector<4x4xf32>,
    %c0_415 = arith.constant 0 : index
    %c3_416 = arith.constant 3 : index
    %c2_417 = arith.constant 2 : index
    %c1_418 = arith.constant 1 : index
    %c0_419 = arith.constant 0 : index
    %c0_420 = arith.constant 0 : index
    %162 = vector.load %arg2[%c0_415, %c3_416, %c2_417, %c1_418, %c0_419, %c0_420] : memref<1x4x4x4x4x4xf32, #tpu.memory_space<vmem>>, vector<1x1x1x1x4x4xf32>
    %163 = vector.shape_cast %162 : vector<1x1x1x1x4x4xf32> to vector<4x4xf32>
    %c8_421 = arith.constant 8 : index
    %c52_422 = arith.constant 52 : index
    %164 = vector.load %arg8[%c8_421, %c52_422] : memref<16x64xf32, #tpu.memory_space<vmem>>, vector<4x4xf32>
    tpu.vector_store %arg8[%c8_421, %c52_422], %163 {strides = array<i32>} : memref<16x64xf32, #tpu.memory_space<vmem>>, vector<4x4xf32>,
    %c0_423 = arith.constant 0 : index
    %c3_424 = arith.constant 3 : index
    %c3_425 = arith.constant 3 : index
    %c1_426 = arith.constant 1 : index
    %c0_427 = arith.constant 0 : index
    %c0_428 = arith.constant 0 : index
    %165 = vector.load %arg2[%c0_423, %c3_424, %c3_425, %c1_426, %c0_427, %c0_428] : memref<1x4x4x4x4x4xf32, #tpu.memory_space<vmem>>, vector<1x1x1x1x4x4xf32>
    %166 = vector.shape_cast %165 : vector<1x1x1x1x4x4xf32> to vector<4x4xf32>
    %c12_429 = arith.constant 12 : index
    %c52_430 = arith.constant 52 : index
    %167 = vector.load %arg8[%c12_429, %c52_430] : memref<16x64xf32, #tpu.memory_space<vmem>>, vector<4x4xf32>
    tpu.vector_store %arg8[%c12_429, %c52_430], %166 {strides = array<i32>} : memref<16x64xf32, #tpu.memory_space<vmem>>, vector<4x4xf32>,
    %c0_431 = arith.constant 0 : index
    %c3_432 = arith.constant 3 : index
    %c0_433 = arith.constant 0 : index
    %c2_434 = arith.constant 2 : index
    %c0_435 = arith.constant 0 : index
    %c0_436 = arith.constant 0 : index
    %168 = vector.load %arg2[%c0_431, %c3_432, %c0_433, %c2_434, %c0_435, %c0_436] : memref<1x4x4x4x4x4xf32, #tpu.memory_space<vmem>>, vector<1x1x1x1x4x4xf32>
    %169 = vector.shape_cast %168 : vector<1x1x1x1x4x4xf32> to vector<4x4xf32>
    %c0_437 = arith.constant 0 : index
    %c56 = arith.constant 56 : index
    %170 = vector.load %arg8[%c0_437, %c56] : memref<16x64xf32, #tpu.memory_space<vmem>>, vector<4x4xf32>
    tpu.vector_store %arg8[%c0_437, %c56], %169 {strides = array<i32>} : memref<16x64xf32, #tpu.memory_space<vmem>>, vector<4x4xf32>,
    %c0_438 = arith.constant 0 : index
    %c3_439 = arith.constant 3 : index
    %c1_440 = arith.constant 1 : index
    %c2_441 = arith.constant 2 : index
    %c0_442 = arith.constant 0 : index
    %c0_443 = arith.constant 0 : index
    %171 = vector.load %arg2[%c0_438, %c3_439, %c1_440, %c2_441, %c0_442, %c0_443] : memref<1x4x4x4x4x4xf32, #tpu.memory_space<vmem>>, vector<1x1x1x1x4x4xf32>
    %172 = vector.shape_cast %171 : vector<1x1x1x1x4x4xf32> to vector<4x4xf32>
    %c4_444 = arith.constant 4 : index
    %c56_445 = arith.constant 56 : index
    %173 = vector.load %arg8[%c4_444, %c56_445] : memref<16x64xf32, #tpu.memory_space<vmem>>, vector<4x4xf32>
    tpu.vector_store %arg8[%c4_444, %c56_445], %172 {strides = array<i32>} : memref<16x64xf32, #tpu.memory_space<vmem>>, vector<4x4xf32>,
    %c0_446 = arith.constant 0 : index
    %c3_447 = arith.constant 3 : index
    %c2_448 = arith.constant 2 : index
    %c2_449 = arith.constant 2 : index
    %c0_450 = arith.constant 0 : index
    %c0_451 = arith.constant 0 : index
    %174 = vector.load %arg2[%c0_446, %c3_447, %c2_448, %c2_449, %c0_450, %c0_451] : memref<1x4x4x4x4x4xf32, #tpu.memory_space<vmem>>, vector<1x1x1x1x4x4xf32>
    %175 = vector.shape_cast %174 : vector<1x1x1x1x4x4xf32> to vector<4x4xf32>
    %c8_452 = arith.constant 8 : index
    %c56_453 = arith.constant 56 : index
    %176 = vector.load %arg8[%c8_452, %c56_453] : memref<16x64xf32, #tpu.memory_space<vmem>>, vector<4x4xf32>
    tpu.vector_store %arg8[%c8_452, %c56_453], %175 {strides = array<i32>} : memref<16x64xf32, #tpu.memory_space<vmem>>, vector<4x4xf32>,
    %c0_454 = arith.constant 0 : index
    %c3_455 = arith.constant 3 : index
    %c3_456 = arith.constant 3 : index
    %c2_457 = arith.constant 2 : index
    %c0_458 = arith.constant 0 : index
    %c0_459 = arith.constant 0 : index
    %177 = vector.load %arg2[%c0_454, %c3_455, %c3_456, %c2_457, %c0_458, %c0_459] : memref<1x4x4x4x4x4xf32, #tpu.memory_space<vmem>>, vector<1x1x1x1x4x4xf32>
    %178 = vector.shape_cast %177 : vector<1x1x1x1x4x4xf32> to vector<4x4xf32>
    %c12_460 = arith.constant 12 : index
    %c56_461 = arith.constant 56 : index
    %179 = vector.load %arg8[%c12_460, %c56_461] : memref<16x64xf32, #tpu.memory_space<vmem>>, vector<4x4xf32>
    tpu.vector_store %arg8[%c12_460, %c56_461], %178 {strides = array<i32>} : memref<16x64xf32, #tpu.memory_space<vmem>>, vector<4x4xf32>,
    %c0_462 = arith.constant 0 : index
    %c3_463 = arith.constant 3 : index
    %c0_464 = arith.constant 0 : index
    %c3_465 = arith.constant 3 : index
    %c0_466 = arith.constant 0 : index
    %c0_467 = arith.constant 0 : index
    %180 = vector.load %arg2[%c0_462, %c3_463, %c0_464, %c3_465, %c0_466, %c0_467] : memref<1x4x4x4x4x4xf32, #tpu.memory_space<vmem>>, vector<1x1x1x1x4x4xf32>
    %181 = vector.shape_cast %180 : vector<1x1x1x1x4x4xf32> to vector<4x4xf32>
    %c0_468 = arith.constant 0 : index
    %c60 = arith.constant 60 : index
    %182 = vector.load %arg8[%c0_468, %c60] : memref<16x64xf32, #tpu.memory_space<vmem>>, vector<4x4xf32>
    tpu.vector_store %arg8[%c0_468, %c60], %181 {strides = array<i32>} : memref<16x64xf32, #tpu.memory_space<vmem>>, vector<4x4xf32>,
    %c0_469 = arith.constant 0 : index
    %c3_470 = arith.constant 3 : index
    %c1_471 = arith.constant 1 : index
    %c3_472 = arith.constant 3 : index
    %c0_473 = arith.constant 0 : index
    %c0_474 = arith.constant 0 : index
    %183 = vector.load %arg2[%c0_469, %c3_470, %c1_471, %c3_472, %c0_473, %c0_474] : memref<1x4x4x4x4x4xf32, #tpu.memory_space<vmem>>, vector<1x1x1x1x4x4xf32>
    %184 = vector.shape_cast %183 : vector<1x1x1x1x4x4xf32> to vector<4x4xf32>
    %c4_475 = arith.constant 4 : index
    %c60_476 = arith.constant 60 : index
    %185 = vector.load %arg8[%c4_475, %c60_476] : memref<16x64xf32, #tpu.memory_space<vmem>>, vector<4x4xf32>
    tpu.vector_store %arg8[%c4_475, %c60_476], %184 {strides = array<i32>} : memref<16x64xf32, #tpu.memory_space<vmem>>, vector<4x4xf32>,
    %c0_477 = arith.constant 0 : index
    %c3_478 = arith.constant 3 : index
    %c2_479 = arith.constant 2 : index
    %c3_480 = arith.constant 3 : index
    %c0_481 = arith.constant 0 : index
    %c0_482 = arith.constant 0 : index
    %186 = vector.load %arg2[%c0_477, %c3_478, %c2_479, %c3_480, %c0_481, %c0_482] : memref<1x4x4x4x4x4xf32, #tpu.memory_space<vmem>>, vector<1x1x1x1x4x4xf32>
    %187 = vector.shape_cast %186 : vector<1x1x1x1x4x4xf32> to vector<4x4xf32>
    %c8_483 = arith.constant 8 : index
    %c60_484 = arith.constant 60 : index
    %188 = vector.load %arg8[%c8_483, %c60_484] : memref<16x64xf32, #tpu.memory_space<vmem>>, vector<4x4xf32>
    tpu.vector_store %arg8[%c8_483, %c60_484], %187 {strides = array<i32>} : memref<16x64xf32, #tpu.memory_space<vmem>>, vector<4x4xf32>,
    %c0_485 = arith.constant 0 : index
    %c3_486 = arith.constant 3 : index
    %c3_487 = arith.constant 3 : index
    %c3_488 = arith.constant 3 : index
    %c0_489 = arith.constant 0 : index
    %c0_490 = arith.constant 0 : index
    %189 = vector.load %arg2[%c0_485, %c3_486, %c3_487, %c3_488, %c0_489, %c0_490] : memref<1x4x4x4x4x4xf32, #tpu.memory_space<vmem>>, vector<1x1x1x1x4x4xf32>
    %190 = vector.shape_cast %189 : vector<1x1x1x1x4x4xf32> to vector<4x4xf32>
    %c12_491 = arith.constant 12 : index
    %c60_492 = arith.constant 60 : index
    %191 = vector.load %arg8[%c12_491, %c60_492] : memref<16x64xf32, #tpu.memory_space<vmem>>, vector<4x4xf32>
    tpu.vector_store %arg8[%c12_491, %c60_492], %190 {strides = array<i32>} : memref<16x64xf32, #tpu.memory_space<vmem>>, vector<4x4xf32>,
    %c0_493 = arith.constant 0 : index
    %c0_494 = arith.constant 0 : index
    %192 = vector.load %arg8[%c0_493, %c0_494] : memref<16x64xf32, #tpu.memory_space<vmem>>, vector<16x64xf32>
    %c0_495 = arith.constant 0 : index
    %c0_496 = arith.constant 0 : index
    %193 = vector.load %arg3[%c0_495, %c0_496] : memref<64x128xf32, #tpu.memory_space<vmem>>, vector<64x128xf32>
    %cst = arith.constant dense<0.000000e+00> : vector<16x128xf32>
    %194 = tpu.matmul %192, %193, %cst {dimension_numbers = #tpu.dot_dimension_numbers<[1], [0], [0], [1], [0, 0, 1, 1], [], []>} : vector<16x64xf32>, vector<64x128xf32>, vector<16x128xf32> -> vector<16x128xf32>
    %c0_497 = arith.constant 0 : index
    %c0_498 = arith.constant 0 : index
    %195 = vector.load %arg4[%c0_497, %c0_498] : memref<1x128xf32, #tpu.memory_space<vmem>>, vector<1x128xf32>
    %196 = vector.broadcast %195 : vector<1x128xf32> to vector<16x128xf32>
    %197 = arith.addf %194, %196 : vector<16x128xf32>
    %cst_499 = arith.constant dense<0.000000e+00> : vector<16xf32>
    %198 = vector.multi_reduction <add>, %197, %cst_499 [1] : vector<16x128xf32> to vector<16xf32>
    %199 = vector.shape_cast %198 : vector<16xf32> to vector<16x1xf32>
    %cst_500 = arith.constant 3.125000e-02 : f32
    %200 = vector.broadcast %cst_500 : f32 to vector<16x1xf32>
    %201 = arith.mulf %199, %200 : vector<16x1xf32>
    %202 = arith.mulf %197, %197 : vector<16x128xf32>
    %cst_501 = arith.constant dense<0.000000e+00> : vector<16xf32>
    %203 = vector.multi_reduction <add>, %202, %cst_501 [1] : vector<16x128xf32> to vector<16xf32>
    %204 = vector.shape_cast %203 : vector<16xf32> to vector<16x1xf32>
    %cst_502 = arith.constant 3.125000e-02 : f32
    %205 = vector.broadcast %cst_502 : f32 to vector<16x1xf32>
    %206 = arith.mulf %204, %205 : vector<16x1xf32>
    %207 = arith.mulf %201, %201 : vector<16x1xf32>
    %208 = arith.subf %206, %207 : vector<16x1xf32>
    %cst_503 = arith.constant 0.000000e+00 : f32
    %209 = vector.broadcast %cst_503 : f32 to vector<16x1xf32>
    %210 = arith.maximumf %208, %209 : vector<16x1xf32>
    %cst_504 = arith.constant 9.99999974E-6 : f32
    %211 = vector.broadcast %cst_504 : f32 to vector<16x1xf32>
    %212 = arith.addf %210, %211 : vector<16x1xf32>
    %213 = math.rsqrt %212 : vector<16x1xf32>
    %214 = vector.broadcast %201 : vector<16x1xf32> to vector<16x128xf32>
    %215 = arith.subf %197, %214 : vector<16x128xf32>
    %216 = vector.broadcast %213 : vector<16x1xf32> to vector<16x128xf32>
    %217 = arith.mulf %215, %216 : vector<16x128xf32>
    %c0_505 = arith.constant 0 : index
    %c0_506 = arith.constant 0 : index
    %218 = vector.load %arg5[%c0_505, %c0_506] : memref<1x128xf32, #tpu.memory_space<vmem>>, vector<1x128xf32>
    %219 = vector.broadcast %218 : vector<1x128xf32> to vector<16x128xf32>
    %220 = arith.mulf %217, %219 : vector<16x128xf32>
    %c0_507 = arith.constant 0 : index
    %c0_508 = arith.constant 0 : index
    %221 = vector.load %arg6[%c0_507, %c0_508] : memref<1x128xf32, #tpu.memory_space<vmem>>, vector<1x128xf32>
    %222 = vector.broadcast %221 : vector<1x128xf32> to vector<16x128xf32>
    %223 = arith.addf %220, %222 : vector<16x128xf32>
    %c0_509 = arith.constant 0 : index
    %c0_510 = arith.constant 0 : index
    %c0_511 = arith.constant 0 : index
    %224 = vector.load %arg7[%c0_509, %c0_510, %c0_511] : memref<1x16x128xf32, #tpu.memory_space<vmem>>, vector<1x16x128xf32>
    %225 = vector.shape_cast %224 : vector<1x16x128xf32> to vector<16x128xf32>
    %226 = vector.shape_cast %223 : vector<16x128xf32> to vector<1x16x128xf32>
    tpu.vector_store %arg7[%c0_509, %c0_510, %c0_511], %226 {strides = array<i32>} : memref<1x16x128xf32, #tpu.memory_space<vmem>>, vector<1x16x128xf32>,
    return
  }
  func.func @transform_0(%arg0: i32, %arg1: i32) -> (i32, i32, i32, i32, i32, i32) {
    %c0_i32 = arith.constant 0 : i32
    %c0_i32_0 = arith.constant 0 : i32
    %c0_i32_1 = arith.constant 0 : i32
    %c0_i32_2 = arith.constant 0 : i32
    %c0_i32_3 = arith.constant 0 : i32
    return %arg0, %c0_i32, %arg1, %c0_i32_0, %c0_i32_1, %c0_i32_2 : i32, i32, i32, i32, i32, i32
  }
  func.func @transform_1(%arg0: i32, %arg1: i32) -> (i32, i32) {
    %c0_i32 = arith.constant 0 : i32
    %c0_i32_0 = arith.constant 0 : i32
    %c0_i32_1 = arith.constant 0 : i32
    return %c0_i32, %c0_i32_0 : i32, i32
  }
  func.func @transform_2(%arg0: i32, %arg1: i32) -> (i32, i32) {
    %c0_i32 = arith.constant 0 : i32
    %c0_i32_0 = arith.constant 0 : i32
    %c0_i32_1 = arith.constant 0 : i32
    return %c0_i32, %c0_i32_0 : i32, i32
  }
  func.func @transform_3(%arg0: i32, %arg1: i32) -> (i32, i32) {
    %c0_i32 = arith.constant 0 : i32
    %c0_i32_0 = arith.constant 0 : i32
    %c0_i32_1 = arith.constant 0 : i32
    return %c0_i32, %c0_i32_0 : i32, i32
  }
  func.func @transform_4(%arg0: i32, %arg1: i32) -> (i32, i32) {
    %c0_i32 = arith.constant 0 : i32
    %c0_i32_0 = arith.constant 0 : i32
    %c0_i32_1 = arith.constant 0 : i32
    return %c0_i32, %c0_i32_0 : i32, i32
  }
  func.func @transform_5(%arg0: i32, %arg1: i32) -> (i32, i32, i32) {
    %c0_i32 = arith.constant 0 : i32
    %c0_i32_0 = arith.constant 0 : i32
    return %arg0, %arg1, %c0_i32 : i32, i32, i32
  }
}

module attributes {stable_mosaic.version = 11 : i64} {
  func.func @kernel(%arg0: i32, %arg1: memref<32x64xf32, #tpu.memory_space<vmem>>, %arg2: memref<64x128xf32, #tpu.memory_space<vmem>>, %arg3: memref<1x128xf32, #tpu.memory_space<vmem>>, %arg4: memref<1x128xf32, #tpu.memory_space<vmem>>, %arg5: memref<1x128xf32, #tpu.memory_space<vmem>>, %arg6: memref<32x128xf32, #tpu.memory_space<vmem>>) attributes {dimension_semantics = [#tpu.dimension_semantics<parallel>], iteration_bounds = array<i64: 1>, scalar_prefetch = 0 : i64, scratch_operands = 0 : i64, tpu.core_type = #tpu.core_type<tc>, window_params = [{transform_indices = @transform_0, window_bounds = array<i64: 32, 64>}, {pipeline_mode = #tpu.pipeline_mode<synchronous>, transform_indices = @transform_1, window_bounds = array<i64: 64, 128>}, {pipeline_mode = #tpu.pipeline_mode<synchronous>, transform_indices = @transform_2, window_bounds = array<i64: 1, 128>}, {pipeline_mode = #tpu.pipeline_mode<synchronous>, transform_indices = @transform_3, window_bounds = array<i64: 1, 128>}, {pipeline_mode = #tpu.pipeline_mode<synchronous>, transform_indices = @transform_4, window_bounds = array<i64: 1, 128>}, {transform_indices = @transform_5, window_bounds = array<i64: 32, 128>}]} {
    %c0 = arith.constant 0 : index
    %c0_0 = arith.constant 0 : index
    %0 = vector.load %arg1[%c0, %c0_0] : memref<32x64xf32, #tpu.memory_space<vmem>>, vector<32x64xf32>
    %c0_1 = arith.constant 0 : index
    %c0_2 = arith.constant 0 : index
    %1 = vector.load %arg2[%c0_1, %c0_2] : memref<64x128xf32, #tpu.memory_space<vmem>>, vector<64x128xf32>
    %cst = arith.constant dense<0.000000e+00> : vector<32x128xf32>
    %2 = tpu.matmul %0, %1, %cst {dimension_numbers = #tpu.dot_dimension_numbers<[1], [0], [0], [1], [0, 0, 1, 1], [], []>} : vector<32x64xf32>, vector<64x128xf32>, vector<32x128xf32> -> vector<32x128xf32>
    %c0_3 = arith.constant 0 : index
    %c0_4 = arith.constant 0 : index
    %3 = vector.load %arg3[%c0_3, %c0_4] : memref<1x128xf32, #tpu.memory_space<vmem>>, vector<1x128xf32>
    %4 = vector.broadcast %3 : vector<1x128xf32> to vector<32x128xf32>
    %5 = arith.addf %2, %4 : vector<32x128xf32>
    %cst_5 = arith.constant dense<0.000000e+00> : vector<32xf32>
    %6 = vector.multi_reduction <add>, %5, %cst_5 [1] : vector<32x128xf32> to vector<32xf32>
    %7 = vector.shape_cast %6 : vector<32xf32> to vector<32x1xf32>
    %cst_6 = arith.constant 3.125000e-02 : f32
    %8 = vector.broadcast %cst_6 : f32 to vector<32x1xf32>
    %9 = arith.mulf %7, %8 : vector<32x1xf32>
    %10 = arith.mulf %5, %5 : vector<32x128xf32>
    %cst_7 = arith.constant dense<0.000000e+00> : vector<32xf32>
    %11 = vector.multi_reduction <add>, %10, %cst_7 [1] : vector<32x128xf32> to vector<32xf32>
    %12 = vector.shape_cast %11 : vector<32xf32> to vector<32x1xf32>
    %cst_8 = arith.constant 3.125000e-02 : f32
    %13 = vector.broadcast %cst_8 : f32 to vector<32x1xf32>
    %14 = arith.mulf %12, %13 : vector<32x1xf32>
    %15 = arith.mulf %9, %9 : vector<32x1xf32>
    %16 = arith.subf %14, %15 : vector<32x1xf32>
    %cst_9 = arith.constant 0.000000e+00 : f32
    %17 = vector.broadcast %cst_9 : f32 to vector<32x1xf32>
    %18 = arith.maximumf %16, %17 : vector<32x1xf32>
    %cst_10 = arith.constant 9.99999974E-6 : f32
    %19 = vector.broadcast %cst_10 : f32 to vector<32x1xf32>
    %20 = arith.addf %18, %19 : vector<32x1xf32>
    %21 = math.rsqrt %20 : vector<32x1xf32>
    %22 = vector.broadcast %9 : vector<32x1xf32> to vector<32x128xf32>
    %23 = arith.subf %5, %22 : vector<32x128xf32>
    %24 = vector.broadcast %21 : vector<32x1xf32> to vector<32x128xf32>
    %25 = arith.mulf %23, %24 : vector<32x128xf32>
    %c0_11 = arith.constant 0 : index
    %c0_12 = arith.constant 0 : index
    %26 = vector.load %arg4[%c0_11, %c0_12] : memref<1x128xf32, #tpu.memory_space<vmem>>, vector<1x128xf32>
    %27 = vector.broadcast %26 : vector<1x128xf32> to vector<32x128xf32>
    %28 = arith.mulf %25, %27 : vector<32x128xf32>
    %c0_13 = arith.constant 0 : index
    %c0_14 = arith.constant 0 : index
    %29 = vector.load %arg5[%c0_13, %c0_14] : memref<1x128xf32, #tpu.memory_space<vmem>>, vector<1x128xf32>
    %30 = vector.broadcast %29 : vector<1x128xf32> to vector<32x128xf32>
    %31 = arith.addf %28, %30 : vector<32x128xf32>
    %c0_15 = arith.constant 0 : index
    %c0_16 = arith.constant 0 : index
    %32 = vector.load %arg6[%c0_15, %c0_16] : memref<32x128xf32, #tpu.memory_space<vmem>>, vector<32x128xf32>
    tpu.vector_store %arg6[%c0_15, %c0_16], %31 {strides = array<i32>} : memref<32x128xf32, #tpu.memory_space<vmem>>, vector<32x128xf32>,
    return
  }
  func.func @transform_0(%arg0: i32) -> (i32, i32) {
    %c0_i32 = arith.constant 0 : i32
    %c0_i32_0 = arith.constant 0 : i32
    return %arg0, %c0_i32 : i32, i32
  }
  func.func @transform_1(%arg0: i32) -> (i32, i32) {
    %c0_i32 = arith.constant 0 : i32
    %c0_i32_0 = arith.constant 0 : i32
    %c0_i32_1 = arith.constant 0 : i32
    return %c0_i32, %c0_i32_0 : i32, i32
  }
  func.func @transform_2(%arg0: i32) -> (i32, i32) {
    %c0_i32 = arith.constant 0 : i32
    %c0_i32_0 = arith.constant 0 : i32
    %c0_i32_1 = arith.constant 0 : i32
    return %c0_i32, %c0_i32_0 : i32, i32
  }
  func.func @transform_3(%arg0: i32) -> (i32, i32) {
    %c0_i32 = arith.constant 0 : i32
    %c0_i32_0 = arith.constant 0 : i32
    %c0_i32_1 = arith.constant 0 : i32
    return %c0_i32, %c0_i32_0 : i32, i32
  }
  func.func @transform_4(%arg0: i32) -> (i32, i32) {
    %c0_i32 = arith.constant 0 : i32
    %c0_i32_0 = arith.constant 0 : i32
    %c0_i32_1 = arith.constant 0 : i32
    return %c0_i32, %c0_i32_0 : i32, i32
  }
  func.func @transform_5(%arg0: i32) -> (i32, i32) {
    %c0_i32 = arith.constant 0 : i32
    %c0_i32_0 = arith.constant 0 : i32
    return %arg0, %c0_i32 : i32, i32
  }
}

module attributes {stable_mosaic.version = 11 : i64} {
  func.func @kernel(%arg0: i32, %arg1: memref<32x64xf32, #tpu.memory_space<vmem>>, %arg2: memref<64x128xf32, #tpu.memory_space<vmem>>, %arg3: memref<1x128xf32, #tpu.memory_space<vmem>>, %arg4: memref<1x128xf32, #tpu.memory_space<vmem>>, %arg5: memref<1x128xf32, #tpu.memory_space<vmem>>, %arg6: memref<32x128xf32, #tpu.memory_space<vmem>>) attributes {dimension_semantics = [#tpu.dimension_semantics<parallel>], iteration_bounds = array<i64: 1>, scalar_prefetch = 0 : i64, scratch_operands = 0 : i64, tpu.core_type = #tpu.core_type<tc>, window_params = [{transform_indices = @transform_0, window_bounds = array<i64: 32, 64>}, {pipeline_mode = #tpu.pipeline_mode<synchronous>, transform_indices = @transform_1, window_bounds = array<i64: 64, 128>}, {pipeline_mode = #tpu.pipeline_mode<synchronous>, transform_indices = @transform_2, window_bounds = array<i64: 1, 128>}, {pipeline_mode = #tpu.pipeline_mode<synchronous>, transform_indices = @transform_3, window_bounds = array<i64: 1, 128>}, {pipeline_mode = #tpu.pipeline_mode<synchronous>, transform_indices = @transform_4, window_bounds = array<i64: 1, 128>}, {transform_indices = @transform_5, window_bounds = array<i64: 32, 128>}]} {
    %c0 = arith.constant 0 : index
    %c0_0 = arith.constant 0 : index
    %0 = vector.load %arg1[%c0, %c0_0] : memref<32x64xf32, #tpu.memory_space<vmem>>, vector<32x64xf32>
    %c0_1 = arith.constant 0 : index
    %c0_2 = arith.constant 0 : index
    %1 = vector.load %arg2[%c0_1, %c0_2] : memref<64x128xf32, #tpu.memory_space<vmem>>, vector<64x128xf32>
    %cst = arith.constant dense<0.000000e+00> : vector<32x128xf32>
    %2 = tpu.matmul %0, %1, %cst {dimension_numbers = #tpu.dot_dimension_numbers<[1], [0], [0], [1], [0, 0, 1, 1], [], []>} : vector<32x64xf32>, vector<64x128xf32>, vector<32x128xf32> -> vector<32x128xf32>
    %c0_3 = arith.constant 0 : index
    %c0_4 = arith.constant 0 : index
    %3 = vector.load %arg3[%c0_3, %c0_4] : memref<1x128xf32, #tpu.memory_space<vmem>>, vector<1x128xf32>
    %4 = vector.broadcast %3 : vector<1x128xf32> to vector<32x128xf32>
    %5 = arith.addf %2, %4 : vector<32x128xf32>
    %cst_5 = arith.constant dense<0.000000e+00> : vector<32xf32>
    %6 = vector.multi_reduction <add>, %5, %cst_5 [1] : vector<32x128xf32> to vector<32xf32>
    %7 = vector.shape_cast %6 : vector<32xf32> to vector<32x1xf32>
    %cst_6 = arith.constant 3.125000e-02 : f32
    %8 = vector.broadcast %cst_6 : f32 to vector<32x1xf32>
    %9 = arith.mulf %7, %8 : vector<32x1xf32>
    %10 = arith.mulf %5, %5 : vector<32x128xf32>
    %cst_7 = arith.constant dense<0.000000e+00> : vector<32xf32>
    %11 = vector.multi_reduction <add>, %10, %cst_7 [1] : vector<32x128xf32> to vector<32xf32>
    %12 = vector.shape_cast %11 : vector<32xf32> to vector<32x1xf32>
    %cst_8 = arith.constant 3.125000e-02 : f32
    %13 = vector.broadcast %cst_8 : f32 to vector<32x1xf32>
    %14 = arith.mulf %12, %13 : vector<32x1xf32>
    %15 = arith.mulf %9, %9 : vector<32x1xf32>
    %16 = arith.subf %14, %15 : vector<32x1xf32>
    %cst_9 = arith.constant 0.000000e+00 : f32
    %17 = vector.broadcast %cst_9 : f32 to vector<32x1xf32>
    %18 = arith.maximumf %16, %17 : vector<32x1xf32>
    %cst_10 = arith.constant 9.99999974E-6 : f32
    %19 = vector.broadcast %cst_10 : f32 to vector<32x1xf32>
    %20 = arith.addf %18, %19 : vector<32x1xf32>
    %21 = math.rsqrt %20 : vector<32x1xf32>
    %22 = vector.broadcast %9 : vector<32x1xf32> to vector<32x128xf32>
    %23 = arith.subf %5, %22 : vector<32x128xf32>
    %24 = vector.broadcast %21 : vector<32x1xf32> to vector<32x128xf32>
    %25 = arith.mulf %23, %24 : vector<32x128xf32>
    %c0_11 = arith.constant 0 : index
    %c0_12 = arith.constant 0 : index
    %26 = vector.load %arg4[%c0_11, %c0_12] : memref<1x128xf32, #tpu.memory_space<vmem>>, vector<1x128xf32>
    %27 = vector.broadcast %26 : vector<1x128xf32> to vector<32x128xf32>
    %28 = arith.mulf %25, %27 : vector<32x128xf32>
    %c0_13 = arith.constant 0 : index
    %c0_14 = arith.constant 0 : index
    %29 = vector.load %arg5[%c0_13, %c0_14] : memref<1x128xf32, #tpu.memory_space<vmem>>, vector<1x128xf32>
    %30 = vector.broadcast %29 : vector<1x128xf32> to vector<32x128xf32>
    %31 = arith.addf %28, %30 : vector<32x128xf32>
    %c0_15 = arith.constant 0 : index
    %c0_16 = arith.constant 0 : index
    %32 = vector.load %arg6[%c0_15, %c0_16] : memref<32x128xf32, #tpu.memory_space<vmem>>, vector<32x128xf32>
    tpu.vector_store %arg6[%c0_15, %c0_16], %31 {strides = array<i32>} : memref<32x128xf32, #tpu.memory_space<vmem>>, vector<32x128xf32>,
    return
  }
  func.func @transform_0(%arg0: i32) -> (i32, i32) {
    %c0_i32 = arith.constant 0 : i32
    %c0_i32_0 = arith.constant 0 : i32
    return %arg0, %c0_i32 : i32, i32
  }
  func.func @transform_1(%arg0: i32) -> (i32, i32) {
    %c0_i32 = arith.constant 0 : i32
    %c0_i32_0 = arith.constant 0 : i32
    %c0_i32_1 = arith.constant 0 : i32
    return %c0_i32, %c0_i32_0 : i32, i32
  }
  func.func @transform_2(%arg0: i32) -> (i32, i32) {
    %c0_i32 = arith.constant 0 : i32
    %c0_i32_0 = arith.constant 0 : i32
    %c0_i32_1 = arith.constant 0 : i32
    return %c0_i32, %c0_i32_0 : i32, i32
  }
  func.func @transform_3(%arg0: i32) -> (i32, i32) {
    %c0_i32 = arith.constant 0 : i32
    %c0_i32_0 = arith.constant 0 : i32
    %c0_i32_1 = arith.constant 0 : i32
    return %c0_i32, %c0_i32_0 : i32, i32
  }
  func.func @transform_4(%arg0: i32) -> (i32, i32) {
    %c0_i32 = arith.constant 0 : i32
    %c0_i32_0 = arith.constant 0 : i32
    %c0_i32_1 = arith.constant 0 : i32
    return %c0_i32, %c0_i32_0 : i32, i32
  }
  func.func @transform_5(%arg0: i32) -> (i32, i32) {
    %c0_i32 = arith.constant 0 : i32
    %c0_i32_0 = arith.constant 0 : i32
    return %arg0, %c0_i32 : i32, i32
  }
}

</mosaic_0001>

<bundles_post_ra>
// kernel: tpu_custom_call.1
= control target key start
LH: loop header
LB: loop body
LE: loop exit
PB: predicated region body
PF: predicated region fallthrough
CT: control target
= control target key end

     0   :  { %10 = vsyncpa [#allocation4], 0  ;;  %s1714_s0 = inlined_call_operand.hbm [shape: f32[2,4,4,4,4,4], index: 0, kind: input, shape index: {}]   ;;  %s1715_s1 = inlined_call_operand.hbm [shape: f32[64,128], index: 1, kind: input, shape index: {}]   ;;  %s1716_s2 = inlined_call_operand.vmem [shape: f32[1,128], index: 2, kind: input, shape index: {}]   ;;  %s1717_s3 = inlined_call_operand.vmem [shape: f32[1,128], index: 3, kind: input, shape index: {}]   ;;  %s1718_s4 = inlined_call_operand.vmem [shape: f32[1,128], index: 4, kind: input, shape index: {}]   ;;  %s1719_s5 = inlined_call_operand.hbm [shape: f32[2,16,128], index: 5, kind: output, shape index: {}]  }
   0x1   :  { %12 = vsyncpa [#allocation4 + $0x1], 0 }
   0x2   :  { %13 = vsyncpa [#allocation7], 0 }
   0x3   :  { %14 = vsyncpa [#allocation5], 0 }
   0x4   :  { %16 = vsyncpa [#allocation5 + $0x1], 0  ;;  %s1414_s18 = smov 0   ;;  %s1416_s19 = smov 0  }
   0x5   :  { %s1418_s20 = smov 0   ;;  %s1420_s21 = smov 0  }
   0x6   :  { %s1422_s22 = smov 0   ;;  %s1424_s23 = smov 0  }
   0x7 LB: > { %s986_s24 = sadd.s32 4294967295, %s1359_s23   ;;  %s987_s25 = sadd.s32 4294967294, %s1359_s23   ;;  %s1359_s23 = sphi %s1424_s23, %s22_s23   ;;  %s1355_s22 = sphi %s1422_s22, %s1743_s22   ;;  %s1351_s21 = sphi %s1420_s21, %s1742_s21   ;;  %s1347_s20 = sphi %s1418_s20, %s1741_s20   ;;  %s1343_s19 = sphi %s1416_s19, %s1740_s19   ;;  %s1339_s18 = sphi %s1414_s18, %s1739_s18  }
   0x8   : > { %p56_p0 = scmp.ne.s32.totalorder %s1343_s19, %s1339_s18  ;;  %p1448_p1 = scmp.eq.s32.totalorder %s986_s24, 0 }
   0x9   : > { %p1452_p2 = scmp.eq.s32.totalorder %s986_s24, 1  ;;  %p172_p3 = scmp.eq.s32.totalorder %s987_s25, 1 }
   0xa   : > { %s1724_s26 = scalar_select %p1448_p1, 1, 0 }
   0xb   : > { %s1725_s27 = scalar_select %p1452_p2, 1, 0 }
   0xc   : > { %p1458_p4 = por %p1448_p1, %p56_p0  ;;  %p988_p5 = scmp.ge.s32.totalorder %s1359_s23, 1 }
   0xd   : > { %p1463_p6 = por %p172_p3, %p56_p0  ;;  %p179_p7 = scmp.lt.s32.totalorder %s1359_s23, 3 }
   0xe   : > { %s1726_s28 = scalar_select %p1458_p4, 1, 0 }
   0xf   : > { %s1727_s29 = scalar_select %p1463_p6, 1, 0 }
  0x10   : > { %p1468_p8 = pnand %p988_p5, %p179_p7  ;;  %s1361_s6 = smov [#allocation6]  }
  0x11   : > { %s191_s7 = sshll.u32 %s1361_s6, 4  ;;  %s34_s9 = sadd.s32 1, %s1355_s22  ;;  %s192_s7 = int_to_ptr.vmem [resolvable:$true] %s191_s7 }
  0x12   : > { %s1728_s30 = scalar_select %p1468_p8, 1, 0 }
  0x13   : > { %p1126_p9 = pneg %p1468_p8  ;;  %s1215_s12 = scalar_lea.hbm %s1715_s1, 1024 }
  0x14   : > { %p1216_p12 = scmp.ne.s32.totalorder %s1715_s1, %s1215_s12  ;;  %p1222_p5 = scmp.lt.u32.totalorder %s1215_s12, %s1715_s1 }
  0x15   : > { %p1477_p11 = pnand %p1126_p9, %p1448_p1 }
  0x17   : > { %p1217_p13 = pneg %p1477_p11 }
  0x19   : > { %p1218_p0 = pnand %p1217_p13, %p1216_p12 }
  0x1b   : > { %p1219_p3 = pneg %p1218_p0 }
  0x1d   : > { %p1224_p7 = pnand %p1222_p5, %p1219_p3 }
  0x1f   : > { %1227 = shalt.err (!%p1224_p7)
}
  0x20   : > { %s1228_s17 = scalar_lea.vmem %s192_s7, 1024  ;;  %p1236_p1 = scmp.lt.s32.totalorder %s192_s7, %s192_s7 }
  0x21   : > { %p1229_p9 = scmp.ne.s32.totalorder %s192_s7, %s1228_s17  ;;  %p1237_p4 = scmp.lt.s32.totalorder %s1228_s17, %s1228_s17 }
  0x23   : > { %p1231_p10 = pnand %p1229_p9, %p1217_p13  ;;  %p1238_p8 = por %p1237_p4, %p1236_p1 }
  0x25   : > { %p1232_p6 = pneg %p1231_p10 }
  0x27   : > { %p1239_p2 = pnand %p1238_p8, %p1232_p6 }
  0x29   : > { %1242 = shalt.err (!%p1239_p2)
}
  0x2a   : > { %s1362_s24 = smov 128   ;;  %s1363_s25 = smov 8  }
  0x2b   : > { %1129 = dma.hbm_to_vmem [thread:$0]  (!%p1477_p11), %s1715_s1, 1024, %s192_s7, [#allocation7], %s1362_s24, %s1362_s24, %s1363_s25  }
  0x2c   : > { %p36_p1 = scmp.ge.s32.totalorder %s34_s9, 2  ;;  %s43_s11 = sadd.s32 1, %s1347_s20 }
  0x2d   : > { %p50_p2 = scmp.ne.s32.totalorder %s1347_s20, %s1343_s19  ;;  %p51_p4 = scmp.eq.s32.totalorder %s1359_s23, 0 }
  0x2e   : > { %s1745_s9 = smov (%p36_p1, %s34_s9), 0  ;;  %p1731_p8 = scmp.ne.s32.totalorder %s1725_s27, 0 }
  0x2f   : > { %p1504_p6 = por %p51_p4, %p50_p2  ;;  %s38_s8 = ssub.s32 %s1355_s22, %s1745_s9 }
  0x30   : > { %p1510_p10 = por %p1731_p8, %p50_p2  ;;  %p1139_p12 = scmp.lt.s32.totalorder %s1359_s23, 2 }
  0x31   : > { %p41_p11 = scmp.eq.s32.totalorder %s38_s8, 0  ;;  %s214_s7 = sand.u32 1, %s1347_s20  }
  0x32   : > { %s991_s14 = sshll.u32 %s214_s7, 8  ;;  %s1071_s16 = sshll.u32 %s1355_s22, 12 }
  0x33   : > { %s1519_s15 = scalar_select %p41_p11, %s1347_s20, %s43_s11  }
  0x34   : > { %s1525_s25 = scalar_lea.hbm %s1714_s0, %s1071_s16  ;;  %s218_s27 = scalar_lea.vmem [#allocation3], %s991_s14 }
  0x35   : > { %s228_s6 = sshll.u32 %s218_s27, 4  ;;  %p1531_p13 = pnand %p1139_p12, %p1504_p6  ;;  %s1527_s6 = int_to_ptr.vmem [resolvable:$true] %s228_s6 }
  0x36   : > { %s1535_s11 = scalar_lea.sflag [#allocation4], %s214_s7  ;;  %s1243_s8 = scalar_lea.hbm %s1525_s25, 4096 }
  0x37   : > { %p1244_p0 = scmp.ne.s32.totalorder %s1525_s25, %s1243_s8  ;;  %p1245_p3 = pneg %p1531_p13 }
  0x38   : > { %s1248_s12 = scalar_lea.hbm %s1714_s0, 8192  ;;  %p1249_p9 = scmp.lt.u32.totalorder %s1525_s25, %s1714_s0 }
  0x39   : > { %p1246_p5 = pnand %p1245_p3, %p1244_p0  ;;  %p1250_p1 = scmp.lt.u32.totalorder %s1248_s12, %s1243_s8 }
  0x3a   : > { %p1252_p4 = scmp.lt.u32.totalorder %s1243_s8, %s1525_s25 }
  0x3b   : > { %p1247_p7 = pneg %p1246_p5  ;;  %p1251_p2 = por %p1250_p1, %p1249_p9 }
  0x3d   : > { %p1253_p6 = por %p1252_p4, %p1251_p2 }
  0x3f   : > { %p1254_p8 = pnand %p1253_p6, %p1247_p7 }
  0x41   : > { %1257 = shalt.err (!%p1254_p8)
}
  0x42   : > { %s1258_s7 = scalar_lea.vmem %s1527_s6, 4096  ;;  %s1364_s27 = smov [#allocation3]  }
  0x43   : > { %p1259_p12 = scmp.ne.s32.totalorder %s1527_s6, %s1258_s7  ;;  %s1263_s14 = sshll.u32 %s1364_s27, 4  ;;  %s1264_s14 = int_to_ptr.vmem [resolvable:$false] %s1263_s14 }
  0x44   : > { %s1265_s16 = scalar_lea.vmem %s1264_s14, 8192  ;;  %p1266_p5 = scmp.lt.s32.totalorder %s1527_s6, %s1264_s14 }
  0x45   : > { %p1261_p11 = pnand %p1259_p12, %p1245_p3  ;;  %p1267_p9 = scmp.lt.s32.totalorder %s1265_s16, %s1258_s7 }
  0x47   : > { %p1262_p0 = pneg %p1261_p11  ;;  %p1268_p1 = por %p1267_p9, %p1266_p5 }
  0x49   : > { %p1269_p2 = pnand %p1268_p1, %p1262_p0 }
  0x4b   : > { %1272 = shalt.err (!%p1269_p2)
}
  0x4c   : > { %s1365_s8 = smov 64   ;;  %s1366_s12 = smov 4  }
  0x4d   : > { %1133 = dma.hbm_to_vmem [thread:$0]  (!%p1531_p13), %s1525_s25, 4096, %s1527_s6, %s1535_s11, %s1365_s8, %s1365_s8, %s1366_s12  }
  0x4e   : > { %p1734_p3 = scmp.ne.s32.totalorder %s1728_s30, 0 }
  0x4f   : > { %s1566_s17 = sand.u32 (!%p1734_p3), 1, %s1343_s19   ;;  %p1735_p7 = scmp.ne.s32.totalorder (!%p1734_p3), %s1726_s28, 0 }
  0x50   : > { %240 = sbr.rel (%p1734_p3) target bundleno = 737 (0x2e1), region = 40  ;;  %s995_s24 = sshll.u32 (!%p1734_p3), %s1566_s17, 8 }
  0x51   : > { %s243_s7 = scalar_lea.sflag (!%p1734_p3), [#allocation4], %s1566_s17  ;;  %s1570_s27 = scalar_lea.vmem (!%p1734_p3), [#allocation3], %s995_s24 }
  0x57   : > { %1326 = dma.done.wait (%p1735_p7), %s243_s7, 4096  }
  0x58   : > { %1328 = vsyncadd (%p1735_p7), %s243_s7, 4294963200  ;;  %p1736_p13 = scmp.ne.s32.totalorder %s1724_s26, 0 }
  0x5a   : > { %1330 = dma.done.wait (%p1736_p13), [#allocation7], 1024  }
  0x5b   : > { %1332 = vsyncadd (%p1736_p13), [#allocation7], 4294966272  ;;  %v1003_v0 = vld [vmem:[%s1570_s27 + $0x24] sm:$0xf]  ;;  %s1367_s30 = smov 4   ;;  %s1368_s26 = smov 8  }
  0x5c   : > { %v1001_v1 = vld [vmem:[%s1570_s27 + $0x4] sm:$0xf]  ;;  %309 = vrot.lane.b32.xlu1 %v1003_v0, %s1367_s30  ;;  %v1004_v2 = vld [vmem:[%s1570_s27 + $0x34] sm:$0xf]  ;;  %v1006_v4 = vld [vmem:[%s1570_s27 + $0x18] sm:$0xf] }
  0x5d   : > { %294 = vrot.lane.b32.xlu0 %v1001_v1, %s1367_s30  ;;  %v1002_v3 = vld [vmem:[%s1570_s27 + $0x14] sm:$0xf]  ;;  %v1005_v5 = vld [vmem:[%s1570_s27 + $0x8] sm:$0xf]  ;;  %v1008_v6 = vld [vmem:[%s1570_s27 + $0x38] sm:$0xf] }
  0x5e   : > { %v1007_v7 = vld [vmem:[%s1570_s27 + $0x28] sm:$0xf]  ;;  %v1010_v8 = vld [vmem:[%s1570_s27 + $0x1c] sm:$0xf]  ;;  %v1009_v9 = vld [vmem:[%s1570_s27 + $0xc] sm:$0xf] }
  0x5f   : > { %s1369_s28 = smov 12   ;;  %v1012_v10 = vld [vmem:[%s1570_s27 + $0x3c] sm:$0xf]  ;;  %v1011_v11 = vld [vmem:[%s1570_s27 + $0x2c] sm:$0xf]  ;;  %vm280_vm0 = vcmask 27648  }
  0x60   : > { %316 = vrot.lane.b32.xlu1 %v1004_v2, %s1367_s30  ;;  %v999_v12 = vld [vmem:[%s1570_s27 + $0x20] sm:$0xf]  ;;  %v1014_v14 = vld [vmem:[%s1570_s27 + $0x50] sm:$0xf]  ;;  %s1370_s25 = smov 16   ;;  %s1371_s6 = smov 20  }
  0x61   : > { %302 = vrot.lane.b32.xlu0 %v1002_v3, %s1367_s30  ;;  %v279_v13 = vld [vmem:[%s1570_s27] sm:$0xf]  ;;  %287 = vst.msk [vmem:[#allocation2 + $0x8] sm:$0xf] %vm280_vm0, %v999_v12  ;;  %v1000_v16 = vld [vmem:[%s1570_s27 + $0x30] sm:$0xf] }
  0x62   : > { %v1013_v15 = vld [vmem:[%s1570_s27 + $0x40] sm:$0xf]  ;;  %281 = vst.msk [vmem:[#allocation2] sm:$0xf] %vm280_vm0, %v279_v13  ;;  %290 = vst.msk [vmem:[#allocation2 + $0xc] sm:$0xf] %vm280_vm0, %v1000_v16 }
  0x63   : > { %v998_v17 = vld [vmem:[%s1570_s27 + $0x10] sm:$0xf]  ;;  %v1015_v19 = vld [vmem:[%s1570_s27 + $0x60] sm:$0xf]  ;;  %v1018_v20 = vld [vmem:[%s1570_s27 + $0x54] sm:$0xf] }
  0x64   : > { %331 = vrot.lane.b32.xlu1 %v1006_v4, %s1368_s26  ;;  %284 = vst.msk [vmem:[#allocation2 + $0x4] sm:$0xf] %vm280_vm0, %v998_v17  ;;  %v1016_v18 = vld [vmem:[%s1570_s27 + $0x70] sm:$0xf]  ;;  %v1017_v21 = vld [vmem:[%s1570_s27 + $0x44] sm:$0xf] }
  0x65   : > { %323 = vrot.lane.b32.xlu0 %v1005_v5, %s1368_s26  ;;  %v1020_v22 = vld [vmem:[%s1570_s27 + $0x74] sm:$0xf]  ;;  %v1019_v23 = vld [vmem:[%s1570_s27 + $0x64] sm:$0xf]  ;;  %v1022_v24 = vld [vmem:[%s1570_s27 + $0x58] sm:$0xf] }
  0x66   : > { %v1021_v25 = vld [vmem:[%s1570_s27 + $0x48] sm:$0xf]  ;;  %s1372_s10 = smov 24   ;;  %v1024_v26 = vld [vmem:[%s1570_s27 + $0x78] sm:$0xf]  ;;  %s1373_s11 = smov 28  }
  0x67   : > { %v1023_v27 = vld [vmem:[%s1570_s27 + $0x68] sm:$0xf]  ;;  %v1026_v28 = vld [vmem:[%s1570_s27 + $0x5c] sm:$0xf]  ;;  %v1025_v29 = vld [vmem:[%s1570_s27 + $0x4c] sm:$0xf] }
  0x68   : > { %345 = vrot.lane.b32.xlu1 %v1008_v6, %s1368_s26  ;;  %v1028_v30 = vld [vmem:[%s1570_s27 + $0x7c] sm:$0xf]  ;;  %v1027_v31 = vld [vmem:[%s1570_s27 + $0x6c] sm:$0xf]  ;;  %v1030_v32 = vld [vmem:[%s1570_s27 + $0x90] sm:$0xf] }
  0x69   : > { %338 = vrot.lane.b32.xlu0 %v1007_v7, %s1368_s26  ;;  %v1029_v33 = vld [vmem:[%s1570_s27 + $0x80] sm:$0xf]  ;;  %s1374_s14 = smov 32   ;;  %v1032_v34 = vld [vmem:[%s1570_s27 + $0xb0] sm:$0xf]  ;;  %s1375_s16 = smov 36  }
  0x6a   : > { %v1031_v35 = vld [vmem:[%s1570_s27 + $0xa0] sm:$0xf]  ;;  %v1034_v36 = vld [vmem:[%s1570_s27 + $0x94] sm:$0xf]  ;;  %v1033_v37 = vld [vmem:[%s1570_s27 + $0x84] sm:$0xf] }
  0x6b   : > { %v1036_v38 = vld [vmem:[%s1570_s27 + $0xb4] sm:$0xf]  ;;  %v1035_v39 = vld [vmem:[%s1570_s27 + $0xa4] sm:$0xf]  ;;  %v1038_v40 = vld [vmem:[%s1570_s27 + $0x98] sm:$0xf] }
  0x6c   : > { %360 = vrot.lane.b32.xlu1 %v1010_v8, %s1369_s28  ;;  %v1037_v41 = vld [vmem:[%s1570_s27 + $0x88] sm:$0xf]  ;;  %s1376_s8 = smov 40   ;;  %v1040_v42 = vld [vmem:[%s1570_s27 + $0xb8] sm:$0xf]  ;;  %s1377_s12 = smov 44  }
  0x6d   : > { %352 = vrot.lane.b32.xlu0 %v1009_v9, %s1369_s28  ;;  %v1039_v43 = vld [vmem:[%s1570_s27 + $0xa8] sm:$0xf]  ;;  %v1042_v44 = vld [vmem:[%s1570_s27 + $0x9c] sm:$0xf]  ;;  %v1041_v45 = vld [vmem:[%s1570_s27 + $0x8c] sm:$0xf] }
  0x6e   : > { %v1044_v46 = vld [vmem:[%s1570_s27 + $0xbc] sm:$0xf]  ;;  %v1043_v47 = vld [vmem:[%s1570_s27 + $0xac] sm:$0xf]  ;;  %v1046_v48 = vld [vmem:[%s1570_s27 + $0xd0] sm:$0xf] }
  0x6f   : > { %v1045_v49 = vld [vmem:[%s1570_s27 + $0xc0] sm:$0xf]  ;;  %s1378_s24 = smov 48   ;;  %v1048_v50 = vld [vmem:[%s1570_s27 + $0xf0] sm:$0xf]  ;;  %v729_v53 = vld [vmem:[#allocation6 + $0x8] sm:$0xff] }
  0x70   : > { %374 = vrot.lane.b32.xlu1 %v1012_v10, %s1369_s28  ;;  %v1047_v51 = vld [vmem:[%s1570_s27 + $0xe0] sm:$0xf]  ;;  %v1050_v54 = vld [vmem:[%s1570_s27 + $0xd4] sm:$0xf]  ;;  %v1049_v55 = vld [vmem:[%s1570_s27 + $0xc4] sm:$0xf] }
  0x71   : > { %367 = vrot.lane.b32.xlu0 %v1011_v11, %s1369_s28  ;;  %v728_v52 = vld [vmem:[#allocation6] sm:$0xff]  ;;  %s1379_s7 = smov 52   ;;  %v730_v57 = vld [vmem:[#allocation6 + $0x10] sm:$0xff]  ;;  %v731_v58 = vld [vmem:[#allocation6 + $0x18] sm:$0xff]  ;;  %s1380_s30 = smov 56   ;;  %vm297_vm1 = vcmask 60448  }
  0x72   : > { %v1102_v56 = vpack.c.bf16 %v729_v53, %v728_v52  ;;  %v1052_v59 = vld [vmem:[%s1570_s27 + $0xf4] sm:$0xf]  ;;  %v1051_v60 = vld [vmem:[%s1570_s27 + $0xe4] sm:$0xf]  ;;  %v1106_v61 = vpack.c.bf16 %v731_v58, %v730_v57  ;;  %v733_v63 = vld [vmem:[#allocation6 + $0x28] sm:$0xff]  ;;  %s1381_s28 = smov 60  }
  0x73   : > { %v732_v62 = vld [vmem:[#allocation6 + $0x20] sm:$0xff]  ;;  %v1054_v0 = vld [vmem:[%s1570_s27 + $0xd8] sm:$0xf]  ;;  %v1053_v1 = vld [vmem:[%s1570_s27 + $0xc8] sm:$0xf]  ;;  %vm326_vm2 = vcmask 93248  }
  0x74   : > { %389 = vrot.lane.b32.xlu1 %v1014_v14, %s1370_s25  ;;  %1103 = vmatprep.subr.bf16.mxu0 %v1102_v56  ;;  %v1110_v2 = vpack.c.bf16 %v733_v63, %v732_v62  ;;  %v734_v3 = vld [vmem:[#allocation6 + $0x30] sm:$0xff]  ;;  %v735_v4 = vld [vmem:[#allocation6 + $0x38] sm:$0xff]  ;;  %v1055_v7 = vld [vmem:[%s1570_s27 + $0xe8] sm:$0xf]  ;;  %vm355_vm3 = vcmask 126048   ;;  %vm384_vm4 = vcmask 158848  }
  0x75   : > { %381 = vrot.lane.b32.xlu0 %v1013_v15, %s1370_s25  ;;  %1105 = vmatpush3.bf16.msra.mxu0 %v1102_v56  ;;  %v1114_v5 = vpack.c.bf16 %v735_v4, %v734_v3  ;;  %v1056_v6 = vld [vmem:[%s1570_s27 + $0xf8] sm:$0xf]  ;;  %v1058_v8 = vld [vmem:[%s1570_s27 + $0xdc] sm:$0xf]  ;;  %v1057_v9 = vld [vmem:[%s1570_s27 + $0xcc] sm:$0xf] }
  0x76   : > { %1107 = vmatprep.subr.bf16.mxu0 %v1106_v61  ;;  %v1060_v10 = vld [vmem:[%s1570_s27 + $0xfc] sm:$0xf]  ;;  %v1059_v11 = vld [vmem:[%s1570_s27 + $0xec] sm:$0xf]  ;;  %vm413_vm5 = vcmask 191648   ;;  %vm442_vm6 = vcmask 224448  }
  0x77   : > { %vm471_vm7 = vcmask 257248   ;;  %vm500_vm8 = vcmask 290048   ;;  %vm529_vm9 = vcmask 322848   ;;  %vm558_vm10 = vcmask 355648   ;;  %s874_s27 = scalar_lea.sflag [#allocation5], %s1566_s17 }
  0x78   : > { %403 = vrot.lane.b32.xlu1 %v1016_v18, %s1370_s25  ;;  %vm587_vm11 = vcmask 388448   ;;  %vm616_vm12 = vcmask 421248   ;;  %vm645_vm13 = vcmask 454048   ;;  %vm674_vm14 = vcmask 486848  }
  0x79   : > { %396 = vrot.lane.b32.xlu0 %v1015_v19, %s1370_s25  ;;  %1109 = vmatpush3.bf16.msra.mxu0 %v1106_v61  ;;  %vm703_vm15 = vcmask 519648   ;;  %vm743_vm0 = vcmask 523264  }
  0x7a   : > { %1111 = vmatprep.subr.bf16.mxu0 %v1110_v2 }
  0x7c   : > { %418 = vrot.lane.b32.xlu1 %v1018_v20, %s1371_s6 }
  0x7d   : > { %410 = vrot.lane.b32.xlu0 %v1017_v21, %s1371_s6  ;;  %1113 = vmatpush3.bf16.msra.mxu0 %v1110_v2 }
  0x7e   : > { %1115 = vmatprep.subr.bf16.mxu0 %v1114_v5 }
  0x80   : > { %432 = vrot.lane.b32.xlu1 %v1020_v22, %s1371_s6 }
  0x81   : > { %425 = vrot.lane.b32.xlu0 %v1019_v23, %s1371_s6  ;;  %1117 = vmatpush3.bf16.msra.mxu0 %v1114_v5 }
  0x84   : > { %447 = vrot.lane.b32.xlu1 %v1022_v24, %s1372_s10 }
  0x85   : > { %439 = vrot.lane.b32.xlu0 %v1021_v25, %s1372_s10 }
  0x88   : > { %461 = vrot.lane.b32.xlu1 %v1024_v26, %s1372_s10 }
  0x89   : > { %454 = vrot.lane.b32.xlu0 %v1023_v27, %s1372_s10 }
  0x8c   : > { %476 = vrot.lane.b32.xlu1 %v1026_v28, %s1373_s11 }
  0x8d   : > { %468 = vrot.lane.b32.xlu0 %v1025_v29, %s1373_s11 }
  0x90   : > { %490 = vrot.lane.b32.xlu1 %v1028_v30, %s1373_s11 }
  0x91   : > { %483 = vrot.lane.b32.xlu0 %v1027_v31, %s1373_s11  ;;  %s997_s11 = sshll.u32 %s1566_s17, 4 }
  0x94   : > { %505 = vrot.lane.b32.xlu1 %v1030_v32, %s1374_s14 }
  0x95   : > { %497 = vrot.lane.b32.xlu0 %v1029_v33, %s1374_s14 }
  0x98   : > { %519 = vrot.lane.b32.xlu1 %v1032_v34, %s1374_s14 }
  0x99   : > { %512 = vrot.lane.b32.xlu0 %v1031_v35, %s1374_s14 }
  0x9c   : > { %534 = vrot.lane.b32.xlu1 %v1034_v36, %s1375_s16 }
  0x9d   : > { %526 = vrot.lane.b32.xlu0 %v1033_v37, %s1375_s16 }
  0xa0   : > { %548 = vrot.lane.b32.xlu1 %v1036_v38, %s1375_s16 }
  0xa1   : > { %541 = vrot.lane.b32.xlu0 %v1035_v39, %s1375_s16 }
  0xa4   : > { %563 = vrot.lane.b32.xlu1 %v1038_v40, %s1376_s8 }
  0xa5   : > { %555 = vrot.lane.b32.xlu0 %v1037_v41, %s1376_s8 }
  0xa8   : > { %577 = vrot.lane.b32.xlu1 %v1040_v42, %s1376_s8 }
  0xa9   : > { %570 = vrot.lane.b32.xlu0 %v1039_v43, %s1376_s8  ;;  %s1072_s8 = sshll.u32 %s1351_s21, 8  ;;  %s1382_s21 = smov [#allocation8]  }
  0xaa   : > { %s1277_s6 = sshll.u32 %s1382_s21, 4  ;;  %s1278_s6 = int_to_ptr.vmem [resolvable:$false] %s1277_s6 }
  0xab   : > { %s1279_s10 = scalar_lea.vmem %s1278_s6, 512 }
  0xac   : > { %592 = vrot.lane.b32.xlu1 %v1042_v44, %s1377_s12 }
  0xad   : > { %584 = vrot.lane.b32.xlu0 %v1041_v45, %s1377_s12 }
  0xb0   : > { %606 = vrot.lane.b32.xlu1 %v1044_v46, %s1377_s12 }
  0xb1   : > { %599 = vrot.lane.b32.xlu0 %v1043_v47, %s1377_s12  ;;  %s276_s12 = scalar_lea.vmem [#allocation8], %s997_s11 }
  0xb4   : > { %621 = vrot.lane.b32.xlu1 %v1046_v48, %s1378_s24 }
  0xb5   : > { %613 = vrot.lane.b32.xlu0 %v1045_v49, %s1378_s24 }
  0xb8   : > { %635 = vrot.lane.b32.xlu1 %v1048_v50, %s1378_s24 }
  0xb9   : > { %628 = vrot.lane.b32.xlu0 %v1047_v51, %s1378_s24  ;;  %s889_s24 = sshll.u32 %s276_s12, 4  ;;  %s1664_s24 = int_to_ptr.vmem [resolvable:$true] %s889_s24 }
  0xba   : > { %s1273_s25 = scalar_lea.vmem %s1664_s24, 256  ;;  %p1280_p12 = scmp.lt.s32.totalorder %s1664_s24, %s1278_s6 }
  0xbb   : > { %p1274_p4 = scmp.ne.s32.totalorder %s1664_s24, %s1273_s25  ;;  %p1281_p11 = scmp.lt.s32.totalorder %s1279_s10, %s1273_s25 }
  0xbc   : > { %650 = vrot.lane.b32.xlu1 %v1050_v54, %s1379_s7 }
  0xbd   : > { %642 = vrot.lane.b32.xlu0 %v1049_v55, %s1379_s7  ;;  %p1275_p6 = pnand %p1274_p4, %p1510_p10  ;;  %p1282_p0 = por %p1281_p11, %p1280_p12 }
  0xbf   : > { %p1276_p8 = pneg %p1275_p6 }
  0xc0   : > { %664 = vrot.lane.b32.xlu1 %v1052_v59, %s1379_s7 }
  0xc1   : > { %657 = vrot.lane.b32.xlu0 %v1051_v60, %s1379_s7  ;;  %p1283_p5 = pnand %p1282_p0, %p1276_p8 }
  0xc4   : > { %679 = vrot.lane.b32.xlu1 %v1054_v0, %s1380_s30 }
  0xc5   : > { %671 = vrot.lane.b32.xlu0 %v1053_v1, %s1380_s30 }
  0xc8   : > { %693 = vrot.lane.b32.xlu1 %v1056_v6, %s1380_s30 }
  0xc9   : > { %686 = vrot.lane.b32.xlu0 %v1055_v7, %s1380_s30 }
  0xcc   : > { %708 = vrot.lane.b32.xlu1 %v1058_v8, %s1381_s28 }
  0xcd   : > { %700 = vrot.lane.b32.xlu0 %v1057_v9, %s1381_s28 }
  0xce   : > { %v310_v12 = vpop.permute.xlu1 %309 }
  0xcf   : > { %v295_v13 = vpop.permute.xlu0 %294  ;;  %312 = vst.msk [vmem:[#allocation2 + $0x8] sm:$0xf] %vm297_vm1, %v310_v12 }
  0xd0   : > { %298 = vst.msk [vmem:[#allocation2] sm:$0xf] %vm297_vm1, %v295_v13  ;;  %722 = vrot.lane.b32.xlu1 %v1060_v10, %s1381_s28  ;;  %v1061_v10 = vld [vmem:[%s1716_s2] ss:$0 sm:$0xff] }
  0xd1   : > { %715 = vrot.lane.b32.xlu0 %v1059_v11, %s1381_s28  ;;  %s1662_s28 = scalar_lea.hbm %s1719_s5, %s1072_s8 }
  0xd2   : > { %v317_v14 = vpop.permute.xlu1 %316 }
  0xd3   : > { %v303_v15 = vpop.permute.xlu0 %302  ;;  %319 = vst.msk [vmem:[#allocation2 + $0xc] sm:$0xf] %vm297_vm1, %v317_v14 }
  0xd4   : > { %305 = vst.msk [vmem:[#allocation2 + $0x4] sm:$0xf] %vm297_vm1, %v303_v15 }
  0xd6   : > { %v332_v16 = vpop.permute.xlu1 %331 }
  0xd7   : > { %v324_v17 = vpop.permute.xlu0 %323  ;;  %334 = vst.msk [vmem:[#allocation2 + $0x4] sm:$0xf] %vm326_vm2, %v332_v16 }
  0xd8   : > { %327 = vst.msk [vmem:[#allocation2] sm:$0xf] %vm326_vm2, %v324_v17 }
  0xda   : > { %v346_v18 = vpop.permute.xlu1 %345 }
  0xdb   : > { %v339_v19 = vpop.permute.xlu0 %338  ;;  %348 = vst.msk [vmem:[#allocation2 + $0xc] sm:$0xf] %vm326_vm2, %v346_v18 }
  0xdc   : > { %341 = vst.msk [vmem:[#allocation2 + $0x8] sm:$0xf] %vm326_vm2, %v339_v19 }
  0xde   : > { %v361_v20 = vpop.permute.xlu1 %360 }
  0xdf   : > { %v353_v21 = vpop.permute.xlu0 %352  ;;  %363 = vst.msk [vmem:[#allocation2 + $0x4] sm:$0xf] %vm355_vm3, %v361_v20 }
  0xe0   : > { %356 = vst.msk [vmem:[#allocation2] sm:$0xf] %vm355_vm3, %v353_v21 }
  0xe2   : > { %v375_v22 = vpop.permute.xlu1 %374 }
  0xe3   : > { %v368_v23 = vpop.permute.xlu0 %367  ;;  %377 = vst.msk [vmem:[#allocation2 + $0xc] sm:$0xf] %vm355_vm3, %v375_v22 }
  0xe4   : > { %370 = vst.msk [vmem:[#allocation2 + $0x8] sm:$0xf] %vm355_vm3, %v368_v23 }
  0xe6   : > { %v390_v24 = vpop.permute.xlu1 %389 }
  0xe7   : > { %v382_v25 = vpop.permute.xlu0 %381  ;;  %392 = vst.msk [vmem:[#allocation2 + $0x4] sm:$0xf] %vm384_vm4, %v390_v24 }
  0xe8   : > { %385 = vst.msk [vmem:[#allocation2] sm:$0xf] %vm384_vm4, %v382_v25 }
  0xea   : > { %v404_v26 = vpop.permute.xlu1 %403 }
  0xeb   : > { %v397_v27 = vpop.permute.xlu0 %396  ;;  %406 = vst.msk [vmem:[#allocation2 + $0xc] sm:$0xf] %vm384_vm4, %v404_v26 }
  0xec   : > { %399 = vst.msk [vmem:[#allocation2 + $0x8] sm:$0xf] %vm384_vm4, %v397_v27 }
  0xee   : > { %v419_v28 = vpop.permute.xlu1 %418 }
  0xef   : > { %v411_v29 = vpop.permute.xlu0 %410  ;;  %421 = vst.msk [vmem:[#allocation2 + $0x4] sm:$0xf] %vm413_vm5, %v419_v28 }
  0xf0   : > { %414 = vst.msk [vmem:[#allocation2] sm:$0xf] %vm413_vm5, %v411_v29 }
  0xf2   : > { %v433_v30 = vpop.permute.xlu1 %432 }
  0xf3   : > { %v426_v31 = vpop.permute.xlu0 %425  ;;  %435 = vst.msk [vmem:[#allocation2 + $0xc] sm:$0xf] %vm413_vm5, %v433_v30 }
  0xf4   : > { %428 = vst.msk [vmem:[#allocation2 + $0x8] sm:$0xf] %vm413_vm5, %v426_v31 }
  0xf6   : > { %v448_v32 = vpop.permute.xlu1 %447 }
  0xf7   : > { %v440_v33 = vpop.permute.xlu0 %439  ;;  %450 = vst.msk [vmem:[#allocation2 + $0x4] sm:$0xf] %vm442_vm6, %v448_v32 }
  0xf8   : > { %443 = vst.msk [vmem:[#allocation2] sm:$0xf] %vm442_vm6, %v440_v33 }
  0xfa   : > { %v462_v34 = vpop.permute.xlu1 %461 }
  0xfb   : > { %v455_v35 = vpop.permute.xlu0 %454  ;;  %464 = vst.msk [vmem:[#allocation2 + $0xc] sm:$0xf] %vm442_vm6, %v462_v34 }
  0xfc   : > { %457 = vst.msk [vmem:[#allocation2 + $0x8] sm:$0xf] %vm442_vm6, %v455_v35  ;;  %v1064_v35 = vld [vmem:[%s1717_s3] ss:$0 sm:$0xff] }
  0xfe   : > { %v477_v36 = vpop.permute.xlu1 %476 }
  0xff   : > { %v469_v37 = vpop.permute.xlu0 %468  ;;  %479 = vst.msk [vmem:[#allocation2 + $0x4] sm:$0xf] %vm471_vm7, %v477_v36 }
 0x100   : > { %472 = vst.msk [vmem:[#allocation2] sm:$0xf] %vm471_vm7, %v469_v37  ;;  %v1065_v37 = vld [vmem:[%s1718_s4] ss:$0 sm:$0xff] }
 0x102   : > { %v491_v38 = vpop.permute.xlu1 %490 }
 0x103   : > { %v484_v39 = vpop.permute.xlu0 %483  ;;  %493 = vst.msk [vmem:[#allocation2 + $0xc] sm:$0xf] %vm471_vm7, %v491_v38 }
 0x104   : > { %486 = vst.msk [vmem:[#allocation2 + $0x8] sm:$0xf] %vm471_vm7, %v484_v39 }
 0x106   : > { %v506_v40 = vpop.permute.xlu1 %505 }
 0x107   : > { %v498_v41 = vpop.permute.xlu0 %497  ;;  %508 = vst.msk [vmem:[#allocation2 + $0x4] sm:$0xf] %vm500_vm8, %v506_v40 }
 0x108   : > { %501 = vst.msk [vmem:[#allocation2] sm:$0xf] %vm500_vm8, %v498_v41 }
 0x10a   : > { %v520_v42 = vpop.permute.xlu1 %519 }
 0x10b   : > { %v513_v43 = vpop.permute.xlu0 %512  ;;  %522 = vst.msk [vmem:[#allocation2 + $0xc] sm:$0xf] %vm500_vm8, %v520_v42 }
 0x10c   : > { %515 = vst.msk [vmem:[#allocation2 + $0x8] sm:$0xf] %vm500_vm8, %v513_v43 }
 0x10e   : > { %v535_v44 = vpop.permute.xlu1 %534 }
 0x10f   : > { %v527_v45 = vpop.permute.xlu0 %526  ;;  %537 = vst.msk [vmem:[#allocation2 + $0x4] sm:$0xf] %vm529_vm9, %v535_v44 }
 0x110   : > { %530 = vst.msk [vmem:[#allocation2] sm:$0xf] %vm529_vm9, %v527_v45 }
 0x112   : > { %v549_v46 = vpop.permute.xlu1 %548 }
 0x113   : > { %v542_v47 = vpop.permute.xlu0 %541  ;;  %551 = vst.msk [vmem:[#allocation2 + $0xc] sm:$0xf] %vm529_vm9, %v549_v46 }
 0x114   : > { %544 = vst.msk [vmem:[#allocation2 + $0x8] sm:$0xf] %vm529_vm9, %v542_v47 }
 0x116   : > { %v564_v48 = vpop.permute.xlu1 %563 }
 0x117   : > { %v556_v49 = vpop.permute.xlu0 %555  ;;  %566 = vst.msk [vmem:[#allocation2 + $0x4] sm:$0xf] %vm558_vm10, %v564_v48 }
 0x118   : > { %559 = vst.msk [vmem:[#allocation2] sm:$0xf] %vm558_vm10, %v556_v49 }
 0x11a   : > { %v578_v50 = vpop.permute.xlu1 %577 }
 0x11b   : > { %v571_v51 = vpop.permute.xlu0 %570  ;;  %580 = vst.msk [vmem:[#allocation2 + $0xc] sm:$0xf] %vm558_vm10, %v578_v50 }
 0x11c   : > { %573 = vst.msk [vmem:[#allocation2 + $0x8] sm:$0xf] %vm558_vm10, %v571_v51 }
 0x11e   : > { %v593_v52 = vpop.permute.xlu1 %592 }
 0x11f   : > { %v585_v53 = vpop.permute.xlu0 %584  ;;  %595 = vst.msk [vmem:[#allocation2 + $0x4] sm:$0xf] %vm587_vm11, %v593_v52 }
 0x120   : > { %588 = vst.msk [vmem:[#allocation2] sm:$0xf] %vm587_vm11, %v585_v53 }
 0x122   : > { %v607_v54 = vpop.permute.xlu1 %606 }
 0x123   : > { %v600_v55 = vpop.permute.xlu0 %599  ;;  %609 = vst.msk [vmem:[#allocation2 + $0xc] sm:$0xf] %vm587_vm11, %v607_v54 }
 0x124   : > { %602 = vst.msk [vmem:[#allocation2 + $0x8] sm:$0xf] %vm587_vm11, %v600_v55 }
 0x126   : > { %v622_v56 = vpop.permute.xlu1 %621 }
 0x127   : > { %v614_v57 = vpop.permute.xlu0 %613  ;;  %624 = vst.msk [vmem:[#allocation2 + $0x4] sm:$0xf] %vm616_vm12, %v622_v56 }
 0x128   : > { %617 = vst.msk [vmem:[#allocation2] sm:$0xf] %vm616_vm12, %v614_v57 }
 0x12a   : > { %v636_v58 = vpop.permute.xlu1 %635 }
 0x12b   : > { %v629_v59 = vpop.permute.xlu0 %628  ;;  %638 = vst.msk [vmem:[#allocation2 + $0xc] sm:$0xf] %vm616_vm12, %v636_v58 }
 0x12c   : > { %631 = vst.msk [vmem:[#allocation2 + $0x8] sm:$0xf] %vm616_vm12, %v629_v59 }
 0x12e   : > { %v651_v60 = vpop.permute.xlu1 %650 }
 0x12f   : > { %v643_v61 = vpop.permute.xlu0 %642  ;;  %653 = vst.msk [vmem:[#allocation2 + $0x4] sm:$0xf] %vm645_vm13, %v651_v60 }
 0x130   : > { %646 = vst.msk [vmem:[#allocation2] sm:$0xf] %vm645_vm13, %v643_v61 }
 0x132   : > { %v665_v62 = vpop.permute.xlu1 %664 }
 0x133   : > { %v658_v63 = vpop.permute.xlu0 %657  ;;  %667 = vst.msk [vmem:[#allocation2 + $0xc] sm:$0xf] %vm645_vm13, %v665_v62 }
 0x134   : > { %660 = vst.msk [vmem:[#allocation2 + $0x8] sm:$0xf] %vm645_vm13, %v658_v63 }
 0x136   : > { %v680_v0 = vpop.permute.xlu1 %679 }
 0x137   : > { %v672_v1 = vpop.permute.xlu0 %671  ;;  %682 = vst.msk [vmem:[#allocation2 + $0x4] sm:$0xf] %vm674_vm14, %v680_v0 }
 0x138   : > { %675 = vst.msk [vmem:[#allocation2] sm:$0xf] %vm674_vm14, %v672_v1 }
 0x13a   : > { %v694_v2 = vpop.permute.xlu1 %693 }
 0x13b   : > { %v687_v3 = vpop.permute.xlu0 %686  ;;  %696 = vst.msk [vmem:[#allocation2 + $0xc] sm:$0xf] %vm674_vm14, %v694_v2 }
 0x13c   : > { %689 = vst.msk [vmem:[#allocation2 + $0x8] sm:$0xf] %vm674_vm14, %v687_v3 }
 0x13e   : > { %v709_v4 = vpop.permute.xlu1 %708 }
 0x13f   : > { %v701_v5 = vpop.permute.xlu0 %700  ;;  %711 = vst.msk [vmem:[#allocation2 + $0x4] sm:$0xf] %vm703_vm15, %v709_v4 }
 0x140   : > { %704 = vst.msk [vmem:[#allocation2] sm:$0xf] %vm703_vm15, %v701_v5 }
 0x142   : > { %v723_v6 = vpop.permute.xlu1 %722 }
 0x143   : > { %v716_v7 = vpop.permute.xlu0 %715  ;;  %725 = vst.msk [vmem:[#allocation2 + $0xc] sm:$0xf] %vm703_vm15, %v723_v6 }
 0x144   : > { %718 = vst.msk [vmem:[#allocation2 + $0x8] sm:$0xf] %vm703_vm15, %v716_v7 }
 0x147   : > { %v726_v8 = vld [vmem:[#allocation2] sm:$0xff] }
 0x148   : > { %1099 = vmatprep.mubr.msk.f32.mxu0 %vm743_vm0, %v726_v8 }
 0x14b   : > { %v727_v9 = vld [vmem:[#allocation2 + $0x8] sm:$0xff] }
 0x14c   : > { %1100 = vmatmul.mubr.msk.f32.vlgmr.msra.gmra.mrb[0].mxu0 %vm743_vm0, %v727_v9 }
 0x21f   : > { %v1101_v11 = vpop.f32.mrb[0].mxu0 }
 0x220   : > { %v822_v12 = vadd.f32 %v1101_v11, %v1061_v10  ;;  %v816_v13 = vpop.f32.mrb[1].mxu0 }
 0x221   : > { %v817_v14 = vadd.f32 %v1061_v10, %v816_v13 }
 0x222   : > { %827 = vadd.xlane.f32.xlu1 %v822_v12  ;;  %v832_v16 = vmul.f32 %v822_v12, %v822_v12 }
 0x223   : > { %825 = vadd.xlane.f32.xlu0 %v817_v14  ;;  %v831_v15 = vmul.f32 %v817_v14, %v817_v14 }
 0x227   : > { %833 = vadd.xlane.f32.xlu0 %v831_v15 }
 0x22b   : > { %835 = vadd.xlane.f32.xlu0 %v832_v16 }
 0x2af   : > { %v828_v19 = vpop.xlane.xlu1 %827 }
 0x2b0   : > { %v826_v17 = vpop.xlane.xlu0 %825  ;;  %v830_v21 = vmul.f32 0.03125, %v828_v19 }
 0x2b1   : > { %v829_v18 = vmul.f32 0.03125, %v826_v17 }
 0x2b2   : > { %v840_v26 = vmul.f32 %v830_v21, %v830_v21  ;;  %v850_v38 = vsub.f32 %v822_v12, %v830_v21 }
 0x2b3   : > { %v839_v22 = vmul.f32 %v829_v18, %v829_v18  ;;  %v849_v33 = vsub.f32 %v817_v14, %v829_v18 }
 0x2b4   : > { %v834_v20 = vpop.xlane.xlu0 %833 }
 0x2b5   : > { %v837_v23 = vmul.f32 0.03125, %v834_v20 }
 0x2b7   : > { %v841_v24 = vsub.f32 %v837_v23, %v839_v22 }
 0x2b8   : > { %v836_v25 = vpop.xlane.xlu0 %835 }
 0x2b9   : > { %v843_v27 = vmax.f32 %v841_v24, 0.0  ;;  %v838_v28 = vmul.f32 0.03125, %v836_v25 }
 0x2bb   : > { %v845_v29 = vadd.f32 1e-05, %v843_v27  ;;  %v842_v30 = vsub.f32 %v838_v28, %v840_v26 }
 0x2bd   : > { %1211 = vrsqrt.f32 %v845_v29  ;;  %v844_v31 = vmax.f32 %v842_v30, 0.0 }
 0x2bf   : > { %v846_v32 = vadd.f32 1e-05, %v844_v31 }
 0x2c1   : > { %1213 = vrsqrt.f32 %v846_v32 }
 0x2c7   : > { %v1212_v34 = vpop.eup %1211 }
 0x2c8   : > { %v851_v36 = vmul.f32 %v1212_v34, %v849_v33 }
 0x2ca   : > { %v860_v39 = vmul.f32 %v1064_v35, %v851_v36 }
 0x2cb   : > { %v1214_v40 = vpop.eup %1213 }
 0x2cc   : > { %v869_v41 = vadd.f32 %v1065_v37, %v860_v39  ;;  %v852_v42 = vmul.f32 %v1214_v40, %v850_v38 }
 0x2ce   : > { %v861_v43 = vmul.f32 %v1064_v35, %v852_v42  ;;  %871 = vst [vmem:[%s276_s12] sm:$0xff] %v869_v41 }
 0x2d0   : > { %v870_v44 = vadd.f32 %v1065_v37, %v861_v43 }
 0x2d2   : > { %872 = vst [vmem:[%s276_s12 + $0x8] sm:$0xff] %v870_v44 }
 0x2d3   : > { %1286 = shalt.err (!%p1283_p5)
}
 0x2d4   : > { %s1287_s11 = scalar_lea.hbm %s1662_s28, 256  ;;  %s1291_s8 = scalar_lea.hbm %s1719_s5, 512 }
 0x2d5   : > { %p1288_p9 = scmp.ne.s32.totalorder %s1662_s28, %s1287_s11  ;;  %p1292_p3 = scmp.lt.u32.totalorder %s1662_s28, %s1719_s5 }
 0x2d6   : > { %p1293_p7 = scmp.lt.u32.totalorder %s1291_s8, %s1287_s11  ;;  %p1295_p4 = scmp.lt.u32.totalorder %s1287_s11, %s1662_s28 }
 0x2d7   : > { %p1289_p1 = pnand %p1288_p9, %p1510_p10 }
 0x2d8   : > { %p1294_p13 = por %p1293_p7, %p1292_p3 }
 0x2d9   : > { %p1290_p2 = pneg %p1289_p1 }
 0x2da   : > { %p1296_p6 = por %p1295_p4, %p1294_p13 }
 0x2dc   : > { %p1297_p8 = pnand %p1296_p6, %p1290_p2 }
 0x2de   : > { %1300 = shalt.err (!%p1297_p8)
}
 0x2df   : > { %s1383_s30 = smov 128  }
 0x2e0   : > { %1124 = dma.vmem_to_hbm [thread:$0]  (%p1510_p10), %s1664_s24, 256, %s1662_s28, %s874_s27, %s1383_s30, %s1383_s30, %s1368_s26  }
 0x2e1 PF: > { %s904_s25 = sand.u32 1, %s1339_s18   ;;  %p1737_p12 = scmp.ne.s32.totalorder %s1727_s29, 0 }
 0x2e2   : > { %p1738_p11 = scmp.ge.s32.totalorder %s1359_s23, 2  ;;  %s905_s21 = scalar_lea.sflag [#allocation5], %s904_s25 }
 0x2e4   : > { %p1135_p0 = pnand %p1738_p11, %p1737_p12 }
 0x2e6   : > { %1334 = dma.done.wait (!%p1135_p0), %s905_s21, 256  }
 0x2e7   : > { %1336 = vsyncadd (!%p1135_p0), %s905_s21, 4294967040  ;;  %s22_s23 = sadd.s32 1, %s1359_s23   ;;  %s1739_s18 = smov %s1343_s19 }
 0x2e8   : > { %p19_p5 = scmp.ge.s32.totalorder %s22_s23, 4   ;;  %s1740_s19 = smov %s1347_s20 }
 0x2e9   : > { %s1741_s20 = smov %s1519_s15  ;;  %s1742_s21 = smov %s1355_s22 }
 0x2ea   : > { %s1743_s22 = smov %s1745_s9  ;;  %21 = sbr.rel (!%p19_p5) target bundleno = 7 (0x7), region = 152 }
 0x2f1   :  { %910 = vsyncpa [#allocation4], 1 }
 0x2f2   :  { %912 = vsyncpa [#allocation4 + $0x1], 1 }
 0x2f3   :  { %913 = vsyncpa [#allocation7], 1 }
 0x2f4   :  { %914 = vsyncpa [#allocation5], 1 }
 0x2f5   :  { %916 = vsyncpa [#allocation5 + $0x1], 1 }

// kernel: tpu_custom_call.1
= control target key start
LH: loop header
LB: loop body
LE: loop exit
PB: predicated region body
PF: predicated region fallthrough
CT: control target
= control target key end

     0   :  { %10 = vsyncpa [#allocation4], 0  ;;  %s1714_s0 = inlined_call_operand.hbm [shape: f32[2,4,4,4,4,4], index: 0, kind: input, shape index: {}]   ;;  %s1715_s1 = inlined_call_operand.hbm [shape: f32[64,128], index: 1, kind: input, shape index: {}]   ;;  %s1716_s2 = inlined_call_operand.vmem [shape: f32[1,128], index: 2, kind: input, shape index: {}]   ;;  %s1717_s3 = inlined_call_operand.vmem [shape: f32[1,128], index: 3, kind: input, shape index: {}]   ;;  %s1718_s4 = inlined_call_operand.vmem [shape: f32[1,128], index: 4, kind: input, shape index: {}]   ;;  %s1719_s5 = inlined_call_operand.hbm [shape: f32[2,16,128], index: 5, kind: output, shape index: {}]  }
   0x1   :  { %12 = vsyncpa [#allocation4 + $0x1], 0 }
   0x2   :  { %13 = vsyncpa [#allocation7], 0 }
   0x3   :  { %14 = vsyncpa [#allocation5], 0 }
   0x4   :  { %16 = vsyncpa [#allocation5 + $0x1], 0  ;;  %s1414_s18 = smov 0   ;;  %s1416_s19 = smov 0  }
   0x5   :  { %s1418_s20 = smov 0   ;;  %s1420_s21 = smov 0  }
   0x6   :  { %s1422_s22 = smov 0   ;;  %s1424_s23 = smov 0  }
   0x7 LB: > { %s986_s24 = sadd.s32 4294967295, %s1359_s23   ;;  %s987_s25 = sadd.s32 4294967294, %s1359_s23   ;;  %s1359_s23 = sphi %s1424_s23, %s22_s23   ;;  %s1355_s22 = sphi %s1422_s22, %s1743_s22   ;;  %s1351_s21 = sphi %s1420_s21, %s1742_s21   ;;  %s1347_s20 = sphi %s1418_s20, %s1741_s20   ;;  %s1343_s19 = sphi %s1416_s19, %s1740_s19   ;;  %s1339_s18 = sphi %s1414_s18, %s1739_s18  }
   0x8   : > { %p56_p0 = scmp.ne.s32.totalorder %s1343_s19, %s1339_s18  ;;  %p1448_p1 = scmp.eq.s32.totalorder %s986_s24, 0 }
   0x9   : > { %p1452_p2 = scmp.eq.s32.totalorder %s986_s24, 1  ;;  %p172_p3 = scmp.eq.s32.totalorder %s987_s25, 1 }
   0xa   : > { %s1724_s26 = scalar_select %p1448_p1, 1, 0 }
   0xb   : > { %s1725_s27 = scalar_select %p1452_p2, 1, 0 }
   0xc   : > { %p1458_p4 = por %p1448_p1, %p56_p0  ;;  %p988_p5 = scmp.ge.s32.totalorder %s1359_s23, 1 }
   0xd   : > { %p1463_p6 = por %p172_p3, %p56_p0  ;;  %p179_p7 = scmp.lt.s32.totalorder %s1359_s23, 3 }
   0xe   : > { %s1726_s28 = scalar_select %p1458_p4, 1, 0 }
   0xf   : > { %s1727_s29 = scalar_select %p1463_p6, 1, 0 }
  0x10   : > { %p1468_p8 = pnand %p988_p5, %p179_p7  ;;  %s1361_s6 = smov [#allocation6]  }
  0x11   : > { %s191_s7 = sshll.u32 %s1361_s6, 4  ;;  %s34_s9 = sadd.s32 1, %s1355_s22  ;;  %s192_s7 = int_to_ptr.vmem [resolvable:$true] %s191_s7 }
  0x12   : > { %s1728_s30 = scalar_select %p1468_p8, 1, 0 }
  0x13   : > { %p1126_p9 = pneg %p1468_p8  ;;  %s1215_s12 = scalar_lea.hbm %s1715_s1, 1024 }
  0x14   : > { %p1216_p12 = scmp.ne.s32.totalorder %s1715_s1, %s1215_s12  ;;  %p1222_p5 = scmp.lt.u32.totalorder %s1215_s12, %s1715_s1 }
  0x15   : > { %p1477_p11 = pnand %p1126_p9, %p1448_p1 }
  0x17   : > { %p1217_p13 = pneg %p1477_p11 }
  0x19   : > { %p1218_p0 = pnand %p1217_p13, %p1216_p12 }
  0x1b   : > { %p1219_p3 = pneg %p1218_p0 }
  0x1d   : > { %p1224_p7 = pnand %p1222_p5, %p1219_p3 }
  0x1f   : > { %1227 = shalt.err (!%p1224_p7)
}
  0x20   : > { %s1228_s17 = scalar_lea.vmem %s192_s7, 1024  ;;  %p1236_p1 = scmp.lt.s32.totalorder %s192_s7, %s192_s7 }
  0x21   : > { %p1229_p9 = scmp.ne.s32.totalorder %s192_s7, %s1228_s17  ;;  %p1237_p4 = scmp.lt.s32.totalorder %s1228_s17, %s1228_s17 }
  0x23   : > { %p1231_p10 = pnand %p1229_p9, %p1217_p13  ;;  %p1238_p8 = por %p1237_p4, %p1236_p1 }
  0x25   : > { %p1232_p6 = pneg %p1231_p10 }
  0x27   : > { %p1239_p2 = pnand %p1238_p8, %p1232_p6 }
  0x29   : > { %1242 = shalt.err (!%p1239_p2)
}
  0x2a   : > { %s1362_s24 = smov 128   ;;  %s1363_s25 = smov 8  }
  0x2b   : > { %1129 = dma.hbm_to_vmem [thread:$0]  (!%p1477_p11), %s1715_s1, 1024, %s192_s7, [#allocation7], %s1362_s24, %s1362_s24, %s1363_s25  }
  0x2c   : > { %p36_p1 = scmp.ge.s32.totalorder %s34_s9, 2  ;;  %s43_s11 = sadd.s32 1, %s1347_s20 }
  0x2d   : > { %p50_p2 = scmp.ne.s32.totalorder %s1347_s20, %s1343_s19  ;;  %p51_p4 = scmp.eq.s32.totalorder %s1359_s23, 0 }
  0x2e   : > { %s1745_s9 = smov (%p36_p1, %s34_s9), 0  ;;  %p1731_p8 = scmp.ne.s32.totalorder %s1725_s27, 0 }
  0x2f   : > { %p1504_p6 = por %p51_p4, %p50_p2  ;;  %s38_s8 = ssub.s32 %s1355_s22, %s1745_s9 }
  0x30   : > { %p1510_p10 = por %p1731_p8, %p50_p2  ;;  %p1139_p12 = scmp.lt.s32.totalorder %s1359_s23, 2 }
  0x31   : > { %p41_p11 = scmp.eq.s32.totalorder %s38_s8, 0  ;;  %s214_s7 = sand.u32 1, %s1347_s20  }
  0x32   : > { %s991_s14 = sshll.u32 %s214_s7, 8  ;;  %s1071_s16 = sshll.u32 %s1355_s22, 12 }
  0x33   : > { %s1519_s15 = scalar_select %p41_p11, %s1347_s20, %s43_s11  }
  0x34   : > { %s1525_s25 = scalar_lea.hbm %s1714_s0, %s1071_s16  ;;  %s218_s27 = scalar_lea.vmem [#allocation3], %s991_s14 }
  0x35   : > { %s228_s6 = sshll.u32 %s218_s27, 4  ;;  %p1531_p13 = pnand %p1139_p12, %p1504_p6  ;;  %s1527_s6 = int_to_ptr.vmem [resolvable:$true] %s228_s6 }
  0x36   : > { %s1535_s11 = scalar_lea.sflag [#allocation4], %s214_s7  ;;  %s1243_s8 = scalar_lea.hbm %s1525_s25, 4096 }
  0x37   : > { %p1244_p0 = scmp.ne.s32.totalorder %s1525_s25, %s1243_s8  ;;  %p1245_p3 = pneg %p1531_p13 }
  0x38   : > { %s1248_s12 = scalar_lea.hbm %s1714_s0, 8192  ;;  %p1249_p9 = scmp.lt.u32.totalorder %s1525_s25, %s1714_s0 }
  0x39   : > { %p1246_p5 = pnand %p1245_p3, %p1244_p0  ;;  %p1250_p1 = scmp.lt.u32.totalorder %s1248_s12, %s1243_s8 }
  0x3a   : > { %p1252_p4 = scmp.lt.u32.totalorder %s1243_s8, %s1525_s25 }
  0x3b   : > { %p1247_p7 = pneg %p1246_p5  ;;  %p1251_p2 = por %p1250_p1, %p1249_p9 }
  0x3d   : > { %p1253_p6 = por %p1252_p4, %p1251_p2 }
  0x3f   : > { %p1254_p8 = pnand %p1253_p6, %p1247_p7 }
  0x41   : > { %1257 = shalt.err (!%p1254_p8)
}
  0x42   : > { %s1258_s7 = scalar_lea.vmem %s1527_s6, 4096  ;;  %s1364_s27 = smov [#allocation3]  }
  0x43   : > { %p1259_p12 = scmp.ne.s32.totalorder %s1527_s6, %s1258_s7  ;;  %s1263_s14 = sshll.u32 %s1364_s27, 4  ;;  %s1264_s14 = int_to_ptr.vmem [resolvable:$false] %s1263_s14 }
  0x44   : > { %s1265_s16 = scalar_lea.vmem %s1264_s14, 8192  ;;  %p1266_p5 = scmp.lt.s32.totalorder %s1527_s6, %s1264_s14 }
  0x45   : > { %p1261_p11 = pnand %p1259_p12, %p1245_p3  ;;  %p1267_p9 = scmp.lt.s32.totalorder %s1265_s16, %s1258_s7 }
  0x47   : > { %p1262_p0 = pneg %p1261_p11  ;;  %p1268_p1 = por %p1267_p9, %p1266_p5 }
  0x49   : > { %p1269_p2 = pnand %p1268_p1, %p1262_p0 }
  0x4b   : > { %1272 = shalt.err (!%p1269_p2)
}
  0x4c   : > { %s1365_s8 = smov 64   ;;  %s1366_s12 = smov 4  }
  0x4d   : > { %1133 = dma.hbm_to_vmem [thread:$0]  (!%p1531_p13), %s1525_s25, 4096, %s1527_s6, %s1535_s11, %s1365_s8, %s1365_s8, %s1366_s12  }
  0x4e   : > { %p1734_p3 = scmp.ne.s32.totalorder %s1728_s30, 0 }
  0x4f   : > { %s1566_s17 = sand.u32 (!%p1734_p3), 1, %s1343_s19   ;;  %p1735_p7 = scmp.ne.s32.totalorder (!%p1734_p3), %s1726_s28, 0 }
  0x50   : > { %240 = sbr.rel (%p1734_p3) target bundleno = 737 (0x2e1), region = 40  ;;  %s995_s24 = sshll.u32 (!%p1734_p3), %s1566_s17, 8 }
  0x51   : > { %s243_s7 = scalar_lea.sflag (!%p1734_p3), [#allocation4], %s1566_s17  ;;  %s1570_s27 = scalar_lea.vmem (!%p1734_p3), [#allocation3], %s995_s24 }
  0x57   : > { %1326 = dma.done.wait (%p1735_p7), %s243_s7, 4096  }
  0x58   : > { %1328 = vsyncadd (%p1735_p7), %s243_s7, 4294963200  ;;  %p1736_p13 = scmp.ne.s32.totalorder %s1724_s26, 0 }
  0x5a   : > { %1330 = dma.done.wait (%p1736_p13), [#allocation7], 1024  }
  0x5b   : > { %1332 = vsyncadd (%p1736_p13), [#allocation7], 4294966272  ;;  %v1003_v0 = vld [vmem:[%s1570_s27 + $0x24] sm:$0xf]  ;;  %s1367_s30 = smov 4   ;;  %s1368_s26 = smov 8  }
  0x5c   : > { %v1001_v1 = vld [vmem:[%s1570_s27 + $0x4] sm:$0xf]  ;;  %309 = vrot.lane.b32.xlu1 %v1003_v0, %s1367_s30  ;;  %v1004_v2 = vld [vmem:[%s1570_s27 + $0x34] sm:$0xf]  ;;  %v1006_v4 = vld [vmem:[%s1570_s27 + $0x18] sm:$0xf] }
  0x5d   : > { %294 = vrot.lane.b32.xlu0 %v1001_v1, %s1367_s30  ;;  %v1002_v3 = vld [vmem:[%s1570_s27 + $0x14] sm:$0xf]  ;;  %v1005_v5 = vld [vmem:[%s1570_s27 + $0x8] sm:$0xf]  ;;  %v1008_v6 = vld [vmem:[%s1570_s27 + $0x38] sm:$0xf] }
  0x5e   : > { %v1007_v7 = vld [vmem:[%s1570_s27 + $0x28] sm:$0xf]  ;;  %v1010_v8 = vld [vmem:[%s1570_s27 + $0x1c] sm:$0xf]  ;;  %v1009_v9 = vld [vmem:[%s1570_s27 + $0xc] sm:$0xf] }
  0x5f   : > { %s1369_s28 = smov 12   ;;  %v1012_v10 = vld [vmem:[%s1570_s27 + $0x3c] sm:$0xf]  ;;  %v1011_v11 = vld [vmem:[%s1570_s27 + $0x2c] sm:$0xf]  ;;  %vm280_vm0 = vcmask 27648  }
  0x60   : > { %316 = vrot.lane.b32.xlu1 %v1004_v2, %s1367_s30  ;;  %v999_v12 = vld [vmem:[%s1570_s27 + $0x20] sm:$0xf]  ;;  %v1014_v14 = vld [vmem:[%s1570_s27 + $0x50] sm:$0xf]  ;;  %s1370_s25 = smov 16   ;;  %s1371_s6 = smov 20  }
  0x61   : > { %302 = vrot.lane.b32.xlu0 %v1002_v3, %s1367_s30  ;;  %v279_v13 = vld [vmem:[%s1570_s27] sm:$0xf]  ;;  %287 = vst.msk [vmem:[#allocation2 + $0x8] sm:$0xf] %vm280_vm0, %v999_v12  ;;  %v1000_v16 = vld [vmem:[%s1570_s27 + $0x30] sm:$0xf] }
  0x62   : > { %v1013_v15 = vld [vmem:[%s1570_s27 + $0x40] sm:$0xf]  ;;  %281 = vst.msk [vmem:[#allocation2] sm:$0xf] %vm280_vm0, %v279_v13  ;;  %290 = vst.msk [vmem:[#allocation2 + $0xc] sm:$0xf] %vm280_vm0, %v1000_v16 }
  0x63   : > { %v998_v17 = vld [vmem:[%s1570_s27 + $0x10] sm:$0xf]  ;;  %v1015_v19 = vld [vmem:[%s1570_s27 + $0x60] sm:$0xf]  ;;  %v1018_v20 = vld [vmem:[%s1570_s27 + $0x54] sm:$0xf] }
  0x64   : > { %331 = vrot.lane.b32.xlu1 %v1006_v4, %s1368_s26  ;;  %284 = vst.msk [vmem:[#allocation2 + $0x4] sm:$0xf] %vm280_vm0, %v998_v17  ;;  %v1016_v18 = vld [vmem:[%s1570_s27 + $0x70] sm:$0xf]  ;;  %v1017_v21 = vld [vmem:[%s1570_s27 + $0x44] sm:$0xf] }
  0x65   : > { %323 = vrot.lane.b32.xlu0 %v1005_v5, %s1368_s26  ;;  %v1020_v22 = vld [vmem:[%s1570_s27 + $0x74] sm:$0xf]  ;;  %v1019_v23 = vld [vmem:[%s1570_s27 + $0x64] sm:$0xf]  ;;  %v1022_v24 = vld [vmem:[%s1570_s27 + $0x58] sm:$0xf] }
  0x66   : > { %v1021_v25 = vld [vmem:[%s1570_s27 + $0x48] sm:$0xf]  ;;  %s1372_s10 = smov 24   ;;  %v1024_v26 = vld [vmem:[%s1570_s27 + $0x78] sm:$0xf]  ;;  %s1373_s11 = smov 28  }
  0x67   : > { %v1023_v27 = vld [vmem:[%s1570_s27 + $0x68] sm:$0xf]  ;;  %v1026_v28 = vld [vmem:[%s1570_s27 + $0x5c] sm:$0xf]  ;;  %v1025_v29 = vld [vmem:[%s1570_s27 + $0x4c] sm:$0xf] }
  0x68   : > { %345 = vrot.lane.b32.xlu1 %v1008_v6, %s1368_s26  ;;  %v1028_v30 = vld [vmem:[%s1570_s27 + $0x7c] sm:$0xf]  ;;  %v1027_v31 = vld [vmem:[%s1570_s27 + $0x6c] sm:$0xf]  ;;  %v1030_v32 = vld [vmem:[%s1570_s27 + $0x90] sm:$0xf] }
  0x69   : > { %338 = vrot.lane.b32.xlu0 %v1007_v7, %s1368_s26  ;;  %v1029_v33 = vld [vmem:[%s1570_s27 + $0x80] sm:$0xf]  ;;  %s1374_s14 = smov 32   ;;  %v1032_v34 = vld [vmem:[%s1570_s27 + $0xb0] sm:$0xf]  ;;  %s1375_s16 = smov 36  }
  0x6a   : > { %v1031_v35 = vld [vmem:[%s1570_s27 + $0xa0] sm:$0xf]  ;;  %v1034_v36 = vld [vmem:[%s1570_s27 + $0x94] sm:$0xf]  ;;  %v1033_v37 = vld [vmem:[%s1570_s27 + $0x84] sm:$0xf] }
  0x6b   : > { %v1036_v38 = vld [vmem:[%s1570_s27 + $0xb4] sm:$0xf]  ;;  %v1035_v39 = vld [vmem:[%s1570_s27 + $0xa4] sm:$0xf]  ;;  %v1038_v40 = vld [vmem:[%s1570_s27 + $0x98] sm:$0xf] }
  0x6c   : > { %360 = vrot.lane.b32.xlu1 %v1010_v8, %s1369_s28  ;;  %v1037_v41 = vld [vmem:[%s1570_s27 + $0x88] sm:$0xf]  ;;  %s1376_s8 = smov 40   ;;  %v1040_v42 = vld [vmem:[%s1570_s27 + $0xb8] sm:$0xf]  ;;  %s1377_s12 = smov 44  }
  0x6d   : > { %352 = vrot.lane.b32.xlu0 %v1009_v9, %s1369_s28  ;;  %v1039_v43 = vld [vmem:[%s1570_s27 + $0xa8] sm:$0xf]  ;;  %v1042_v44 = vld [vmem:[%s1570_s27 + $0x9c] sm:$0xf]  ;;  %v1041_v45 = vld [vmem:[%s1570_s27 + $0x8c] sm:$0xf] }
  0x6e   : > { %v1044_v46 = vld [vmem:[%s1570_s27 + $0xbc] sm:$0xf]  ;;  %v1043_v47 = vld [vmem:[%s1570_s27 + $0xac] sm:$0xf]  ;;  %v1046_v48 = vld [vmem:[%s1570_s27 + $0xd0] sm:$0xf] }
  0x6f   : > { %v1045_v49 = vld [vmem:[%s1570_s27 + $0xc0] sm:$0xf]  ;;  %s1378_s24 = smov 48   ;;  %v1048_v50 = vld [vmem:[%s1570_s27 + $0xf0] sm:$0xf]  ;;  %v729_v53 = vld [vmem:[#allocation6 + $0x8] sm:$0xff] }
  0x70   : > { %374 = vrot.lane.b32.xlu1 %v1012_v10, %s1369_s28  ;;  %v1047_v51 = vld [vmem:[%s1570_s27 + $0xe0] sm:$0xf]  ;;  %v1050_v54 = vld [vmem:[%s1570_s27 + $0xd4] sm:$0xf]  ;;  %v1049_v55 = vld [vmem:[%s1570_s27 + $0xc4] sm:$0xf] }
  0x71   : > { %367 = vrot.lane.b32.xlu0 %v1011_v11, %s1369_s28  ;;  %v728_v52 = vld [vmem:[#allocation6] sm:$0xff]  ;;  %s1379_s7 = smov 52   ;;  %v730_v57 = vld [vmem:[#allocation6 + $0x10] sm:$0xff]  ;;  %v731_v58 = vld [vmem:[#allocation6 + $0x18] sm:$0xff]  ;;  %s1380_s30 = smov 56   ;;  %vm297_vm1 = vcmask 60448  }
  0x72   : > { %v1102_v56 = vpack.c.bf16 %v729_v53, %v728_v52  ;;  %v1052_v59 = vld [vmem:[%s1570_s27 + $0xf4] sm:$0xf]  ;;  %v1051_v60 = vld [vmem:[%s1570_s27 + $0xe4] sm:$0xf]  ;;  %v1106_v61 = vpack.c.bf16 %v731_v58, %v730_v57  ;;  %v733_v63 = vld [vmem:[#allocation6 + $0x28] sm:$0xff]  ;;  %s1381_s28 = smov 60  }
  0x73   : > { %v732_v62 = vld [vmem:[#allocation6 + $0x20] sm:$0xff]  ;;  %v1054_v0 = vld [vmem:[%s1570_s27 + $0xd8] sm:$0xf]  ;;  %v1053_v1 = vld [vmem:[%s1570_s27 + $0xc8] sm:$0xf]  ;;  %vm326_vm2 = vcmask 93248  }
  0x74   : > { %389 = vrot.lane.b32.xlu1 %v1014_v14, %s1370_s25  ;;  %1103 = vmatprep.subr.bf16.mxu0 %v1102_v56  ;;  %v1110_v2 = vpack.c.bf16 %v733_v63, %v732_v62  ;;  %v734_v3 = vld [vmem:[#allocation6 + $0x30] sm:$0xff]  ;;  %v735_v4 = vld [vmem:[#allocation6 + $0x38] sm:$0xff]  ;;  %v1055_v7 = vld [vmem:[%s1570_s27 + $0xe8] sm:$0xf]  ;;  %vm355_vm3 = vcmask 126048   ;;  %vm384_vm4 = vcmask 158848  }
  0x75   : > { %381 = vrot.lane.b32.xlu0 %v1013_v15, %s1370_s25  ;;  %1105 = vmatpush3.bf16.msra.mxu0 %v1102_v56  ;;  %v1114_v5 = vpack.c.bf16 %v735_v4, %v734_v3  ;;  %v1056_v6 = vld [vmem:[%s1570_s27 + $0xf8] sm:$0xf]  ;;  %v1058_v8 = vld [vmem:[%s1570_s27 + $0xdc] sm:$0xf]  ;;  %v1057_v9 = vld [vmem:[%s1570_s27 + $0xcc] sm:$0xf] }
  0x76   : > { %1107 = vmatprep.subr.bf16.mxu0 %v1106_v61  ;;  %v1060_v10 = vld [vmem:[%s1570_s27 + $0xfc] sm:$0xf]  ;;  %v1059_v11 = vld [vmem:[%s1570_s27 + $0xec] sm:$0xf]  ;;  %vm413_vm5 = vcmask 191648   ;;  %vm442_vm6 = vcmask 224448  }
  0x77   : > { %vm471_vm7 = vcmask 257248   ;;  %vm500_vm8 = vcmask 290048   ;;  %vm529_vm9 = vcmask 322848   ;;  %vm558_vm10 = vcmask 355648   ;;  %s874_s27 = scalar_lea.sflag [#allocation5], %s1566_s17 }
  0x78   : > { %403 = vrot.lane.b32.xlu1 %v1016_v18, %s1370_s25  ;;  %vm587_vm11 = vcmask 388448   ;;  %vm616_vm12 = vcmask 421248   ;;  %vm645_vm13 = vcmask 454048   ;;  %vm674_vm14 = vcmask 486848  }
  0x79   : > { %396 = vrot.lane.b32.xlu0 %v1015_v19, %s1370_s25  ;;  %1109 = vmatpush3.bf16.msra.mxu0 %v1106_v61  ;;  %vm703_vm15 = vcmask 519648   ;;  %vm743_vm0 = vcmask 523264  }
  0x7a   : > { %1111 = vmatprep.subr.bf16.mxu0 %v1110_v2 }
  0x7c   : > { %418 = vrot.lane.b32.xlu1 %v1018_v20, %s1371_s6 }
  0x7d   : > { %410 = vrot.lane.b32.xlu0 %v1017_v21, %s1371_s6  ;;  %1113 = vmatpush3.bf16.msra.mxu0 %v1110_v2 }
  0x7e   : > { %1115 = vmatprep.subr.bf16.mxu0 %v1114_v5 }
  0x80   : > { %432 = vrot.lane.b32.xlu1 %v1020_v22, %s1371_s6 }
  0x81   : > { %425 = vrot.lane.b32.xlu0 %v1019_v23, %s1371_s6  ;;  %1117 = vmatpush3.bf16.msra.mxu0 %v1114_v5 }
  0x84   : > { %447 = vrot.lane.b32.xlu1 %v1022_v24, %s1372_s10 }
  0x85   : > { %439 = vrot.lane.b32.xlu0 %v1021_v25, %s1372_s10 }
  0x88   : > { %461 = vrot.lane.b32.xlu1 %v1024_v26, %s1372_s10 }
  0x89   : > { %454 = vrot.lane.b32.xlu0 %v1023_v27, %s1372_s10 }
  0x8c   : > { %476 = vrot.lane.b32.xlu1 %v1026_v28, %s1373_s11 }
  0x8d   : > { %468 = vrot.lane.b32.xlu0 %v1025_v29, %s1373_s11 }
  0x90   : > { %490 = vrot.lane.b32.xlu1 %v1028_v30, %s1373_s11 }
  0x91   : > { %483 = vrot.lane.b32.xlu0 %v1027_v31, %s1373_s11  ;;  %s997_s11 = sshll.u32 %s1566_s17, 4 }
  0x94   : > { %505 = vrot.lane.b32.xlu1 %v1030_v32, %s1374_s14 }
  0x95   : > { %497 = vrot.lane.b32.xlu0 %v1029_v33, %s1374_s14 }
  0x98   : > { %519 = vrot.lane.b32.xlu1 %v1032_v34, %s1374_s14 }
  0x99   : > { %512 = vrot.lane.b32.xlu0 %v1031_v35, %s1374_s14 }
  0x9c   : > { %534 = vrot.lane.b32.xlu1 %v1034_v36, %s1375_s16 }
  0x9d   : > { %526 = vrot.lane.b32.xlu0 %v1033_v37, %s1375_s16 }
  0xa0   : > { %548 = vrot.lane.b32.xlu1 %v1036_v38, %s1375_s16 }
  0xa1   : > { %541 = vrot.lane.b32.xlu0 %v1035_v39, %s1375_s16 }
  0xa4   : > { %563 = vrot.lane.b32.xlu1 %v1038_v40, %s1376_s8 }
  0xa5   : > { %555 = vrot.lane.b32.xlu0 %v1037_v41, %s1376_s8 }
  0xa8   : > { %577 = vrot.lane.b32.xlu1 %v1040_v42, %s1376_s8 }
  0xa9   : > { %570 = vrot.lane.b32.xlu0 %v1039_v43, %s1376_s8  ;;  %s1072_s8 = sshll.u32 %s1351_s21, 8  ;;  %s1382_s21 = smov [#allocation8]  }
  0xaa   : > { %s1277_s6 = sshll.u32 %s1382_s21, 4  ;;  %s1278_s6 = int_to_ptr.vmem [resolvable:$false] %s1277_s6 }
  0xab   : > { %s1279_s10 = scalar_lea.vmem %s1278_s6, 512 }
  0xac   : > { %592 = vrot.lane.b32.xlu1 %v1042_v44, %s1377_s12 }
  0xad   : > { %584 = vrot.lane.b32.xlu0 %v1041_v45, %s1377_s12 }
  0xb0   : > { %606 = vrot.lane.b32.xlu1 %v1044_v46, %s1377_s12 }
  0xb1   : > { %599 = vrot.lane.b32.xlu0 %v1043_v47, %s1377_s12  ;;  %s276_s12 = scalar_lea.vmem [#allocation8], %s997_s11 }
  0xb4   : > { %621 = vrot.lane.b32.xlu1 %v1046_v48, %s1378_s24 }
  0xb5   : > { %613 = vrot.lane.b32.xlu0 %v1045_v49, %s1378_s24 }
  0xb8   : > { %635 = vrot.lane.b32.xlu1 %v1048_v50, %s1378_s24 }
  0xb9   : > { %628 = vrot.lane.b32.xlu0 %v1047_v51, %s1378_s24  ;;  %s889_s24 = sshll.u32 %s276_s12, 4  ;;  %s1664_s24 = int_to_ptr.vmem [resolvable:$true] %s889_s24 }
  0xba   : > { %s1273_s25 = scalar_lea.vmem %s1664_s24, 256  ;;  %p1280_p12 = scmp.lt.s32.totalorder %s1664_s24, %s1278_s6 }
  0xbb   : > { %p1274_p4 = scmp.ne.s32.totalorder %s1664_s24, %s1273_s25  ;;  %p1281_p11 = scmp.lt.s32.totalorder %s1279_s10, %s1273_s25 }
  0xbc   : > { %650 = vrot.lane.b32.xlu1 %v1050_v54, %s1379_s7 }
  0xbd   : > { %642 = vrot.lane.b32.xlu0 %v1049_v55, %s1379_s7  ;;  %p1275_p6 = pnand %p1274_p4, %p1510_p10  ;;  %p1282_p0 = por %p1281_p11, %p1280_p12 }
  0xbf   : > { %p1276_p8 = pneg %p1275_p6 }
  0xc0   : > { %664 = vrot.lane.b32.xlu1 %v1052_v59, %s1379_s7 }
  0xc1   : > { %657 = vrot.lane.b32.xlu0 %v1051_v60, %s1379_s7  ;;  %p1283_p5 = pnand %p1282_p0, %p1276_p8 }
  0xc4   : > { %679 = vrot.lane.b32.xlu1 %v1054_v0, %s1380_s30 }
  0xc5   : > { %671 = vrot.lane.b32.xlu0 %v1053_v1, %s1380_s30 }
  0xc8   : > { %693 = vrot.lane.b32.xlu1 %v1056_v6, %s1380_s30 }
  0xc9   : > { %686 = vrot.lane.b32.xlu0 %v1055_v7, %s1380_s30 }
  0xcc   : > { %708 = vrot.lane.b32.xlu1 %v1058_v8, %s1381_s28 }
  0xcd   : > { %700 = vrot.lane.b32.xlu0 %v1057_v9, %s1381_s28 }
  0xce   : > { %v310_v12 = vpop.permute.xlu1 %309 }
  0xcf   : > { %v295_v13 = vpop.permute.xlu0 %294  ;;  %312 = vst.msk [vmem:[#allocation2 + $0x8] sm:$0xf] %vm297_vm1, %v310_v12 }
  0xd0   : > { %298 = vst.msk [vmem:[#allocation2] sm:$0xf] %vm297_vm1, %v295_v13  ;;  %722 = vrot.lane.b32.xlu1 %v1060_v10, %s1381_s28  ;;  %v1061_v10 = vld [vmem:[%s1716_s2] ss:$0 sm:$0xff] }
  0xd1   : > { %715 = vrot.lane.b32.xlu0 %v1059_v11, %s1381_s28  ;;  %s1662_s28 = scalar_lea.hbm %s1719_s5, %s1072_s8 }
  0xd2   : > { %v317_v14 = vpop.permute.xlu1 %316 }
  0xd3   : > { %v303_v15 = vpop.permute.xlu0 %302  ;;  %319 = vst.msk [vmem:[#allocation2 + $0xc] sm:$0xf] %vm297_vm1, %v317_v14 }
  0xd4   : > { %305 = vst.msk [vmem:[#allocation2 + $0x4] sm:$0xf] %vm297_vm1, %v303_v15 }
  0xd6   : > { %v332_v16 = vpop.permute.xlu1 %331 }
  0xd7   : > { %v324_v17 = vpop.permute.xlu0 %323  ;;  %334 = vst.msk [vmem:[#allocation2 + $0x4] sm:$0xf] %vm326_vm2, %v332_v16 }
  0xd8   : > { %327 = vst.msk [vmem:[#allocation2] sm:$0xf] %vm326_vm2, %v324_v17 }
  0xda   : > { %v346_v18 = vpop.permute.xlu1 %345 }
  0xdb   : > { %v339_v19 = vpop.permute.xlu0 %338  ;;  %348 = vst.msk [vmem:[#allocation2 + $0xc] sm:$0xf] %vm326_vm2, %v346_v18 }
  0xdc   : > { %341 = vst.msk [vmem:[#allocation2 + $0x8] sm:$0xf] %vm326_vm2, %v339_v19 }
  0xde   : > { %v361_v20 = vpop.permute.xlu1 %360 }
  0xdf   : > { %v353_v21 = vpop.permute.xlu0 %352  ;;  %363 = vst.msk [vmem:[#allocation2 + $0x4] sm:$0xf] %vm355_vm3, %v361_v20 }
  0xe0   : > { %356 = vst.msk [vmem:[#allocation2] sm:$0xf] %vm355_vm3, %v353_v21 }
  0xe2   : > { %v375_v22 = vpop.permute.xlu1 %374 }
  0xe3   : > { %v368_v23 = vpop.permute.xlu0 %367  ;;  %377 = vst.msk [vmem:[#allocation2 + $0xc] sm:$0xf] %vm355_vm3, %v375_v22 }
  0xe4   : > { %370 = vst.msk [vmem:[#allocation2 + $0x8] sm:$0xf] %vm355_vm3, %v368_v23 }
  0xe6   : > { %v390_v24 = vpop.permute.xlu1 %389 }
  0xe7   : > { %v382_v25 = vpop.permute.xlu0 %381  ;;  %392 = vst.msk [vmem:[#allocation2 + $0x4] sm:$0xf] %vm384_vm4, %v390_v24 }
  0xe8   : > { %385 = vst.msk [vmem:[#allocation2] sm:$0xf] %vm384_vm4, %v382_v25 }
  0xea   : > { %v404_v26 = vpop.permute.xlu1 %403 }
  0xeb   : > { %v397_v27 = vpop.permute.xlu0 %396  ;;  %406 = vst.msk [vmem:[#allocation2 + $0xc] sm:$0xf] %vm384_vm4, %v404_v26 }
  0xec   : > { %399 = vst.msk [vmem:[#allocation2 + $0x8] sm:$0xf] %vm384_vm4, %v397_v27 }
  0xee   : > { %v419_v28 = vpop.permute.xlu1 %418 }
  0xef   : > { %v411_v29 = vpop.permute.xlu0 %410  ;;  %421 = vst.msk [vmem:[#allocation2 + $0x4] sm:$0xf] %vm413_vm5, %v419_v28 }
  0xf0   : > { %414 = vst.msk [vmem:[#allocation2] sm:$0xf] %vm413_vm5, %v411_v29 }
  0xf2   : > { %v433_v30 = vpop.permute.xlu1 %432 }
  0xf3   : > { %v426_v31 = vpop.permute.xlu0 %425  ;;  %435 = vst.msk [vmem:[#allocation2 + $0xc] sm:$0xf] %vm413_vm5, %v433_v30 }
  0xf4   : > { %428 = vst.msk [vmem:[#allocation2 + $0x8] sm:$0xf] %vm413_vm5, %v426_v31 }
  0xf6   : > { %v448_v32 = vpop.permute.xlu1 %447 }
  0xf7   : > { %v440_v33 = vpop.permute.xlu0 %439  ;;  %450 = vst.msk [vmem:[#allocation2 + $0x4] sm:$0xf] %vm442_vm6, %v448_v32 }
  0xf8   : > { %443 = vst.msk [vmem:[#allocation2] sm:$0xf] %vm442_vm6, %v440_v33 }
  0xfa   : > { %v462_v34 = vpop.permute.xlu1 %461 }
  0xfb   : > { %v455_v35 = vpop.permute.xlu0 %454  ;;  %464 = vst.msk [vmem:[#allocation2 + $0xc] sm:$0xf] %vm442_vm6, %v462_v34 }
  0xfc   : > { %457 = vst.msk [vmem:[#allocation2 + $0x8] sm:$0xf] %vm442_vm6, %v455_v35  ;;  %v1064_v35 = vld [vmem:[%s1717_s3] ss:$0 sm:$0xff] }
  0xfe   : > { %v477_v36 = vpop.permute.xlu1 %476 }
  0xff   : > { %v469_v37 = vpop.permute.xlu0 %468  ;;  %479 = vst.msk [vmem:[#allocation2 + $0x4] sm:$0xf] %vm471_vm7, %v477_v36 }
 0x100   : > { %472 = vst.msk [vmem:[#allocation2] sm:$0xf] %vm471_vm7, %v469_v37  ;;  %v1065_v37 = vld [vmem:[%s1718_s4] ss:$0 sm:$0xff] }
 0x102   : > { %v491_v38 = vpop.permute.xlu1 %490 }
 0x103   : > { %v484_v39 = vpop.permute.xlu0 %483  ;;  %493 = vst.msk [vmem:[#allocation2 + $0xc] sm:$0xf] %vm471_vm7, %v491_v38 }
 0x104   : > { %486 = vst.msk [vmem:[#allocation2 + $0x8] sm:$0xf] %vm471_vm7, %v484_v39 }
 0x106   : > { %v506_v40 = vpop.permute.xlu1 %505 }
 0x107   : > { %v498_v41 = vpop.permute.xlu0 %497  ;;  %508 = vst.msk [vmem:[#allocation2 + $0x4] sm:$0xf] %vm500_vm8, %v506_v40 }
 0x108   : > { %501 = vst.msk [vmem:[#allocation2] sm:$0xf] %vm500_vm8, %v498_v41 }
 0x10a   : > { %v520_v42 = vpop.permute.xlu1 %519 }
 0x10b   : > { %v513_v43 = vpop.permute.xlu0 %512  ;;  %522 = vst.msk [vmem:[#allocation2 + $0xc] sm:$0xf] %vm500_vm8, %v520_v42 }
 0x10c   : > { %515 = vst.msk [vmem:[#allocation2 + $0x8] sm:$0xf] %vm500_vm8, %v513_v43 }
 0x10e   : > { %v535_v44 = vpop.permute.xlu1 %534 }
 0x10f   : > { %v527_v45 = vpop.permute.xlu0 %526  ;;  %537 = vst.msk [vmem:[#allocation2 + $0x4] sm:$0xf] %vm529_vm9, %v535_v44 }
 0x110   : > { %530 = vst.msk [vmem:[#allocation2] sm:$0xf] %vm529_vm9, %v527_v45 }
 0x112   : > { %v549_v46 = vpop.permute.xlu1 %548 }
 0x113   : > { %v542_v47 = vpop.permute.xlu0 %541  ;;  %551 = vst.msk [vmem:[#allocation2 + $0xc] sm:$0xf] %vm529_vm9, %v549_v46 }
 0x114   : > { %544 = vst.msk [vmem:[#allocation2 + $0x8] sm:$0xf] %vm529_vm9, %v542_v47 }
 0x116   : > { %v564_v48 = vpop.permute.xlu1 %563 }
 0x117   : > { %v556_v49 = vpop.permute.xlu0 %555  ;;  %566 = vst.msk [vmem:[#allocation2 + $0x4] sm:$0xf] %vm558_vm10, %v564_v48 }
 0x118   : > { %559 = vst.msk [vmem:[#allocation2] sm:$0xf] %vm558_vm10, %v556_v49 }
 0x11a   : > { %v578_v50 = vpop.permute.xlu1 %577 }
 0x11b   : > { %v571_v51 = vpop.permute.xlu0 %570  ;;  %580 = vst.msk [vmem:[#allocation2 + $0xc] sm:$0xf] %vm558_vm10, %v578_v50 }
 0x11c   : > { %573 = vst.msk [vmem:[#allocation2 + $0x8] sm:$0xf] %vm558_vm10, %v571_v51 }
 0x11e   : > { %v593_v52 = vpop.permute.xlu1 %592 }
 0x11f   : > { %v585_v53 = vpop.permute.xlu0 %584  ;;  %595 = vst.msk [vmem:[#allocation2 + $0x4] sm:$0xf] %vm587_vm11, %v593_v52 }
 0x120   : > { %588 = vst.msk [vmem:[#allocation2] sm:$0xf] %vm587_vm11, %v585_v53 }
 0x122   : > { %v607_v54 = vpop.permute.xlu1 %606 }
 0x123   : > { %v600_v55 = vpop.permute.xlu0 %599  ;;  %609 = vst.msk [vmem:[#allocation2 + $0xc] sm:$0xf] %vm587_vm11, %v607_v54 }
 0x124   : > { %602 = vst.msk [vmem:[#allocation2 + $0x8] sm:$0xf] %vm587_vm11, %v600_v55 }
 0x126   : > { %v622_v56 = vpop.permute.xlu1 %621 }
 0x127   : > { %v614_v57 = vpop.permute.xlu0 %613  ;;  %624 = vst.msk [vmem:[#allocation2 + $0x4] sm:$0xf] %vm616_vm12, %v622_v56 }
 0x128   : > { %617 = vst.msk [vmem:[#allocation2] sm:$0xf] %vm616_vm12, %v614_v57 }
 0x12a   : > { %v636_v58 = vpop.permute.xlu1 %635 }
 0x12b   : > { %v629_v59 = vpop.permute.xlu0 %628  ;;  %638 = vst.msk [vmem:[#allocation2 + $0xc] sm:$0xf] %vm616_vm12, %v636_v58 }
 0x12c   : > { %631 = vst.msk [vmem:[#allocation2 + $0x8] sm:$0xf] %vm616_vm12, %v629_v59 }
 0x12e   : > { %v651_v60 = vpop.permute.xlu1 %650 }
 0x12f   : > { %v643_v61 = vpop.permute.xlu0 %642  ;;  %653 = vst.msk [vmem:[#allocation2 + $0x4] sm:$0xf] %vm645_vm13, %v651_v60 }
 0x130   : > { %646 = vst.msk [vmem:[#allocation2] sm:$0xf] %vm645_vm13, %v643_v61 }
 0x132   : > { %v665_v62 = vpop.permute.xlu1 %664 }
 0x133   : > { %v658_v63 = vpop.permute.xlu0 %657  ;;  %667 = vst.msk [vmem:[#allocation2 + $0xc] sm:$0xf] %vm645_vm13, %v665_v62 }
 0x134   : > { %660 = vst.msk [vmem:[#allocation2 + $0x8] sm:$0xf] %vm645_vm13, %v658_v63 }
 0x136   : > { %v680_v0 = vpop.permute.xlu1 %679 }
 0x137   : > { %v672_v1 = vpop.permute.xlu0 %671  ;;  %682 = vst.msk [vmem:[#allocation2 + $0x4] sm:$0xf] %vm674_vm14, %v680_v0 }
 0x138   : > { %675 = vst.msk [vmem:[#allocation2] sm:$0xf] %vm674_vm14, %v672_v1 }
 0x13a   : > { %v694_v2 = vpop.permute.xlu1 %693 }
 0x13b   : > { %v687_v3 = vpop.permute.xlu0 %686  ;;  %696 = vst.msk [vmem:[#allocation2 + $0xc] sm:$0xf] %vm674_vm14, %v694_v2 }
 0x13c   : > { %689 = vst.msk [vmem:[#allocation2 + $0x8] sm:$0xf] %vm674_vm14, %v687_v3 }
 0x13e   : > { %v709_v4 = vpop.permute.xlu1 %708 }
 0x13f   : > { %v701_v5 = vpop.permute.xlu0 %700  ;;  %711 = vst.msk [vmem:[#allocation2 + $0x4] sm:$0xf] %vm703_vm15, %v709_v4 }
 0x140   : > { %704 = vst.msk [vmem:[#allocation2] sm:$0xf] %vm703_vm15, %v701_v5 }
 0x142   : > { %v723_v6 = vpop.permute.xlu1 %722 }
 0x143   : > { %v716_v7 = vpop.permute.xlu0 %715  ;;  %725 = vst.msk [vmem:[#allocation2 + $0xc] sm:$0xf] %vm703_vm15, %v723_v6 }
 0x144   : > { %718 = vst.msk [vmem:[#allocation2 + $0x8] sm:$0xf] %vm703_vm15, %v716_v7 }
 0x147   : > { %v726_v8 = vld [vmem:[#allocation2] sm:$0xff] }
 0x148   : > { %1099 = vmatprep.mubr.msk.f32.mxu0 %vm743_vm0, %v726_v8 }
 0x14b   : > { %v727_v9 = vld [vmem:[#allocation2 + $0x8] sm:$0xff] }
 0x14c   : > { %1100 = vmatmul.mubr.msk.f32.vlgmr.msra.gmra.mrb[0].mxu0 %vm743_vm0, %v727_v9 }
 0x21f   : > { %v1101_v11 = vpop.f32.mrb[0].mxu0 }
 0x220   : > { %v822_v12 = vadd.f32 %v1101_v11, %v1061_v10  ;;  %v816_v13 = vpop.f32.mrb[1].mxu0 }
 0x221   : > { %v817_v14 = vadd.f32 %v1061_v10, %v816_v13 }
 0x222   : > { %827 = vadd.xlane.f32.xlu1 %v822_v12  ;;  %v832_v16 = vmul.f32 %v822_v12, %v822_v12 }
 0x223   : > { %825 = vadd.xlane.f32.xlu0 %v817_v14  ;;  %v831_v15 = vmul.f32 %v817_v14, %v817_v14 }
 0x227   : > { %833 = vadd.xlane.f32.xlu0 %v831_v15 }
 0x22b   : > { %835 = vadd.xlane.f32.xlu0 %v832_v16 }
 0x2af   : > { %v828_v19 = vpop.xlane.xlu1 %827 }
 0x2b0   : > { %v826_v17 = vpop.xlane.xlu0 %825  ;;  %v830_v21 = vmul.f32 0.03125, %v828_v19 }
 0x2b1   : > { %v829_v18 = vmul.f32 0.03125, %v826_v17 }
 0x2b2   : > { %v840_v26 = vmul.f32 %v830_v21, %v830_v21  ;;  %v850_v38 = vsub.f32 %v822_v12, %v830_v21 }
 0x2b3   : > { %v839_v22 = vmul.f32 %v829_v18, %v829_v18  ;;  %v849_v33 = vsub.f32 %v817_v14, %v829_v18 }
 0x2b4   : > { %v834_v20 = vpop.xlane.xlu0 %833 }
 0x2b5   : > { %v837_v23 = vmul.f32 0.03125, %v834_v20 }
 0x2b7   : > { %v841_v24 = vsub.f32 %v837_v23, %v839_v22 }
 0x2b8   : > { %v836_v25 = vpop.xlane.xlu0 %835 }
 0x2b9   : > { %v843_v27 = vmax.f32 %v841_v24, 0.0  ;;  %v838_v28 = vmul.f32 0.03125, %v836_v25 }
 0x2bb   : > { %v845_v29 = vadd.f32 1e-05, %v843_v27  ;;  %v842_v30 = vsub.f32 %v838_v28, %v840_v26 }
 0x2bd   : > { %1211 = vrsqrt.f32 %v845_v29  ;;  %v844_v31 = vmax.f32 %v842_v30, 0.0 }
 0x2bf   : > { %v846_v32 = vadd.f32 1e-05, %v844_v31 }
 0x2c1   : > { %1213 = vrsqrt.f32 %v846_v32 }
 0x2c7   : > { %v1212_v34 = vpop.eup %1211 }
 0x2c8   : > { %v851_v36 = vmul.f32 %v1212_v34, %v849_v33 }
 0x2ca   : > { %v860_v39 = vmul.f32 %v1064_v35, %v851_v36 }
 0x2cb   : > { %v1214_v40 = vpop.eup %1213 }
 0x2cc   : > { %v869_v41 = vadd.f32 %v1065_v37, %v860_v39  ;;  %v852_v42 = vmul.f32 %v1214_v40, %v850_v38 }
 0x2ce   : > { %v861_v43 = vmul.f32 %v1064_v35, %v852_v42  ;;  %871 = vst [vmem:[%s276_s12] sm:$0xff] %v869_v41 }
 0x2d0   : > { %v870_v44 = vadd.f32 %v1065_v37, %v861_v43 }
 0x2d2   : > { %872 = vst [vmem:[%s276_s12 + $0x8] sm:$0xff] %v870_v44 }
 0x2d3   : > { %1286 = shalt.err (!%p1283_p5)
}
 0x2d4   : > { %s1287_s11 = scalar_lea.hbm %s1662_s28, 256  ;;  %s1291_s8 = scalar_lea.hbm %s1719_s5, 512 }
 0x2d5   : > { %p1288_p9 = scmp.ne.s32.totalorder %s1662_s28, %s1287_s11  ;;  %p1292_p3 = scmp.lt.u32.totalorder %s1662_s28, %s1719_s5 }
 0x2d6   : > { %p1293_p7 = scmp.lt.u32.totalorder %s1291_s8, %s1287_s11  ;;  %p1295_p4 = scmp.lt.u32.totalorder %s1287_s11, %s1662_s28 }
 0x2d7   : > { %p1289_p1 = pnand %p1288_p9, %p1510_p10 }
 0x2d8   : > { %p1294_p13 = por %p1293_p7, %p1292_p3 }
 0x2d9   : > { %p1290_p2 = pneg %p1289_p1 }
 0x2da   : > { %p1296_p6 = por %p1295_p4, %p1294_p13 }
 0x2dc   : > { %p1297_p8 = pnand %p1296_p6, %p1290_p2 }
 0x2de   : > { %1300 = shalt.err (!%p1297_p8)
}
 0x2df   : > { %s1383_s30 = smov 128  }
 0x2e0   : > { %1124 = dma.vmem_to_hbm [thread:$0]  (%p1510_p10), %s1664_s24, 256, %s1662_s28, %s874_s27, %s1383_s30, %s1383_s30, %s1368_s26  }
 0x2e1 PF: > { %s904_s25 = sand.u32 1, %s1339_s18   ;;  %p1737_p12 = scmp.ne.s32.totalorder %s1727_s29, 0 }
 0x2e2   : > { %p1738_p11 = scmp.ge.s32.totalorder %s1359_s23, 2  ;;  %s905_s21 = scalar_lea.sflag [#allocation5], %s904_s25 }
 0x2e4   : > { %p1135_p0 = pnand %p1738_p11, %p1737_p12 }
 0x2e6   : > { %1334 = dma.done.wait (!%p1135_p0), %s905_s21, 256  }
 0x2e7   : > { %1336 = vsyncadd (!%p1135_p0), %s905_s21, 4294967040  ;;  %s22_s23 = sadd.s32 1, %s1359_s23   ;;  %s1739_s18 = smov %s1343_s19 }
 0x2e8   : > { %p19_p5 = scmp.ge.s32.totalorder %s22_s23, 4   ;;  %s1740_s19 = smov %s1347_s20 }
 0x2e9   : > { %s1741_s20 = smov %s1519_s15  ;;  %s1742_s21 = smov %s1355_s22 }
 0x2ea   : > { %s1743_s22 = smov %s1745_s9  ;;  %21 = sbr.rel (!%p19_p5) target bundleno = 7 (0x7), region = 152 }
 0x2f1   :  { %910 = vsyncpa [#allocation4], 1 }
 0x2f2   :  { %912 = vsyncpa [#allocation4 + $0x1], 1 }
 0x2f3   :  { %913 = vsyncpa [#allocation7], 1 }
 0x2f4   :  { %914 = vsyncpa [#allocation5], 1 }
 0x2f5   :  { %916 = vsyncpa [#allocation5 + $0x1], 1 }

// kernel: tpu_custom_call.1
= control target key start
LH: loop header
LB: loop body
LE: loop exit
PB: predicated region body
PF: predicated region fallthrough
CT: control target
= control target key end

     0   :  { %10 = vsyncpa [#allocation3], 0  ;;  %s521_s0 = inlined_call_operand.hbm [shape: f32[32,64], index: 0, kind: input, shape index: {}]   ;;  %s522_s1 = inlined_call_operand.hbm [shape: f32[64,128], index: 1, kind: input, shape index: {}]   ;;  %s523_s2 = inlined_call_operand.vmem [shape: f32[1,128], index: 2, kind: input, shape index: {}]   ;;  %s524_s3 = inlined_call_operand.vmem [shape: f32[1,128], index: 3, kind: input, shape index: {}]   ;;  %s525_s4 = inlined_call_operand.vmem [shape: f32[1,128], index: 4, kind: input, shape index: {}]   ;;  %s526_s5 = inlined_call_operand.hbm [shape: f32[32,128], index: 5, kind: output, shape index: {}]  }
   0x1   :  { %11 = vsyncpa [#allocation6], 0 }
   0x2   :  { %12 = vsyncpa [#allocation4], 0  ;;  %s416_s18 = smov [#allocation2]   ;;  %s344_s22 = scalar_lea.hbm %s521_s0, 512 }
   0x3   :  { %s18_s19 = sshll.u32 %s416_s18, 4  ;;  %p345_p0 = scmp.ne.s32.totalorder %s521_s0, %s344_s22  ;;  %s19_s19 = int_to_ptr.vmem [resolvable:$true] %s18_s19 }
   0x4   :  { %p348_p1 = scmp.lt.u32.totalorder %s344_s22, %s521_s0 }
   0x6   :  { %p350_p2 = pnand %p348_p1, %p345_p0 }
   0x8   :  { %353 = shalt.err (!%p350_p2)
}
   0x9   :  { %s354_s27 = scalar_lea.vmem %s19_s19, 512  ;;  %p359_p4 = scmp.lt.s32.totalorder %s19_s19, %s19_s19 }
   0xa   :  { %p355_p3 = scmp.ne.s32.totalorder %s19_s19, %s354_s27  ;;  %p360_p5 = scmp.lt.s32.totalorder %s354_s27, %s354_s27 }
   0xc   :  { %p361_p6 = por %p360_p5, %p359_p4 }
   0xe   :  { %p362_p7 = pnand %p361_p6, %p355_p3 }
  0x10   :  { %365 = shalt.err (!%p362_p7)
}
  0x11   :  { %s417_s28 = smov 128   ;;  %s418_s29 = smov 8  }
  0x12   :  { %24 = dma.hbm_to_vmem [thread:$0]  %s521_s0, 512, %s19_s19, [#allocation3], %s417_s28, %s417_s28, %s418_s29  }
  0x13   :  { %s419_s7 = smov [#allocation5]   ;;  %s366_s11 = scalar_lea.hbm %s522_s1, 1024 }
  0x14   :  { %s30_s8 = sshll.u32 %s419_s7, 4  ;;  %p367_p8 = scmp.ne.s32.totalorder %s522_s1, %s366_s11  ;;  %s31_s8 = int_to_ptr.vmem [resolvable:$true] %s30_s8 }
  0x15   :  { %p370_p9 = scmp.lt.u32.totalorder %s366_s11, %s522_s1 }
  0x17   :  { %p372_p10 = pnand %p370_p9, %p367_p8 }
  0x19   :  { %375 = shalt.err (!%p372_p10)
}
  0x1a   :  { %s376_s16 = scalar_lea.vmem %s31_s8, 1024  ;;  %p381_p12 = scmp.lt.s32.totalorder %s31_s8, %s31_s8 }
  0x1b   :  { %p377_p11 = scmp.ne.s32.totalorder %s31_s8, %s376_s16  ;;  %p382_p13 = scmp.lt.s32.totalorder %s376_s16, %s376_s16 }
  0x1d   :  { %p383_p0 = por %p382_p13, %p381_p12 }
  0x1f   :  { %p384_p1 = pnand %p383_p0, %p377_p11 }
  0x21   :  { %387 = shalt.err (!%p384_p1)
}
  0x22   :  { %36 = dma.hbm_to_vmem [thread:$0]  %s522_s1, 1024, %s31_s8, [#allocation6], %s417_s28, %s417_s28, %s418_s29  }
  0x23   :  { %410 = dma.done.wait [#allocation3], 512  }
  0x24   :  { %411 = vsyncadd [#allocation3], 4294966784 }
  0x25   :  { %412 = dma.done.wait [#allocation6], 1024  }
  0x26   :  { %413 = vsyncadd [#allocation6], 4294966272  ;;  %v53_v0 = vld [vmem:[#allocation5] sm:$0xff]  ;;  %v54_v1 = vld [vmem:[#allocation5 + $0x8] sm:$0xff]  ;;  %vm68_vm0 = vcmask 523264  }
  0x27   :  { %v55_v2 = vld [vmem:[#allocation5 + $0x10] sm:$0xff]  ;;  %v307_v3 = vpack.c.bf16 %v54_v1, %v53_v0  ;;  %v56_v4 = vld [vmem:[#allocation5 + $0x18] sm:$0xff]  ;;  %v57_v6 = vld [vmem:[#allocation5 + $0x20] sm:$0xff] }
  0x28   :  { %v311_v5 = vpack.c.bf16 %v56_v4, %v55_v2  ;;  %v58_v7 = vld [vmem:[#allocation5 + $0x28] sm:$0xff]  ;;  %v49_v8 = vld [vmem:[#allocation2] sm:$0xff]  ;;  %v51_v9 = vld [vmem:[#allocation2 + $0x10] sm:$0xff] }
  0x29   :  { %308 = vmatprep.subr.bf16.mxu0 %v307_v3  ;;  %323 = vmatprep.subr.bf16.mxu1 %v307_v3  ;;  %v315_v10 = vpack.c.bf16 %v58_v7, %v57_v6  ;;  %v59_v11 = vld [vmem:[#allocation5 + $0x30] sm:$0xff]  ;;  %v60_v12 = vld [vmem:[#allocation5 + $0x38] sm:$0xff]  ;;  %v50_v14 = vld [vmem:[#allocation2 + $0x8] sm:$0xff] }
  0x2a   :  { %310 = vmatpush3.bf16.msra.mxu0 %v307_v3  ;;  %327 = vmatpush3.bf16.msra.mxu1 %v307_v3  ;;  %v319_v13 = vpack.c.bf16 %v60_v12, %v59_v11  ;;  %v52_v15 = vld [vmem:[#allocation2 + $0x18] sm:$0xff]  ;;  %v266_v16 = vld [vmem:[%s523_s2] ss:$0 sm:$0xff] }
  0x2b   :  { %312 = vmatprep.subr.bf16.mxu0 %v311_v5  ;;  %324 = vmatprep.subr.bf16.mxu1 %v311_v5  ;;  %v271_v0 = vld [vmem:[%s524_s3] ss:$0 sm:$0xff]  ;;  %s420_s3 = smov [#allocation7]  }
  0x2c   :  { %301 = vmatprep.mubr.msk.f32.mxu0 %vm68_vm0, %v49_v8  ;;  %304 = vmatprep.mubr.msk.f32.mxu1 %vm68_vm0, %v51_v9  ;;  %v272_v4 = vld [vmem:[%s525_s4] ss:$0 sm:$0xff]  ;;  %s253_s22 = sshll.u32 %s420_s3, 4  ;;  %s254_s22 = int_to_ptr.vmem [resolvable:$true] %s253_s22 }
  0x2d   :  { %s388_s4 = scalar_lea.vmem %s254_s22, 512  ;;  %p393_p3 = scmp.lt.s32.totalorder %s254_s22, %s254_s22 }
  0x2e   :  { %314 = vmatpush3.bf16.msra.mxu0 %v311_v5  ;;  %328 = vmatpush3.bf16.msra.mxu1 %v311_v5  ;;  %p389_p2 = scmp.ne.s32.totalorder %s254_s22, %s388_s4  ;;  %p394_p4 = scmp.lt.s32.totalorder %s388_s4, %s388_s4 }
  0x2f   :  { %316 = vmatprep.subr.bf16.mxu0 %v315_v10  ;;  %325 = vmatprep.subr.bf16.mxu1 %v315_v10 }
  0x30   :  { %p395_p5 = por %p394_p4, %p393_p3 }
  0x32   :  { %318 = vmatpush3.bf16.msra.mxu0 %v315_v10  ;;  %329 = vmatpush3.bf16.msra.mxu1 %v315_v10  ;;  %p396_p6 = pnand %p395_p5, %p389_p2 }
  0x33   :  { %320 = vmatprep.subr.bf16.mxu0 %v319_v13  ;;  %326 = vmatprep.subr.bf16.mxu1 %v319_v13 }
  0x36   :  { %322 = vmatpush3.bf16.msra.mxu0 %v319_v13  ;;  %330 = vmatpush3.bf16.msra.mxu1 %v319_v13 }
  0x39   :  { %302 = vmatmul.mubr.msk.f32.vlgmr.msra.gmra.mrb[0].mxu0 %vm68_vm0, %v50_v14  ;;  %305 = vmatmul.mubr.msk.f32.vlgmr.msra.gmra.mrb[0].mxu1 %vm68_vm0, %v52_v15 }
 0x10c   :  { %v303_v17 = vpop.f32.mrb[0].mxu0  ;;  %v306_v18 = vpop.f32.mrb[0].mxu1 }
 0x10d   :  { %v153_v19 = vadd.f32 %v303_v17, %v266_v16  ;;  %v488_v20 = vadd.f32 %v306_v18, %v266_v16  ;;  %v147_v21 = vpop.f32.mrb[1].mxu0  ;;  %v157_v22 = vpop.f32.mrb[1].mxu1 }
 0x10e   :  { %v148_v23 = vadd.f32 %v266_v16, %v147_v21  ;;  %v491_v24 = vadd.f32 %v266_v16, %v157_v22 }
 0x10f   :  { %172 = vadd.xlane.f32.xlu1 %v488_v20  ;;  %168 = vadd.xlane.f32.xlu0 %v153_v19  ;;  %v179_v25 = vmul.f32 %v153_v19, %v153_v19  ;;  %v181_v27 = vmul.f32 %v488_v20, %v488_v20 }
 0x110   :  { %v178_v26 = vmul.f32 %v148_v23, %v148_v23  ;;  %v180_v28 = vmul.f32 %v491_v24, %v491_v24 }
 0x113   :  { %170 = vadd.xlane.f32.xlu1 %v491_v24  ;;  %166 = vadd.xlane.f32.xlu0 %v148_v23 }
 0x117   :  { %184 = vadd.xlane.f32.xlu1 %v179_v25  ;;  %182 = vadd.xlane.f32.xlu0 %v178_v26 }
 0x11b   :  { %188 = vadd.xlane.f32.xlu1 %v181_v27  ;;  %186 = vadd.xlane.f32.xlu0 %v180_v28 }
 0x19c   :  { %v173_v29 = vpop.xlane.xlu1 %172  ;;  %v169_v30 = vpop.xlane.xlu0 %168 }
 0x19d   :  { %v175_v33 = vmul.f32 0.03125, %v169_v30  ;;  %v177_v35 = vmul.f32 0.03125, %v173_v29 }
 0x19f   :  { %v195_v39 = vmul.f32 %v175_v33, %v175_v33  ;;  %v197_v45 = vmul.f32 %v177_v35, %v177_v35  ;;  %v215_v61 = vsub.f32 %v153_v19, %v175_v33  ;;  %v217_v5 = vsub.f32 %v488_v20, %v177_v35 }
 0x1a0   :  { %v171_v31 = vpop.xlane.xlu1 %170  ;;  %v167_v32 = vpop.xlane.xlu0 %166 }
 0x1a1   :  { %v174_v34 = vmul.f32 0.03125, %v167_v32  ;;  %v176_v36 = vmul.f32 0.03125, %v171_v31 }
 0x1a3   :  { %v194_v40 = vmul.f32 %v174_v34, %v174_v34  ;;  %v196_v46 = vmul.f32 %v176_v36, %v176_v36  ;;  %v214_v63 = vsub.f32 %v148_v23, %v174_v34  ;;  %v216_v8 = vsub.f32 %v491_v24, %v176_v36 }
 0x1a4   :  { %v185_v37 = vpop.xlane.xlu1 %184  ;;  %v183_v38 = vpop.xlane.xlu0 %182 }
 0x1a5   :  { %v191_v41 = vmul.f32 0.03125, %v185_v37  ;;  %v190_v42 = vmul.f32 0.03125, %v183_v38 }
 0x1a7   :  { %v199_v43 = vsub.f32 %v191_v41, %v195_v39  ;;  %v198_v44 = vsub.f32 %v190_v42, %v194_v40 }
 0x1a8   :  { %v189_v47 = vpop.xlane.xlu1 %188  ;;  %v187_v48 = vpop.xlane.xlu0 %186 }
 0x1a9   :  { %v203_v49 = vmax.f32 %v199_v43, 0.0  ;;  %v202_v50 = vmax.f32 %v198_v44, 0.0  ;;  %v193_v51 = vmul.f32 0.03125, %v189_v47  ;;  %v192_v52 = vmul.f32 0.03125, %v187_v48 }
 0x1ab   :  { %v207_v53 = vadd.f32 1e-05, %v203_v49  ;;  %v206_v54 = vadd.f32 1e-05, %v202_v50  ;;  %v201_v55 = vsub.f32 %v193_v51, %v197_v45  ;;  %v200_v56 = vsub.f32 %v192_v52, %v196_v46 }
 0x1ad   :  { %336 = vrsqrt.f32 %v207_v53  ;;  %v205_v57 = vmax.f32 %v201_v55, 0.0  ;;  %v204_v58 = vmax.f32 %v200_v56, 0.0 }
 0x1ae   :  { %338 = vrsqrt.f32 %v206_v54 }
 0x1af   :  { %v209_v59 = vadd.f32 1e-05, %v205_v57  ;;  %v208_v60 = vadd.f32 1e-05, %v204_v58 }
 0x1b1   :  { %340 = vrsqrt.f32 %v209_v59 }
 0x1b2   :  { %342 = vrsqrt.f32 %v208_v60 }
 0x1b7   :  { %v337_v62 = vpop.eup %336 }
 0x1b8   :  { %v339_v1 = vpop.eup %338  ;;  %v219_v2 = vmul.f32 %v337_v62, %v215_v61 }
 0x1b9   :  { %v218_v3 = vmul.f32 %v339_v1, %v214_v63 }
 0x1ba   :  { %v230_v6 = vmul.f32 %v271_v0, %v219_v2 }
 0x1bb   :  { %v341_v7 = vpop.eup %340  ;;  %v229_v9 = vmul.f32 %v271_v0, %v218_v3 }
 0x1bc   :  { %v343_v10 = vpop.eup %342  ;;  %v221_v11 = vmul.f32 %v341_v7, %v217_v5  ;;  %v241_v12 = vadd.f32 %v272_v4, %v230_v6 }
 0x1bd   :  { %v220_v13 = vmul.f32 %v343_v10, %v216_v8  ;;  %v240_v14 = vadd.f32 %v272_v4, %v229_v9 }
 0x1be   :  { %v232_v15 = vmul.f32 %v271_v0, %v221_v11  ;;  %245 = vst [vmem:[#allocation7 + $0x8] sm:$0xff] %v241_v12 }
 0x1bf   :  { %v231_v16 = vmul.f32 %v271_v0, %v220_v13  ;;  %244 = vst [vmem:[#allocation7] sm:$0xff] %v240_v14 }
 0x1c0   :  { %v243_v17 = vadd.f32 %v272_v4, %v232_v15 }
 0x1c1   :  { %v242_v18 = vadd.f32 %v272_v4, %v231_v16 }
 0x1c2   :  { %247 = vst [vmem:[#allocation7 + $0x18] sm:$0xff] %v243_v17 }
 0x1c3   :  { %246 = vst [vmem:[#allocation7 + $0x10] sm:$0xff] %v242_v18 }
 0x1c4   :  { %399 = shalt.err (!%p396_p6)
}
 0x1c5   :  { %s400_s25 = scalar_lea.hbm %s526_s5, 512 }
 0x1c6   :  { %p401_p7 = scmp.ne.s32.totalorder %s526_s5, %s400_s25  ;;  %p404_p8 = scmp.lt.u32.totalorder %s400_s25, %s526_s5 }
 0x1c8   :  { %p406_p9 = pnand %p404_p8, %p401_p7 }
 0x1ca   :  { %409 = shalt.err (!%p406_p9)
}
 0x1cb   :  { %259 = dma.vmem_to_hbm [thread:$0]  %s254_s22, 512, %s526_s5, [#allocation4], %s417_s28, %s417_s28, %s418_s29  }
 0x1cc   :  { %414 = dma.done.wait [#allocation4], 512  }
 0x1cd   :  { %415 = vsyncadd [#allocation4], 4294966784 }
 0x1ce   :  { %263 = vsyncpa [#allocation3], 1 }
 0x1cf   :  { %264 = vsyncpa [#allocation6], 1 }
 0x1d0   :  { %265 = vsyncpa [#allocation4], 1 }

// kernel: tpu_custom_call.1
= control target key start
LH: loop header
LB: loop body
LE: loop exit
PB: predicated region body
PF: predicated region fallthrough
CT: control target
= control target key end

     0   :  { %10 = vsyncpa [#allocation3], 0  ;;  %s521_s0 = inlined_call_operand.hbm [shape: f32[32,64], index: 0, kind: input, shape index: {}]   ;;  %s522_s1 = inlined_call_operand.hbm [shape: f32[64,128], index: 1, kind: input, shape index: {}]   ;;  %s523_s2 = inlined_call_operand.vmem [shape: f32[1,128], index: 2, kind: input, shape index: {}]   ;;  %s524_s3 = inlined_call_operand.vmem [shape: f32[1,128], index: 3, kind: input, shape index: {}]   ;;  %s525_s4 = inlined_call_operand.vmem [shape: f32[1,128], index: 4, kind: input, shape index: {}]   ;;  %s526_s5 = inlined_call_operand.hbm [shape: f32[32,128], index: 5, kind: output, shape index: {}]  }
   0x1   :  { %11 = vsyncpa [#allocation6], 0 }
   0x2   :  { %12 = vsyncpa [#allocation4], 0  ;;  %s416_s18 = smov [#allocation2]   ;;  %s344_s22 = scalar_lea.hbm %s521_s0, 512 }
   0x3   :  { %s18_s19 = sshll.u32 %s416_s18, 4  ;;  %p345_p0 = scmp.ne.s32.totalorder %s521_s0, %s344_s22  ;;  %s19_s19 = int_to_ptr.vmem [resolvable:$true] %s18_s19 }
   0x4   :  { %p348_p1 = scmp.lt.u32.totalorder %s344_s22, %s521_s0 }
   0x6   :  { %p350_p2 = pnand %p348_p1, %p345_p0 }
   0x8   :  { %353 = shalt.err (!%p350_p2)
}
   0x9   :  { %s354_s27 = scalar_lea.vmem %s19_s19, 512  ;;  %p359_p4 = scmp.lt.s32.totalorder %s19_s19, %s19_s19 }
   0xa   :  { %p355_p3 = scmp.ne.s32.totalorder %s19_s19, %s354_s27  ;;  %p360_p5 = scmp.lt.s32.totalorder %s354_s27, %s354_s27 }
   0xc   :  { %p361_p6 = por %p360_p5, %p359_p4 }
   0xe   :  { %p362_p7 = pnand %p361_p6, %p355_p3 }
  0x10   :  { %365 = shalt.err (!%p362_p7)
}
  0x11   :  { %s417_s28 = smov 128   ;;  %s418_s29 = smov 8  }
  0x12   :  { %24 = dma.hbm_to_vmem [thread:$0]  %s521_s0, 512, %s19_s19, [#allocation3], %s417_s28, %s417_s28, %s418_s29  }
  0x13   :  { %s419_s7 = smov [#allocation5]   ;;  %s366_s11 = scalar_lea.hbm %s522_s1, 1024 }
  0x14   :  { %s30_s8 = sshll.u32 %s419_s7, 4  ;;  %p367_p8 = scmp.ne.s32.totalorder %s522_s1, %s366_s11  ;;  %s31_s8 = int_to_ptr.vmem [resolvable:$true] %s30_s8 }
  0x15   :  { %p370_p9 = scmp.lt.u32.totalorder %s366_s11, %s522_s1 }
  0x17   :  { %p372_p10 = pnand %p370_p9, %p367_p8 }
  0x19   :  { %375 = shalt.err (!%p372_p10)
}
  0x1a   :  { %s376_s16 = scalar_lea.vmem %s31_s8, 1024  ;;  %p381_p12 = scmp.lt.s32.totalorder %s31_s8, %s31_s8 }
  0x1b   :  { %p377_p11 = scmp.ne.s32.totalorder %s31_s8, %s376_s16  ;;  %p382_p13 = scmp.lt.s32.totalorder %s376_s16, %s376_s16 }
  0x1d   :  { %p383_p0 = por %p382_p13, %p381_p12 }
  0x1f   :  { %p384_p1 = pnand %p383_p0, %p377_p11 }
  0x21   :  { %387 = shalt.err (!%p384_p1)
}
  0x22   :  { %36 = dma.hbm_to_vmem [thread:$0]  %s522_s1, 1024, %s31_s8, [#allocation6], %s417_s28, %s417_s28, %s418_s29  }
  0x23   :  { %410 = dma.done.wait [#allocation3], 512  }
  0x24   :  { %411 = vsyncadd [#allocation3], 4294966784 }
  0x25   :  { %412 = dma.done.wait [#allocation6], 1024  }
  0x26   :  { %413 = vsyncadd [#allocation6], 4294966272  ;;  %v53_v0 = vld [vmem:[#allocation5] sm:$0xff]  ;;  %v54_v1 = vld [vmem:[#allocation5 + $0x8] sm:$0xff]  ;;  %vm68_vm0 = vcmask 523264  }
  0x27   :  { %v55_v2 = vld [vmem:[#allocation5 + $0x10] sm:$0xff]  ;;  %v307_v3 = vpack.c.bf16 %v54_v1, %v53_v0  ;;  %v56_v4 = vld [vmem:[#allocation5 + $0x18] sm:$0xff]  ;;  %v57_v6 = vld [vmem:[#allocation5 + $0x20] sm:$0xff] }
  0x28   :  { %v311_v5 = vpack.c.bf16 %v56_v4, %v55_v2  ;;  %v58_v7 = vld [vmem:[#allocation5 + $0x28] sm:$0xff]  ;;  %v49_v8 = vld [vmem:[#allocation2] sm:$0xff]  ;;  %v51_v9 = vld [vmem:[#allocation2 + $0x10] sm:$0xff] }
  0x29   :  { %308 = vmatprep.subr.bf16.mxu0 %v307_v3  ;;  %323 = vmatprep.subr.bf16.mxu1 %v307_v3  ;;  %v315_v10 = vpack.c.bf16 %v58_v7, %v57_v6  ;;  %v59_v11 = vld [vmem:[#allocation5 + $0x30] sm:$0xff]  ;;  %v60_v12 = vld [vmem:[#allocation5 + $0x38] sm:$0xff]  ;;  %v50_v14 = vld [vmem:[#allocation2 + $0x8] sm:$0xff] }
  0x2a   :  { %310 = vmatpush3.bf16.msra.mxu0 %v307_v3  ;;  %327 = vmatpush3.bf16.msra.mxu1 %v307_v3  ;;  %v319_v13 = vpack.c.bf16 %v60_v12, %v59_v11  ;;  %v52_v15 = vld [vmem:[#allocation2 + $0x18] sm:$0xff]  ;;  %v266_v16 = vld [vmem:[%s523_s2] ss:$0 sm:$0xff] }
  0x2b   :  { %312 = vmatprep.subr.bf16.mxu0 %v311_v5  ;;  %324 = vmatprep.subr.bf16.mxu1 %v311_v5  ;;  %v271_v0 = vld [vmem:[%s524_s3] ss:$0 sm:$0xff]  ;;  %s420_s3 = smov [#allocation7]  }
  0x2c   :  { %301 = vmatprep.mubr.msk.f32.mxu0 %vm68_vm0, %v49_v8  ;;  %304 = vmatprep.mubr.msk.f32.mxu1 %vm68_vm0, %v51_v9  ;;  %v272_v4 = vld [vmem:[%s525_s4] ss:$0 sm:$0xff]  ;;  %s253_s22 = sshll.u32 %s420_s3, 4  ;;  %s254_s22 = int_to_ptr.vmem [resolvable:$true] %s253_s22 }
  0x2d   :  { %s388_s4 = scalar_lea.vmem %s254_s22, 512  ;;  %p393_p3 = scmp.lt.s32.totalorder %s254_s22, %s254_s22 }
  0x2e   :  { %314 = vmatpush3.bf16.msra.mxu0 %v311_v5  ;;  %328 = vmatpush3.bf16.msra.mxu1 %v311_v5  ;;  %p389_p2 = scmp.ne.s32.totalorder %s254_s22, %s388_s4  ;;  %p394_p4 = scmp.lt.s32.totalorder %s388_s4, %s388_s4 }
  0x2f   :  { %316 = vmatprep.subr.bf16.mxu0 %v315_v10  ;;  %325 = vmatprep.subr.bf16.mxu1 %v315_v10 }
  0x30   :  { %p395_p5 = por %p394_p4, %p393_p3 }
  0x32   :  { %318 = vmatpush3.bf16.msra.mxu0 %v315_v10  ;;  %329 = vmatpush3.bf16.msra.mxu1 %v315_v10  ;;  %p396_p6 = pnand %p395_p5, %p389_p2 }
  0x33   :  { %320 = vmatprep.subr.bf16.mxu0 %v319_v13  ;;  %326 = vmatprep.subr.bf16.mxu1 %v319_v13 }
  0x36   :  { %322 = vmatpush3.bf16.msra.mxu0 %v319_v13  ;;  %330 = vmatpush3.bf16.msra.mxu1 %v319_v13 }
  0x39   :  { %302 = vmatmul.mubr.msk.f32.vlgmr.msra.gmra.mrb[0].mxu0 %vm68_vm0, %v50_v14  ;;  %305 = vmatmul.mubr.msk.f32.vlgmr.msra.gmra.mrb[0].mxu1 %vm68_vm0, %v52_v15 }
 0x10c   :  { %v303_v17 = vpop.f32.mrb[0].mxu0  ;;  %v306_v18 = vpop.f32.mrb[0].mxu1 }
 0x10d   :  { %v153_v19 = vadd.f32 %v303_v17, %v266_v16  ;;  %v488_v20 = vadd.f32 %v306_v18, %v266_v16  ;;  %v147_v21 = vpop.f32.mrb[1].mxu0  ;;  %v157_v22 = vpop.f32.mrb[1].mxu1 }
 0x10e   :  { %v148_v23 = vadd.f32 %v266_v16, %v147_v21  ;;  %v491_v24 = vadd.f32 %v266_v16, %v157_v22 }
 0x10f   :  { %172 = vadd.xlane.f32.xlu1 %v488_v20  ;;  %168 = vadd.xlane.f32.xlu0 %v153_v19  ;;  %v179_v25 = vmul.f32 %v153_v19, %v153_v19  ;;  %v181_v27 = vmul.f32 %v488_v20, %v488_v20 }
 0x110   :  { %v178_v26 = vmul.f32 %v148_v23, %v148_v23  ;;  %v180_v28 = vmul.f32 %v491_v24, %v491_v24 }
 0x113   :  { %170 = vadd.xlane.f32.xlu1 %v491_v24  ;;  %166 = vadd.xlane.f32.xlu0 %v148_v23 }
 0x117   :  { %184 = vadd.xlane.f32.xlu1 %v179_v25  ;;  %182 = vadd.xlane.f32.xlu0 %v178_v26 }
 0x11b   :  { %188 = vadd.xlane.f32.xlu1 %v181_v27  ;;  %186 = vadd.xlane.f32.xlu0 %v180_v28 }
 0x19c   :  { %v173_v29 = vpop.xlane.xlu1 %172  ;;  %v169_v30 = vpop.xlane.xlu0 %168 }
 0x19d   :  { %v175_v33 = vmul.f32 0.03125, %v169_v30  ;;  %v177_v35 = vmul.f32 0.03125, %v173_v29 }
 0x19f   :  { %v195_v39 = vmul.f32 %v175_v33, %v175_v33  ;;  %v197_v45 = vmul.f32 %v177_v35, %v177_v35  ;;  %v215_v61 = vsub.f32 %v153_v19, %v175_v33  ;;  %v217_v5 = vsub.f32 %v488_v20, %v177_v35 }
 0x1a0   :  { %v171_v31 = vpop.xlane.xlu1 %170  ;;  %v167_v32 = vpop.xlane.xlu0 %166 }
 0x1a1   :  { %v174_v34 = vmul.f32 0.03125, %v167_v32  ;;  %v176_v36 = vmul.f32 0.03125, %v171_v31 }
 0x1a3   :  { %v194_v40 = vmul.f32 %v174_v34, %v174_v34  ;;  %v196_v46 = vmul.f32 %v176_v36, %v176_v36  ;;  %v214_v63 = vsub.f32 %v148_v23, %v174_v34  ;;  %v216_v8 = vsub.f32 %v491_v24, %v176_v36 }
 0x1a4   :  { %v185_v37 = vpop.xlane.xlu1 %184  ;;  %v183_v38 = vpop.xlane.xlu0 %182 }
 0x1a5   :  { %v191_v41 = vmul.f32 0.03125, %v185_v37  ;;  %v190_v42 = vmul.f32 0.03125, %v183_v38 }
 0x1a7   :  { %v199_v43 = vsub.f32 %v191_v41, %v195_v39  ;;  %v198_v44 = vsub.f32 %v190_v42, %v194_v40 }
 0x1a8   :  { %v189_v47 = vpop.xlane.xlu1 %188  ;;  %v187_v48 = vpop.xlane.xlu0 %186 }
 0x1a9   :  { %v203_v49 = vmax.f32 %v199_v43, 0.0  ;;  %v202_v50 = vmax.f32 %v198_v44, 0.0  ;;  %v193_v51 = vmul.f32 0.03125, %v189_v47  ;;  %v192_v52 = vmul.f32 0.03125, %v187_v48 }
 0x1ab   :  { %v207_v53 = vadd.f32 1e-05, %v203_v49  ;;  %v206_v54 = vadd.f32 1e-05, %v202_v50  ;;  %v201_v55 = vsub.f32 %v193_v51, %v197_v45  ;;  %v200_v56 = vsub.f32 %v192_v52, %v196_v46 }
 0x1ad   :  { %336 = vrsqrt.f32 %v207_v53  ;;  %v205_v57 = vmax.f32 %v201_v55, 0.0  ;;  %v204_v58 = vmax.f32 %v200_v56, 0.0 }
 0x1ae   :  { %338 = vrsqrt.f32 %v206_v54 }
 0x1af   :  { %v209_v59 = vadd.f32 1e-05, %v205_v57  ;;  %v208_v60 = vadd.f32 1e-05, %v204_v58 }
 0x1b1   :  { %340 = vrsqrt.f32 %v209_v59 }
 0x1b2   :  { %342 = vrsqrt.f32 %v208_v60 }
 0x1b7   :  { %v337_v62 = vpop.eup %336 }
 0x1b8   :  { %v339_v1 = vpop.eup %338  ;;  %v219_v2 = vmul.f32 %v337_v62, %v215_v61 }
 0x1b9   :  { %v218_v3 = vmul.f32 %v339_v1, %v214_v63 }
 0x1ba   :  { %v230_v6 = vmul.f32 %v271_v0, %v219_v2 }
 0x1bb   :  { %v341_v7 = vpop.eup %340  ;;  %v229_v9 = vmul.f32 %v271_v0, %v218_v3 }
 0x1bc   :  { %v343_v10 = vpop.eup %342  ;;  %v221_v11 = vmul.f32 %v341_v7, %v217_v5  ;;  %v241_v12 = vadd.f32 %v272_v4, %v230_v6 }
 0x1bd   :  { %v220_v13 = vmul.f32 %v343_v10, %v216_v8  ;;  %v240_v14 = vadd.f32 %v272_v4, %v229_v9 }
 0x1be   :  { %v232_v15 = vmul.f32 %v271_v0, %v221_v11  ;;  %245 = vst [vmem:[#allocation7 + $0x8] sm:$0xff] %v241_v12 }
 0x1bf   :  { %v231_v16 = vmul.f32 %v271_v0, %v220_v13  ;;  %244 = vst [vmem:[#allocation7] sm:$0xff] %v240_v14 }
 0x1c0   :  { %v243_v17 = vadd.f32 %v272_v4, %v232_v15 }
 0x1c1   :  { %v242_v18 = vadd.f32 %v272_v4, %v231_v16 }
 0x1c2   :  { %247 = vst [vmem:[#allocation7 + $0x18] sm:$0xff] %v243_v17 }
 0x1c3   :  { %246 = vst [vmem:[#allocation7 + $0x10] sm:$0xff] %v242_v18 }
 0x1c4   :  { %399 = shalt.err (!%p396_p6)
}
 0x1c5   :  { %s400_s25 = scalar_lea.hbm %s526_s5, 512 }
 0x1c6   :  { %p401_p7 = scmp.ne.s32.totalorder %s526_s5, %s400_s25  ;;  %p404_p8 = scmp.lt.u32.totalorder %s400_s25, %s526_s5 }
 0x1c8   :  { %p406_p9 = pnand %p404_p8, %p401_p7 }
 0x1ca   :  { %409 = shalt.err (!%p406_p9)
}
 0x1cb   :  { %259 = dma.vmem_to_hbm [thread:$0]  %s254_s22, 512, %s526_s5, [#allocation4], %s417_s28, %s417_s28, %s418_s29  }
 0x1cc   :  { %414 = dma.done.wait [#allocation4], 512  }
 0x1cd   :  { %415 = vsyncadd [#allocation4], 4294966784 }
 0x1ce   :  { %263 = vsyncpa [#allocation3], 1 }
 0x1cf   :  { %264 = vsyncpa [#allocation6], 1 }
 0x1d0   :  { %265 = vsyncpa [#allocation4], 1 }

</bundles_post_ra>
